<compile_context>
chip_gen: v5e
topology: v5e:2x2
jax: 0.10.0
libtpu: 0.0.40
codegen_flags: <defaults>
</compile_context>

<pallas_src>
import functools
import math

import jax
import jax.numpy as jnp
from jax import lax
from jax.experimental import pallas as pl
from jax.experimental.pallas import tpu as pltpu

NUM_POS_FEATS = 64
TEMPERATURE = 10000.0


def mlp2d_kernel(x_ref, sigma_ref, inv_dimt_ref, phase_ref,
                 w1x_ref, w1b_ref, b1_ref, *rest,
                 n_mid, lane_chunk, n_chunks):
    """One (features, TILE_B) batch tile, processed in lane chunks.

    x_ref:(2,TB)  sigma_ref:(1,TB)  inv_dimt/phase:(64,1)
    w1x:(H,2) w1b:(H,64) b1:(H,1)
    [wmid:(n_mid,H,H) bmid:(n_mid,H,1)]  wlast:(H,2) blast:(2,1)  out:(2,TB)
    """
    if n_mid > 0:
        wmid_ref, bmid_ref, wlast_ref, blast_ref, out_ref = rest
    else:
        wmid_ref = bmid_ref = None
        wlast_ref, blast_ref, out_ref = rest

    # Loop-invariant loads hoisted once per grid step (JAX does not CSE broadcasts
    # inside the chunk loop).
    inv_dimt = inv_dimt_ref[...]                         # (64, 1)
    phase = phase_ref[...]                               # (64, 1)
    w1x0 = w1x_ref[:, 0:1]                               # (H, 1)
    w1x1 = w1x_ref[:, 1:2]                               # (H, 1)
    w1b = w1b_ref[...]                                   # (H, 64), matmul dtype
    b1 = b1_ref[...]                                     # (H, 1)
    wmid = [wmid_ref[i] for i in range(n_mid)]           # n_mid x (H, H), matmul dtype
    bmid = [bmid_ref[i] for i in range(n_mid)]           # n_mid x (H, 1)
    wlast0 = wlast_ref[:, 0:1]                           # (H, 1)
    wlast1 = wlast_ref[:, 1:2]                           # (H, 1)
    blast0 = blast_ref[0:1, :]                           # (1, 1)
    blast1 = blast_ref[1:2, :]                           # (1, 1)

    def chunk_body(c, carry):
        start = pl.multiple_of(c * lane_chunk, lane_chunk)
        cols = pl.ds(start, lane_chunk)
        x = x_ref[:, cols]                               # (2, C) f32
        sigma = sigma_ref[:, cols]                       # (1, C) f32

        # PE(sigma): one transcendental per element; cos(t) = sin(t + pi/2) on odd rows.
        pe = jnp.sin(sigma * inv_dimt + phase)           # (64, C) f32

        # Layer 1 with linpos folded in: 2 VPU broadcast FMAs + one MXU matmul.
        h = (w1x0 * x[0:1, :]
             + w1x1 * x[1:2, :]
             + jnp.dot(w1b, pe.astype(w1b.dtype),
                       preferred_element_type=jnp.float32)
             + b1)
        h = jnp.maximum(h, 0.0)                          # (H, C) f32

        # Middle Linear(H, H) + ReLU layers (static unroll over resident weights).
        for i in range(n_mid):
            h = jnp.dot(wmid[i], h.astype(wmid[i].dtype),
                        preferred_element_type=jnp.float32) + bmid[i]
            h = jnp.maximum(h, 0.0)

        # Final Linear(H, 2): VPU multiply + sublane reduce; direct row stores
        # (no sublane concat relayout).
        out0 = jnp.sum(h * wlast0, axis=0, keepdims=True) + blast0   # (1, C)
        out1 = jnp.sum(h * wlast1, axis=0, keepdims=True) + blast1   # (1, C)
        out_ref[0:1, cols] = out0.astype(out_ref.dtype)
        out_ref[1:2, cols] = out1.astype(out_ref.dtype)
        return carry

    lax.fori_loop(0, n_chunks, chunk_body, None, unroll=True)


def _round_up(n, m):
    return -(-n // m) * m


def _choose_tile_b(B, desired=4096):
    """Batch tile: big enough to amortize the ~0.35-0.6 us per-grid-step overhead,
    but guaranteeing >= 2 grid steps (when B allows) so both v7x TCs get work."""
    return min(_round_up(desired, 128), max(_round_up(-(-B // 2), 128), 128))


def _dim_t():
    # temperature ** (2 * (arange(64) // 2) / 64), pairwise-constant
    t = (2.0 * (jnp.arange(NUM_POS_FEATS) // 2).astype(jnp.float32)) / NUM_POS_FEATS
    return (TEMPERATURE ** t).astype(jnp.float32)


def init_linear(key, fan_in, fan_out):
    """Deterministic PyTorch-style uniform(-1/sqrt(fan_in), 1/sqrt(fan_in)) init."""
    kw, kb = jax.random.split(key)
    bound = 1.0 / float(fan_in) ** 0.5
    w = jax.random.uniform(kw, (fan_in, fan_out), jnp.float32, -bound, bound)
    b = jax.random.uniform(kb, (1, fan_out), jnp.float32, -bound, bound)
    return w, b


def make_params(key, hidden_dim, num_layers):
    keys = jax.random.split(key, num_layers + 1)
    wpos, bpos = init_linear(keys[0], 2, NUM_POS_FEATS)
    w1, b1 = init_linear(keys[1], 2 * NUM_POS_FEATS, hidden_dim)
    mids = [init_linear(keys[2 + i], hidden_dim, hidden_dim)
            for i in range(num_layers - 2)]
    wlast, blast = init_linear(keys[num_layers], hidden_dim, 2)
    return dict(wpos=wpos, bpos=bpos, w1=w1, b1=b1, mids=mids,
                wlast=wlast, blast=blast)


def mlp2d_forward(params, x, sigma, *, tile_b=None, lane_chunk=512,
                  matmul_dtype=jnp.float32):
    """x: (B, 2), sigma: (B, 1) -> (B, 2).

    Call under jax.jit so the transpose/pad/slice layout plumbing fuses with
    adjacent ops instead of running as standalone HBM round-trips.
    """
    B = x.shape[0]
    H = params['b1'].shape[1]
    n_mid = len(params['mids'])

    if tile_b is None:
        tile_b = _choose_tile_b(B)
    assert tile_b % 128 == 0, "tile_b must be a multiple of the 128-lane width"
    lane_chunk = min(lane_chunk, tile_b)
    while tile_b % lane_chunk != 0:        # largest multiple of 128 dividing tile_b
        lane_chunk -= 128
    assert lane_chunk % 128 == 0 and tile_b % lane_chunk == 0
    n_chunks = tile_b // lane_chunk

    num_tiles = -(-B // tile_b)
    Bp = num_tiles * tile_b

    # Batch on the lane axis; zero-pad the tail tile (safe: all contractions are over
    # the feature/sublane axis and padded lanes are sliced off at the end).
    x_t = jnp.pad(x.T, ((0, 0), (0, Bp - B)))            # (2, Bp)
    sigma_t = jnp.pad(sigma.T, ((0, 0), (0, Bp - B)))    # (1, Bp)

    # Kernel-layout weights: (out, in), y = W @ h with batch on lanes.
    # Fold linpos into layer 1 (exact linear composition).
    wpos_k = params['wpos'].T                            # (64, 2)
    bpos_k = params['bpos'].T                            # (64, 1)
    w1a_k = params['w1'][:NUM_POS_FEATS].T               # (H, 64) -> linpos(x) branch
    w1b_k = params['w1'][NUM_POS_FEATS:].T               # (H, 64) -> PE(sigma) branch
    w1x_k = w1a_k @ wpos_k                               # (H, 2)
    b1_k = w1a_k @ bpos_k + params['b1'].T               # (H, 1)
    wlast_k = params['wlast']                            # (H, 2): already (in, out)
    blast_k = params['blast'].T                          # (2, 1)

    # MXU operands optionally bf16 (v5e/v6e MXU is bf16-native); everything else f32.
    w1b_k = w1b_k.astype(matmul_dtype)
    if n_mid > 0:
        wmid_k = jnp.stack([w.T for (w, _) in params['mids']]).astype(matmul_dtype)
        bmid_k = jnp.stack([b.T for (_, b) in params['mids']])   # (n_mid, H, 1) f32

    dim_t = _dim_t()
    inv_dimt = (1.0 / dim_t).reshape(NUM_POS_FEATS, 1)
    phase = jnp.where(jnp.arange(NUM_POS_FEATS) % 2 == 1,
                      jnp.float32(math.pi / 2.0),
                      jnp.float32(0.0)).astype(jnp.float32).reshape(NUM_POS_FEATS, 1)

    const_inputs = [inv_dimt, phase, w1x_k, w1b_k, b1_k]
    if n_mid > 0:
        const_inputs += [wmid_k, bmid_k]
    const_inputs += [wlast_k, blast_k]
    inputs = [x_t, sigma_t] + const_inputs

    def batch_spec(rows):
        return pl.BlockSpec((rows, tile_b), lambda i: (0, i))

    def const_spec(arr):                                  # resident in VMEM across grid
        nd = arr.ndim
        return pl.BlockSpec(arr.shape, lambda i, _nd=nd: (0,) * _nd)

    in_specs = [batch_spec(2), batch_spec(1)] + [const_spec(a) for a in const_inputs]
    out_specs = pl.BlockSpec((2, tile_b), lambda i: (0, i))

    flops = 2 * Bp * (NUM_POS_FEATS * H + 2 * H + n_mid * H * H + 2 * H)
    weight_bytes = sum(int(a.size) * a.dtype.itemsize for a in const_inputs)
    bytes_accessed = 4 * (2 * Bp + Bp + 2 * Bp) + weight_bytes

    # TODO(synk): if H / n_mid ever scale up, the stacked resident (n_mid,H,H) weights can
    # exceed v7x's 64 MiB VMEM; grid over the layer index (or force bf16 weights) then.
    out_t = pl.pallas_call(
        functools.partial(mlp2d_kernel, n_mid=n_mid,
                          lane_chunk=lane_chunk, n_chunks=n_chunks),
        out_shape=jax.ShapeDtypeStruct((2, Bp), jnp.float32),
        grid_spec=pltpu.PrefetchScalarGridSpec(
            num_scalar_prefetch=0,
            grid=(num_tiles,),
            in_specs=in_specs,
            out_specs=out_specs),
        compiler_params=pltpu.CompilerParams(
            dimension_semantics=("parallel",),            # shard batch grid over TCs
            vmem_limit_bytes=32 * 1024 * 1024),
        cost_estimate=pl.CostEstimate(
            flops=flops,
            transcendentals=NUM_POS_FEATS * Bp,
            bytes_accessed=bytes_accessed),
    )(*inputs)

    return out_t[:, :B].T                                 # (B, 2)


def ref_forward(params, x, sigma):
    """Pure-JAX reference replicating the PyTorch module semantics exactly."""
    dim_t = _dim_t()
    pos_x = sigma[:, :, None] / dim_t                     # (B, 1, 64)
    pe = jnp.stack([jnp.sin(pos_x[:, :, 0::2]),
                    jnp.cos(pos_x[:, :, 1::2])], axis=3).reshape(x.shape[0], -1)
    h_pos = x @ params['wpos'] + params['bpos']
    h = jnp.concatenate([h_pos, pe], axis=1)
    h = jnp.maximum(h @ params['w1'] + params['b1'], 0.0)
    for (w, b) in params['mids']:
        h = jnp.maximum(h @ w + b, 0.0)
    return h @ params['wlast'] + params['blast']


if __name__ == "__main__":
    B, HIDDEN_DIM, NUM_LAYERS = 300, 32, 3

    key = jax.random.PRNGKey(0)
    kp, kx, ks = jax.random.split(key, 3)

    params = make_params(kp, HIDDEN_DIM, NUM_LAYERS)
    x = jax.random.normal(kx, (B, 2), jnp.float32)
    sigma = jax.random.uniform(ks, (B, 1), jnp.float32, 0.01, 1.0)

    # Jit the whole wrapper so the transpose/pad/slice layout plumbing fuses.
    fwd_f32 = jax.jit(functools.partial(mlp2d_forward, matmul_dtype=jnp.float32))
    fwd_bf16 = jax.jit(functools.partial(mlp2d_forward, matmul_dtype=jnp.bfloat16))

    ref = ref_forward(params, x, sigma)

    # Strict check in f32 (tolerance slightly relaxed only for the exact linpos fold
    # reassociation).
    out = jax.block_until_ready(fwd_f32(params, x, sigma))
    assert out.shape == (B, 2)
    assert jnp.allclose(out, ref, rtol=1e-4, atol=2e-5), (
        float(jnp.max(jnp.abs(out - ref))))

    # bf16-MXU-operand variant (v5e/v6e-friendly); looser tolerance by construction.
    out_bf16 = jax.block_until_ready(fwd_bf16(params, x, sigma))
    assert jnp.allclose(out_bf16, ref, rtol=3e-2, atol=3e-2), (
        float(jnp.max(jnp.abs(out_bf16 - ref))))

    print("KERNEL_OK")
</pallas_src>

<mosaic_0001>
module attributes {stable_mosaic.version = 11 : i64} {
  func.func @mlp2d_kernel(%arg0: i32, %arg1: memref<2x256xf32, #tpu.memory_space<vmem>>, %arg2: memref<1x256xf32, #tpu.memory_space<vmem>>, %arg3: memref<64x1xf32, #tpu.memory_space<vmem>>, %arg4: memref<64x1xf32, #tpu.memory_space<vmem>>, %arg5: memref<32x2xf32, #tpu.memory_space<vmem>>, %arg6: memref<32x64xf32, #tpu.memory_space<vmem>>, %arg7: memref<32x1xf32, #tpu.memory_space<vmem>>, %arg8: memref<1x32x32xf32, #tpu.memory_space<vmem>>, %arg9: memref<1x32x1xf32, #tpu.memory_space<vmem>>, %arg10: memref<32x2xf32, #tpu.memory_space<vmem>>, %arg11: memref<2x1xf32, #tpu.memory_space<vmem>>, %arg12: memref<2x256xf32, #tpu.memory_space<vmem>>) attributes {dimension_semantics = [#tpu.dimension_semantics<parallel>], iteration_bounds = array<i64: 2>, scalar_prefetch = 0 : i64, scratch_operands = 0 : i64, tpu.core_type = #tpu.core_type<tc>, window_params = [{transform_indices = @transform_0, window_bounds = array<i64: 2, 256>}, {transform_indices = @transform_1, window_bounds = array<i64: 1, 256>}, {pipeline_mode = #tpu.pipeline_mode<synchronous>, transform_indices = @transform_2, window_bounds = array<i64: 64, 1>}, {pipeline_mode = #tpu.pipeline_mode<synchronous>, transform_indices = @transform_3, window_bounds = array<i64: 64, 1>}, {pipeline_mode = #tpu.pipeline_mode<synchronous>, transform_indices = @transform_4, window_bounds = array<i64: 32, 2>}, {pipeline_mode = #tpu.pipeline_mode<synchronous>, transform_indices = @transform_5, window_bounds = array<i64: 32, 64>}, {pipeline_mode = #tpu.pipeline_mode<synchronous>, transform_indices = @transform_6, window_bounds = array<i64: 32, 1>}, {pipeline_mode = #tpu.pipeline_mode<synchronous>, transform_indices = @transform_7, window_bounds = array<i64: 1, 32, 32>}, {pipeline_mode = #tpu.pipeline_mode<synchronous>, transform_indices = @transform_8, window_bounds = array<i64: 1, 32, 1>}, {pipeline_mode = #tpu.pipeline_mode<synchronous>, transform_indices = @transform_9, window_bounds = array<i64: 32, 2>}, {pipeline_mode = #tpu.pipeline_mode<synchronous>, transform_indices = @transform_10, window_bounds = array<i64: 2, 1>}, {transform_indices = @transform_11, window_bounds = array<i64: 2, 256>}]} {
    %c0 = arith.constant 0 : index
    %c0_0 = arith.constant 0 : index
    %0 = vector.load %arg3[%c0, %c0_0] : memref<64x1xf32, #tpu.memory_space<vmem>>, vector<64x1xf32>
    %c0_1 = arith.constant 0 : index
    %c0_2 = arith.constant 0 : index
    %1 = vector.load %arg4[%c0_1, %c0_2] : memref<64x1xf32, #tpu.memory_space<vmem>>, vector<64x1xf32>
    %c0_3 = arith.constant 0 : index
    %c0_4 = arith.constant 0 : index
    %2 = vector.load %arg5[%c0_3, %c0_4] : memref<32x2xf32, #tpu.memory_space<vmem>>, vector<32x1xf32>
    %c0_5 = arith.constant 0 : index
    %c1 = arith.constant 1 : index
    %3 = vector.load %arg5[%c0_5, %c1] : memref<32x2xf32, #tpu.memory_space<vmem>>, vector<32x1xf32>
    %c0_6 = arith.constant 0 : index
    %c0_7 = arith.constant 0 : index
    %4 = vector.load %arg6[%c0_6, %c0_7] : memref<32x64xf32, #tpu.memory_space<vmem>>, vector<32x64xf32>
    %c0_8 = arith.constant 0 : index
    %c0_9 = arith.constant 0 : index
    %5 = vector.load %arg7[%c0_8, %c0_9] : memref<32x1xf32, #tpu.memory_space<vmem>>, vector<32x1xf32>
    %c0_10 = arith.constant 0 : index
    %c0_11 = arith.constant 0 : index
    %c0_12 = arith.constant 0 : index
    %6 = vector.load %arg8[%c0_10, %c0_11, %c0_12] : memref<1x32x32xf32, #tpu.memory_space<vmem>>, vector<1x32x32xf32>
    %7 = vector.shape_cast %6 : vector<1x32x32xf32> to vector<32x32xf32>
    %c0_13 = arith.constant 0 : index
    %c0_14 = arith.constant 0 : index
    %c0_15 = arith.constant 0 : index
    %8 = vector.load %arg9[%c0_13, %c0_14, %c0_15] : memref<1x32x1xf32, #tpu.memory_space<vmem>>, vector<1x32x1xf32>
    %9 = vector.shape_cast %8 : vector<1x32x1xf32> to vector<32x1xf32>
    %c0_16 = arith.constant 0 : index
    %c0_17 = arith.constant 0 : index
    %10 = vector.load %arg10[%c0_16, %c0_17] : memref<32x2xf32, #tpu.memory_space<vmem>>, vector<32x1xf32>
    %c0_18 = arith.constant 0 : index
    %c1_19 = arith.constant 1 : index
    %11 = vector.load %arg10[%c0_18, %c1_19] : memref<32x2xf32, #tpu.memory_space<vmem>>, vector<32x1xf32>
    %c0_20 = arith.constant 0 : index
    %c0_21 = arith.constant 0 : index
    %12 = vector.load %arg11[%c0_20, %c0_21] : memref<2x1xf32, #tpu.memory_space<vmem>>, vector<1x1xf32>
    %c1_22 = arith.constant 1 : index
    %c0_23 = arith.constant 0 : index
    %13 = vector.load %arg11[%c1_22, %c0_23] : memref<2x1xf32, #tpu.memory_space<vmem>>, vector<1x1xf32>
    %c0_i32 = arith.constant 0 : i32
    %c256_i32 = arith.constant 256 : i32
    %14 = arith.muli %c0_i32, %c256_i32 : i32
    %15 = tpu.assume_multiple %14, 256 : i32
    %c0_24 = arith.constant 0 : index
    %16 = arith.index_cast %15 : i32 to index
    %17 = vector.load %arg1[%c0_24, %16] : memref<2x256xf32, #tpu.memory_space<vmem>>, vector<2x256xf32>
    %c0_25 = arith.constant 0 : index
    %18 = arith.index_cast %15 : i32 to index
    %19 = vector.load %arg2[%c0_25, %18] : memref<1x256xf32, #tpu.memory_space<vmem>>, vector<1x256xf32>
    %20 = vector.broadcast %19 : vector<1x256xf32> to vector<64x256xf32>
    %21 = vector.broadcast %0 : vector<64x1xf32> to vector<64x256xf32>
    %22 = arith.mulf %20, %21 : vector<64x256xf32>
    %23 = vector.broadcast %1 : vector<64x1xf32> to vector<64x256xf32>
    %24 = arith.addf %22, %23 : vector<64x256xf32>
    %25 = math.sin %24 : vector<64x256xf32>
    %26 = vector.extract_strided_slice %17 {offsets = [0, 0], sizes = [1, 256], strides = [1, 1]} : vector<2x256xf32> to vector<1x256xf32>
    %27 = vector.broadcast %2 : vector<32x1xf32> to vector<32x256xf32>
    %28 = vector.broadcast %26 : vector<1x256xf32> to vector<32x256xf32>
    %29 = arith.mulf %27, %28 : vector<32x256xf32>
    %30 = vector.extract_strided_slice %17 {offsets = [1, 0], sizes = [1, 256], strides = [1, 1]} : vector<2x256xf32> to vector<1x256xf32>
    %31 = vector.broadcast %3 : vector<32x1xf32> to vector<32x256xf32>
    %32 = vector.broadcast %30 : vector<1x256xf32> to vector<32x256xf32>
    %33 = arith.mulf %31, %32 : vector<32x256xf32>
    %34 = arith.addf %29, %33 : vector<32x256xf32>
    %cst = arith.constant dense<0.000000e+00> : vector<32x256xf32>
    %35 = tpu.matmul %4, %25, %cst {dimension_numbers = #tpu.dot_dimension_numbers<[1], [0], [0], [1], [0, 0, 1, 1], [], []>} : vector<32x64xf32>, vector<64x256xf32>, vector<32x256xf32> -> vector<32x256xf32>
    %36 = arith.addf %34, %35 : vector<32x256xf32>
    %37 = vector.broadcast %5 : vector<32x1xf32> to vector<32x256xf32>
    %38 = arith.addf %36, %37 : vector<32x256xf32>
    %cst_26 = arith.constant 0.000000e+00 : f32
    %39 = vector.broadcast %cst_26 : f32 to vector<32x256xf32>
    %40 = arith.maximumf %38, %39 : vector<32x256xf32>
    %cst_27 = arith.constant dense<0.000000e+00> : vector<32x256xf32>
    %41 = tpu.matmul %7, %40, %cst_27 {dimension_numbers = #tpu.dot_dimension_numbers<[1], [0], [0], [1], [0, 0, 1, 1], [], []>} : vector<32x32xf32>, vector<32x256xf32>, vector<32x256xf32> -> vector<32x256xf32>
    %42 = vector.broadcast %9 : vector<32x1xf32> to vector<32x256xf32>
    %43 = arith.addf %41, %42 : vector<32x256xf32>
    %cst_28 = arith.constant 0.000000e+00 : f32
    %44 = vector.broadcast %cst_28 : f32 to vector<32x256xf32>
    %45 = arith.maximumf %43, %44 : vector<32x256xf32>
    %46 = vector.broadcast %10 : vector<32x1xf32> to vector<32x256xf32>
    %47 = arith.mulf %45, %46 : vector<32x256xf32>
    %cst_29 = arith.constant dense<0.000000e+00> : vector<256xf32>
    %48 = vector.multi_reduction <add>, %47, %cst_29 [0] : vector<32x256xf32> to vector<256xf32>
    %49 = vector.shape_cast %48 : vector<256xf32> to vector<1x256xf32>
    %50 = vector.broadcast %12 : vector<1x1xf32> to vector<1x256xf32>
    %51 = arith.addf %49, %50 : vector<1x256xf32>
    %52 = vector.broadcast %11 : vector<32x1xf32> to vector<32x256xf32>
    %53 = arith.mulf %45, %52 : vector<32x256xf32>
    %cst_30 = arith.constant dense<0.000000e+00> : vector<256xf32>
    %54 = vector.multi_reduction <add>, %53, %cst_30 [0] : vector<32x256xf32> to vector<256xf32>
    %55 = vector.shape_cast %54 : vector<256xf32> to vector<1x256xf32>
    %56 = vector.broadcast %13 : vector<1x1xf32> to vector<1x256xf32>
    %57 = arith.addf %55, %56 : vector<1x256xf32>
    %c0_31 = arith.constant 0 : index
    %58 = arith.index_cast %15 : i32 to index
    %59 = vector.load %arg12[%c0_31, %58] : memref<2x256xf32, #tpu.memory_space<vmem>>, vector<1x256xf32>
    tpu.vector_store %arg12[%c0_31, %58], %51 {strides = array<i32>} : memref<2x256xf32, #tpu.memory_space<vmem>>, vector<1x256xf32>,
    %c1_32 = arith.constant 1 : index
    %60 = arith.index_cast %15 : i32 to index
    %61 = vector.load %arg12[%c1_32, %60] : memref<2x256xf32, #tpu.memory_space<vmem>>, vector<1x256xf32>
    tpu.vector_store %arg12[%c1_32, %60], %57 {strides = array<i32>} : memref<2x256xf32, #tpu.memory_space<vmem>>, vector<1x256xf32>,
    %c1_i32 = arith.constant 1 : i32
    return
  }
  func.func @transform_0(%arg0: i32) -> (i32, i32) {
    %c0_i32 = arith.constant 0 : i32
    %c0_i32_0 = arith.constant 0 : i32
    return %c0_i32, %arg0 : i32, i32
  }
  func.func @transform_1(%arg0: i32) -> (i32, i32) {
    %c0_i32 = arith.constant 0 : i32
    %c0_i32_0 = arith.constant 0 : i32
    return %c0_i32, %arg0 : i32, i32
  }
  func.func @transform_2(%arg0: i32) -> (i32, i32) {
    %c0_i32 = arith.constant 0 : i32
    %c0_i32_0 = arith.constant 0 : i32
    %c0_i32_1 = arith.constant 0 : i32
    return %c0_i32, %c0_i32_0 : i32, i32
  }
  func.func @transform_3(%arg0: i32) -> (i32, i32) {
    %c0_i32 = arith.constant 0 : i32
    %c0_i32_0 = arith.constant 0 : i32
    %c0_i32_1 = arith.constant 0 : i32
    return %c0_i32, %c0_i32_0 : i32, i32
  }
  func.func @transform_4(%arg0: i32) -> (i32, i32) {
    %c0_i32 = arith.constant 0 : i32
    %c0_i32_0 = arith.constant 0 : i32
    %c0_i32_1 = arith.constant 0 : i32
    return %c0_i32, %c0_i32_0 : i32, i32
  }
  func.func @transform_5(%arg0: i32) -> (i32, i32) {
    %c0_i32 = arith.constant 0 : i32
    %c0_i32_0 = arith.constant 0 : i32
    %c0_i32_1 = arith.constant 0 : i32
    return %c0_i32, %c0_i32_0 : i32, i32
  }
  func.func @transform_6(%arg0: i32) -> (i32, i32) {
    %c0_i32 = arith.constant 0 : i32
    %c0_i32_0 = arith.constant 0 : i32
    %c0_i32_1 = arith.constant 0 : i32
    return %c0_i32, %c0_i32_0 : i32, i32
  }
  func.func @transform_7(%arg0: i32) -> (i32, i32, i32) {
    %c0_i32 = arith.constant 0 : i32
    %c0_i32_0 = arith.constant 0 : i32
    %c0_i32_1 = arith.constant 0 : i32
    %c0_i32_2 = arith.constant 0 : i32
    return %c0_i32, %c0_i32_0, %c0_i32_1 : i32, i32, i32
  }
  func.func @transform_8(%arg0: i32) -> (i32, i32, i32) {
    %c0_i32 = arith.constant 0 : i32
    %c0_i32_0 = arith.constant 0 : i32
    %c0_i32_1 = arith.constant 0 : i32
    %c0_i32_2 = arith.constant 0 : i32
    return %c0_i32, %c0_i32_0, %c0_i32_1 : i32, i32, i32
  }
  func.func @transform_9(%arg0: i32) -> (i32, i32) {
    %c0_i32 = arith.constant 0 : i32
    %c0_i32_0 = arith.constant 0 : i32
    %c0_i32_1 = arith.constant 0 : i32
    return %c0_i32, %c0_i32_0 : i32, i32
  }
  func.func @transform_10(%arg0: i32) -> (i32, i32) {
    %c0_i32 = arith.constant 0 : i32
    %c0_i32_0 = arith.constant 0 : i32
    %c0_i32_1 = arith.constant 0 : i32
    return %c0_i32, %c0_i32_0 : i32, i32
  }
  func.func @transform_11(%arg0: i32) -> (i32, i32) {
    %c0_i32 = arith.constant 0 : i32
    %c0_i32_0 = arith.constant 0 : i32
    return %c0_i32, %arg0 : i32, i32
  }
}

</mosaic_0001>

<bundles_post_ra>
// kernel: mlp2d_forward.1
= control target key start
LH: loop header
LB: loop body
LE: loop exit
PB: predicated region body
PF: predicated region fallthrough
CT: control target
= control target key end

     0   :  { %s3707_s17 = smov 0   ;;  %s6258_s0 = inlined_call_operand.vmem [shape: f32[2,512], index: 0, kind: input, shape index: {}]   ;;  %s6259_s1 = inlined_call_operand.vmem [shape: f32[1,512], index: 1, kind: input, shape index: {}]   ;;  %s6260_s2 = inlined_call_operand.vmem [shape: f32[64,1], index: 2, kind: input, shape index: {}]   ;;  %s6261_s3 = inlined_call_operand.vmem [shape: f32[64,1], index: 3, kind: input, shape index: {}]   ;;  %s6262_s4 = inlined_call_operand.vmem [shape: f32[32,2], index: 4, kind: input, shape index: {}]   ;;  %s6263_s5 = inlined_call_operand.vmem [shape: f32[32,64], index: 5, kind: input, shape index: {}]   ;;  %s6264_s6 = inlined_call_operand.vmem [shape: f32[32,1], index: 6, kind: input, shape index: {}]   ;;  %s6265_s7 = inlined_call_operand.vmem [shape: f32[1,32,32], index: 7, kind: input, shape index: {}]   ;;  %s6266_s8 = inlined_call_operand.vmem [shape: f32[1,32,1], index: 8, kind: input, shape index: {}]   ;;  %s6267_s9 = inlined_call_operand.vmem [shape: f32[32,2], index: 9, kind: input, shape index: {}]   ;;  %s6268_s10 = inlined_call_operand.vmem [shape: f32[2,1], index: 10, kind: input, shape index: {}]   ;;  %s6269_s11 = inlined_call_operand.vmem [shape: f32[2,512], index: 11, kind: output, shape index: {}]  }
   0x1 LB: > { %s3522_s18 = sadd.s32 4294967295, %s3637_s17   ;;  %p3526_p0 = scmp.ge.s32.totalorder %s3637_s17, 1  ;;  %s3637_s17 = sphi %s3707_s17, %s21_s17  }
   0x2   : > { %p348_p1 = scmp.lt.s32.totalorder %s3637_s17, 3 }
   0x4   : > { %p349_p2 = pnand %p3526_p0, %p348_p1 }
   0x6   : > { %352 = sbr.rel (%p349_p2) target bundleno = 1118 (0x45e), region = 64 }
   0xb   : > { %v424_v0 = vld [vmem:[%s6261_s3 + $0x38] sm:$0xff]  ;;  %v423_v1 = vld [vmem:[%s6261_s3 + $0x30] sm:$0xff]  ;;  %v6285_v3 = vmov 0   ;;  %v414_v4 = vld [vmem:[%s6260_s2 + $0x28] sm:$0xff]  ;;  %v6270_v18 = vmov 1   ;;  %s3527_s19 = sshll.u32 %s3522_s18, 1 }
   0xc   : > { %v416_v2 = vld [vmem:[%s6260_s2 + $0x38] sm:$0xff]  ;;  %3617 = vset.pattern.permute.xlu2 %v6285_v3  ;;  %3616 = vset.pattern.permute.xlu1 %v6285_v3  ;;  %v415_v5 = vld [vmem:[%s6260_s2 + $0x30] sm:$0xff]  ;;  %v413_v6 = vld [vmem:[%s6260_s2 + $0x20] sm:$0xff]  ;;  %p393_p3 = scmp.lt.s32.totalorder %s3527_s19, 3 }
   0xd   : > { %3615 = vset.pattern.permute.xlu0 %v6285_v3  ;;  %551 = vperm.xlu1 %3616, %v424_v0   ;;  %v412_v7 = vld [vmem:[%s6260_s2 + $0x18] sm:$0xff]  ;;  %v422_v8 = vld [vmem:[%s6261_s3 + $0x28] sm:$0xff]  ;;  %v421_v9 = vld [vmem:[%s6261_s3 + $0x20] sm:$0xff] }
   0xe   : > { %546 = vperm.xlu2 %3617, %v423_v1   ;;  %495 = vperm.xlu0 %3615, %v416_v2   ;;  %v420_v10 = vld [vmem:[%s6261_s3 + $0x18] sm:$0xff]  ;;  %v411_v11 = vld [vmem:[%s6260_s2 + $0x10] sm:$0xff]  ;;  %v410_v12 = vld [vmem:[%s6260_s2 + $0x8] sm:$0xff]  ;;  %s6401_s19 = smov (!%p393_p3, %s3527_s19), 3 }
   0xf   : > { %v409_v13 = vld [vmem:[%s6260_s2] sm:$0xff]  ;;  %v419_v14 = vld [vmem:[%s6261_s3 + $0x10] sm:$0xff]  ;;  %v418_v15 = vld [vmem:[%s6261_s3 + $0x8] sm:$0xff]  ;;  %s401_s22 = scalar_lea.vmem %s6259_s1, %s6401_s19  ;;  %s3528_s30 = sshll.u32 %s6401_s19, 1 }
  0x10   : > { %v428_v16 = vld [vmem:[%s6262_s4 + $0x18] sm:$0xff]  ;;  %v417_v17 = vld [vmem:[%s6261_s3] sm:$0xff]  ;;  %s396_s14 = scalar_lea.vmem %s6258_s0, %s3528_s30  ;;  %s407_s29 = scalar_lea.vmem %s6269_s11, %s3528_s30 }
  0x11   : > { %v452_v21 = vld [vmem:[%s401_s22] sm:$0x3] }
  0x12   : > { %v3781_v23 = vperm.slane %v452_v21, 0  ;;  %v3783_v24 = vperm.slane %v452_v21, 1 }
  0x14   : > { %6317 = vst [vmem:[#allocation2_spill] sm:$0xff] %v3781_v23 }
  0x15   : > { %485 = vperm.xlu1 %3616, %v414_v4  }
  0x16   : > { %490 = vperm.xlu0 %3615, %v415_v5   ;;  %480 = vperm.xlu2 %3617, %v413_v6  }
  0x1d   : > { %475 = vperm.xlu1 %3616, %v412_v7  }
  0x1e   : > { %541 = vperm.xlu0 %3615, %v422_v8   ;;  %536 = vperm.xlu2 %3617, %v421_v9  }
  0x25   : > { %531 = vperm.xlu1 %3616, %v420_v10  }
  0x26   : > { %470 = vperm.xlu0 %3615, %v411_v11   ;;  %465 = vperm.xlu2 %3617, %v410_v12  }
  0x2d   : > { %460 = vperm.xlu1 %3616, %v409_v13  }
  0x2e   : > { %526 = vperm.xlu0 %3615, %v419_v14   ;;  %521 = vperm.xlu2 %3617, %v418_v15  }
  0x35   : > { %3067 = vperm.xlu1 %3616, %v428_v16  }
  0x36   : > { %516 = vperm.xlu0 %3615, %v417_v17   ;;  %3618 = vset.pattern.permute.xlu2 %v6270_v18 }
  0x37   : > { %3098 = vperm.xlu2 %3618, %v428_v16  }
  0x3d   : > { %3619 = vset.pattern.permute.xlu1 %v6270_v18 }
  0x3e   : > { %3621 = vset.pattern.permute.xlu0 %v6270_v18 }
  0x3f   : > { %3620 = vset.pattern.permute.xlu2 %v6285_v3 }
  0x68   : > { %v547_v19 = vpop.permute.xlu2 %546 }
  0x70   : > { %v481_v20 = vpop.permute.xlu2 %480 }
  0x71   : > { %v506_v27 = vmul.f32 %v481_v20, %v3781_v23  ;;  %v507_v28 = vmul.f32 %v481_v20, %v3783_v24 }
  0x78   : > { %v537_v22 = vpop.permute.xlu2 %536 }
  0x79   : > { %v3791_v32 = vadd.f32 %v537_v22, %v506_v27  ;;  %v3793_v33 = vadd.f32 %v537_v22, %v507_v28 }
  0x7b   : > { %6318 = vst [vmem:[#allocation3_spill] sm:$0xff] %v3791_v32  ;;  %v1813_v37 = vand.u32 2139095040, %v3791_v32  ;;  %v1968_v38 = vand.u32 2139095040, %v3793_v33 }
  0x7c   : > { %6319 = vst [vmem:[#allocation4_spill] sm:$0xff] %v3793_v33 }
  0x7d   : > { %v1814_v43 = vshrl.u32 %v1813_v37, 23  ;;  %v1969_v44 = vshrl.u32 %v1968_v38, 23 }
  0x7f   : > { %v552_v30 = vpop.permute.xlu1 %551  ;;  %v3556_v52 = vadd.s32 4294967169, %v1814_v43  ;;  %v3559_v53 = vadd.s32 4294967169, %v1969_v44 }
  0x80   : > { %v496_v25 = vpop.permute.xlu0 %495  ;;  %v466_v34 = vpop.permute.xlu2 %465 }
  0x81   : > { %v512_v26 = vmul.f32 %v496_v25, %v3781_v23  ;;  %v513_v29 = vmul.f32 %v496_v25, %v3783_v24  ;;  %v500_v47 = vmul.f32 %v466_v34, %v3781_v23  ;;  %v501_v48 = vmul.f32 %v466_v34, %v3783_v24 }
  0x82   : > { %v1820_v60 = vadd.s32 1, %v3556_v52  ;;  %v1975_v61 = vadd.s32 1, %v3559_v53  ;;  %v6279_v52 = vmov 2131351028  }
  0x83   : > { %v3789_v31 = vadd.f32 %v552_v30, %v512_v26  ;;  %v3795_v35 = vadd.f32 %v552_v30, %v513_v29 }
  0x84   : > { %vm1821_vm1 = vcmp.gt.s32.totalorder %v1820_v60, 0  ;;  %vm1976_vm2 = vcmp.gt.s32.totalorder %v1975_v61, 0 }
  0x85   : > { %v2743_v36 = vand.u32 2139095040, %v3789_v31  ;;  %v2898_v40 = vand.u32 2139095040, %v3795_v35  ;;  %v1822_v9 = vsel %vm1821_vm1, %v1820_v60, 0  ;;  %v1977_v10 = vsel %vm1976_vm2, %v1975_v61, 0 }
  0x86   : > { %v3821_v20 = vand.u32 31, %v1977_v10  ;;  %v3831_v30 = vshrl.u32 %v1822_v9, 5  ;;  %v6275_v61 = vmov 920167782  }
  0x87   : > { %v2744_v41 = vshrl.u32 %v2743_v36, 23  ;;  %v2899_v46 = vshrl.u32 %v2898_v40, 23  ;;  %v486_v4 = vpop.permute.xlu1 %485  ;;  %v3839_v40 = vshrl.u32 %v1977_v10, 5 }
  0x88   : > { %v491_v39 = vpop.permute.xlu0 %490  ;;  %v522_v49 = vpop.permute.xlu2 %521  ;;  %6323 = vst [vmem:[#allocation8_spill] sm:$0xff] %v3821_v20  ;;  %v508_v21 = vmul.f32 %v486_v4, %v3781_v23  ;;  %v509_v22 = vmul.f32 %v486_v4, %v3783_v24 }
  0x89   : > { %v510_v42 = vmul.f32 %v491_v39, %v3781_v23  ;;  %v511_v45 = vmul.f32 %v491_v39, %v3783_v24  ;;  %v3574_v50 = vadd.s32 4294967169, %v2744_v41  ;;  %v3577_v55 = vadd.s32 4294967169, %v2899_v46  ;;  %6325 = vst [vmem:[#allocation10_spill] sm:$0xff] %v3831_v30 }
  0x8a   : > { %v3809_v56 = vadd.f32 %v522_v49, %v500_v47  ;;  %v3811_v57 = vadd.f32 %v522_v49, %v501_v48  ;;  %6327 = vst [vmem:[#allocation12_spill] sm:$0xff] %v3839_v40  ;;  %v3842_v41 = vsub.s32 32, %v3821_v20  ;;  %v6281_v49 = vmov 2475754826  }
  0x8b   : > { %v3805_v51 = vadd.f32 %v547_v19, %v510_v42  ;;  %v3807_v54 = vadd.f32 %v547_v19, %v511_v45  ;;  %v2750_v58 = vadd.s32 1, %v3574_v50  ;;  %v2905_v63 = vadd.s32 1, %v3577_v55 }
  0x8c   : > { %6320 = vst [vmem:[#allocation5_spill] sm:$0xff] %v3809_v56  ;;  %v883_v0 = vand.u32 2139095040, %v3809_v56  ;;  %v1038_v1 = vand.u32 2139095040, %v3811_v57  ;;  %v3819_v19 = vand.u32 31, %v1822_v9  ;;  %v6272_v42 = vand.u32 2147483647, %v3789_v31 }
  0x8d   : > { %6321 = vst [vmem:[#allocation6_spill] sm:$0xff] %v3811_v57  ;;  %v2433_v59 = vand.u32 2139095040, %v3805_v51  ;;  %v2588_v62 = vand.u32 2139095040, %v3807_v54  ;;  %vm2751_vm0 = vcmp.gt.s32.totalorder %v2750_v58, 0  ;;  %vm2906_vm3 = vcmp.gt.s32.totalorder %v2905_v63, 0 }
  0x8e   : > { %v884_v6 = vshrl.u32 %v883_v0, 23  ;;  %v1039_v7 = vshrl.u32 %v1038_v1, 23  ;;  %v2752_v8 = vsel %vm2751_vm0, %v2750_v58, 0  ;;  %v2907_v12 = vsel %vm2906_vm3, %v2905_v63, 0  ;;  %6322 = vst [vmem:[#allocation7_spill] sm:$0xff] %v3819_v19 }
  0x8f   : > { %v2434_v2 = vshrl.u32 %v2433_v59, 23  ;;  %v2589_v5 = vshrl.u32 %v2588_v62, 23  ;;  %v3817_v14 = vand.u32 31, %v2752_v8  ;;  %v3825_v25 = vand.u32 31, %v2907_v12  ;;  %v476_v38 = vpop.permute.xlu1 %475  ;;  %6328 = vst [vmem:[#allocation13_spill] sm:$0xff] %v3842_v41 }
  0x90   : > { %v3538_v15 = vadd.s32 4294967169, %v884_v6  ;;  %v3541_v16 = vadd.s32 4294967169, %v1039_v7  ;;  %v542_v17 = vpop.permute.xlu0 %541  ;;  %v3837_v39 = vsub.s32 32, %v3819_v19  ;;  %v3845_v43 = vshrl.u32 %v2752_v8, 5 }
  0x91   : > { %v3568_v11 = vadd.s32 4294967169, %v2434_v2  ;;  %v3571_v13 = vadd.s32 4294967169, %v2589_v5  ;;  %v3827_v28 = vadd.f32 %v542_v17, %v508_v21  ;;  %v3829_v29 = vadd.f32 %v542_v17, %v509_v22 }
  0x92   : > { %v3834_v34 = vsub.s32 32, %v3817_v14  ;;  %v890_v36 = vadd.s32 1, %v3538_v15  ;;  %v1045_v37 = vadd.s32 1, %v3541_v16  ;;  %6326 = vst [vmem:[#allocation11_spill] sm:$0xff] %v3837_v39  ;;  %v3847_v44 = vshrl.u32 %v2907_v12, 5 }
  0x93   : > { %v2440_v26 = vadd.s32 1, %v3568_v11  ;;  %v2595_v27 = vadd.s32 1, %v3571_v13  ;;  %6324 = vst [vmem:[#allocation9_spill] sm:$0xff] %v3829_v29  ;;  %v3850_v45 = vsub.s32 32, %v3825_v25  ;;  %v2123_v46 = vand.u32 2139095040, %v3827_v28 }
  0x94   : > { %v2278_v47 = vand.u32 2139095040, %v3829_v29  ;;  %v504_v48 = vmul.f32 %v476_v38, %v3781_v23  ;;  %vm891_vm6 = vcmp.gt.s32.totalorder %v890_v36, 0  ;;  %vm1046_vm7 = vcmp.gt.s32.totalorder %v1045_v37, 0 }
  0x95   : > { %vm2441_vm4 = vcmp.gt.s32.totalorder %v2440_v26, 0  ;;  %vm2596_vm5 = vcmp.gt.s32.totalorder %v2595_v27, 0  ;;  %v2758_v50 = vshrl.u32 %v6281_v49, %v3834_v34  ;;  %v2761_v53 = vshrl.u32 %v6279_v52, %v3834_v34 }
  0x96   : > { %v2442_v55 = vsel %vm2441_vm4, %v2440_v26, 0  ;;  %v505_v58 = vmul.f32 %v476_v38, %v3783_v24  ;;  %v6277_v59 = vmov 2102212464   ;;  %v2767_v62 = vshrl.u32 %v6275_v61, %v3834_v34 }
  0x97   : > { %v2764_v60 = vshrl.u32 %v6277_v59, %v3834_v34  ;;  %v2597_v63 = vsel %vm2596_vm5, %v2595_v27, 0  ;;  %v6283_v0 = vmov 683565275   ;;  %v2760_v2 = vshll.u32 %v6281_v49, %v3817_v14 }
  0x98   : > { %v2757_v1 = vshll.u32 %v6283_v0, %v3817_v14  ;;  %v2766_v4 = vshll.u32 %v6277_v59, %v3817_v14  ;;  %v892_v5 = vsel %vm891_vm6, %v890_v36, 0  ;;  %v1047_v6 = vsel %vm1046_vm7, %v1045_v37, 0 }
  0x99   : > { %v2747_v7 = vand.u32 8388607, %v6272_v42  ;;  %v2763_v8 = vshll.u32 %v6279_v52, %v3817_v14  ;;  %v2762_v10 = vor.u32 %v2761_v53, %v2760_v2  ;;  %v6273_v12 = vmov 1326507024  }
  0x9a   : > { %v2759_v9 = vor.u32 %v2758_v50, %v2757_v1  ;;  %v2768_v11 = vor.u32 %v2767_v62, %v2766_v4  ;;  %v2770_v13 = vshrl.u32 %v6273_v12, %v3834_v34  ;;  %v3879_v15 = vshrl.u32 %v2442_v55, 5  ;;  %v532_v50 = vpop.permute.xlu1 %531 }
  0x9b   : > { %v3881_v16 = vand.u32 31, %v2442_v55  ;;  %v3883_v17 = vshrl.u32 %v2597_v63, 5  ;;  %v2765_v21 = vor.u32 %v2764_v60, %v2763_v8  ;;  %v3885_v22 = vand.u32 31, %v2597_v63 }
  0x9c   : > { %v3887_v26 = vshrl.u32 %v892_v5, 5  ;;  %v3889_v27 = vand.u32 31, %v892_v5  ;;  %v2769_v36 = vshll.u32 %v6275_v61, %v3817_v14  ;;  %v3893_v37 = vshrl.u32 %v1047_v6, 5 }
  0x9d   : > { %v2748_v38 = vor.u32 8388608, %v2747_v7  ;;  %vm2772_vm8 = vcmp.lt.s32.totalorder %v3845_v43, 1  ;;  %vm2775_vm9 = vcmp.lt.s32.totalorder %v3845_v43, 4  ;;  %vm2774_vm10 = vcmp.lt.s32.totalorder %v3845_v43, 3 }
  0x9e   : > { %6329 = vst [vmem:[#allocation14_spill] sm:$0xff] %v3887_v26  ;;  %v2771_v53 = vor.u32 %v2770_v13, %v2769_v36  ;;  %v2780_v55 = vsel %vm2772_vm8, %v2759_v9, %v2762_v10  ;;  %v2781_v60 = vsel %vm2775_vm9, %v2768_v11, 920167782  ;;  %v3902_v62 = vand.u32 31, %v1047_v6 }
  0x9f   : > { %6330 = vst [vmem:[#allocation15_spill] sm:$0xff] %v3889_v27  ;;  %v2124_v14 = vshrl.u32 %v2123_v46, 23  ;;  %vm2773_vm11 = vcmp.lt.s32.totalorder %v3845_v43, 2  ;;  %v2782_v63 = vsel %vm2774_vm10, %v2765_v21, %v2781_v60  ;;  %v3908_v1 = vsub.s32 32, %v3881_v16 }
  0xa0   : > { %6331 = vst [vmem:[#allocation16_spill] sm:$0xff] %v3893_v37  ;;  %v3911_v2 = vsub.s32 32, %v3885_v22  ;;  %v2279_v4 = vshrl.u32 %v2278_v47, 23  ;;  %v2783_v5 = vsel %vm2773_vm11, %v2780_v55, %v2782_v63  ;;  %v3915_v7 = vadd.f32 %v532_v50, %v504_v48  ;;  %v3930_v63 = vpop.permute.xlu0 %470 }
  0xa1   : > { %6332 = vst [vmem:[#allocation17_spill] sm:$0xff] %v3902_v62  ;;  %v2756_v46 = vshrl.u32 %v6283_v0, %v3834_v34  ;;  %v2777_v6 = vsel %vm2775_vm9, %v2765_v21, 2102212464  ;;  %v2784_v8 = vsel %vm2772_vm8, %v2762_v10, %v2765_v21  ;;  %v2785_v13 = vsel %vm2775_vm9, %v2771_v53, 1326507024 }
  0xa2   : > { %6333 = vst [vmem:[#allocation18_spill] sm:$0xff] %v3915_v7  ;;  %v3925_v36 = vshll.u32 %v2748_v38, 8  ;;  %v2813_v47 = vand.u32 65535, %v2783_v5  ;;  %v2814_v60 = vshrl.u32 %v2783_v5, 16  ;;  %v3928_v55 = vsub.s32 32, %v3889_v27 }
  0xa3   : > { %v3562_v48 = vadd.s32 4294967169, %v2124_v14  ;;  %v2776_v34 = vsel %vm2772_vm8, %v2756_v46, %v2759_v9  ;;  %v2786_v18 = vsel %vm2774_vm10, %v2768_v11, %v2785_v13  ;;  %v2778_v21 = vsel %vm2774_vm10, %v2762_v10, %v2777_v6 }
  0xa4   : > { %6334 = vst [vmem:[#allocation19_spill] sm:$0xff] %v3928_v55  ;;  %v2787_v38 = vsel %vm2773_vm11, %v2784_v8, %v2786_v18  ;;  %v2789_v53 = vand.u32 65535, %v3925_v36  ;;  %v2790_v5 = vshrl.u32 %v3925_v36, 16  ;;  %v3565_v42 = vadd.s32 4294967169, %v2279_v4 }
  0xa5   : > { %v3942_v14 = vadd.f32 %v532_v50, %v505_v58  ;;  %v2791_v12 = vand.u32 65535, %v2787_v38  ;;  %v2792_v61 = vshrl.u32 %v2787_v38, 16  ;;  %v3947_v11 = vmul.f32 %v3930_v63, %v3781_v23 }
  0xa6   : > { %v2816_v46 = vmul.u32 %v2814_v60, %v2789_v53  ;;  %v2817_v10 = vmul.u32 %v2813_v47, %v2790_v5  ;;  %v3949_v6 = vadd.s32 1, %v3562_v48  ;;  %v3953_v18 = vsel %vm2773_vm11, %v2776_v34, %v2778_v21 }
  0xa7   : > { %6335 = vst [vmem:[#allocation20_spill] sm:$0xff] %v3942_v14  ;;  %v2794_v8 = vmul.u32 %v2792_v61, %v2789_v53  ;;  %v2795_v4 = vmul.u32 %v2791_v12, %v2790_v5  ;;  %v2815_v58 = vmul.u32 %v2813_v47, %v2789_v53  ;;  %v2818_v50 = vmul.u32 %v2814_v60, %v2790_v5 }
  0xa8   : > { %v2819_v13 = vshll.u32 %v2816_v46, 16  ;;  %v2793_v9 = vmul.u32 %v2791_v12, %v2789_v53  ;;  %v2796_v59 = vmul.u32 %v2792_v61, %v2790_v5  ;;  %v2820_v49 = vshrl.u32 %v2816_v46, 16 }
  0xa9   : > { %v2797_v52 = vshll.u32 %v2794_v8, 16  ;;  %v2821_v0 = vshll.u32 %v2817_v10, 16  ;;  %v2822_v3 = vshrl.u32 %v2817_v10, 16  ;;  %v2799_v37 = vshll.u32 %v2795_v4, 16 }
  0xaa   : > { %vm2823_vm12 = vc.u32 %v2815_v58, %v2819_v13  ;;  %v2825_v48 = vadd.s32 %v2819_v13, %v2815_v58  ;;  %v6336_v34 = vmov 0   ;;  %v2798_v57 = vshrl.u32 %v2794_v8, 16 }
  0xab   : > { %vm2801_vm13 = vc.u32 %v2793_v9, %v2797_v52  ;;  %v2803_v43 = vadd.s32 %v2797_v52, %v2793_v9  ;;  %v2824_v21 = vsel %vm2823_vm12, 1, %v6336_v34  ;;  %v2800_v62 = vshrl.u32 %v2795_v4, 16 }
  0xac   : > { %v2802_v47 = vsel %vm2801_vm13, 1, %v6336_v34  ;;  %v2826_v60 = vadd.s32 %v2824_v21, %v2818_v50  ;;  %vm2827_vm14 = vc.u32 %v2825_v48, %v2821_v0  ;;  %v6337_v5 = vmov 683565275  }
  0xad   : > { %v2804_v38 = vadd.s32 %v2802_v47, %v2796_v59  ;;  %vm2805_vm15 = vc.u32 %v2803_v43, %v2799_v37  ;;  %v2828_v61 = vsel %vm2827_vm14, 1, %v6336_v34  ;;  %v2912_v46 = vshll.u32 %v6337_v5, %v3825_v25 }
  0xae   : > { %v2806_v12 = vsel %vm2805_vm15, 1, %v6336_v34  ;;  %v2830_v53 = vadd.s32 %v2828_v61, %v2826_v60  ;;  %v6338_v52 = vmov 2475754826   ;;  %v6339_v8 = vand.u32 2147483647, %v3795_v35 }
  0xaf   : > { %v2913_v9 = vshrl.u32 %v6338_v52, %v3850_v45  ;;  %v2808_v10 = vadd.s32 %v2806_v12, %v2804_v38  ;;  %v2915_v4 = vshll.u32 %v6338_v52, %v3825_v25  ;;  %v6340_v59 = vmov 2131351028  }
  0xb0   : > { %v2902_v58 = vand.u32 8388607, %v6339_v8  ;;  %v2916_v37 = vshrl.u32 %v6340_v59, %v3850_v45  ;;  %v2831_v50 = vadd.s32 %v2830_v53, %v2820_v49  ;;  %v2918_v43 = vshll.u32 %v6340_v59, %v3825_v25 }
  0xb1   : > { %v2914_v13 = vor.u32 %v2913_v9, %v2912_v46  ;;  %v6341_v21 = vmov 2102212464   ;;  %v2809_v60 = vadd.s32 %v2808_v10, %v2798_v57  ;;  %v6342_v12 = vmov 920167782  }
  0xb2   : > { %v2919_v47 = vshrl.u32 %v6341_v21, %v3850_v45  ;;  %v2917_v61 = vor.u32 %v2916_v37, %v2915_v4  ;;  %v2921_v38 = vshll.u32 %v6341_v21, %v3825_v25  ;;  %v2922_v8 = vshrl.u32 %v6342_v12, %v3850_v45 }
  0xb3   : > { %v2832_v26 = vadd.s32 %v2831_v50, %v2822_v3  ;;  %v2924_v49 = vshll.u32 %v6342_v12, %v3825_v25  ;;  %v6343_v53 = vmov 1326507024   ;;  %v2285_v9 = vadd.s32 1, %v3565_v42 }
  0xb4   : > { %v2920_v27 = vor.u32 %v2919_v47, %v2918_v43  ;;  %v2925_v46 = vshrl.u32 %v6343_v53, %v3850_v45  ;;  %v3982_v55 = vadd.s32 %v2809_v60, %v2800_v62  ;;  %v3984_v56 = vadd.s32 %v2825_v48, %v2821_v0 }
  0xb5   : > { %v2923_v57 = vor.u32 %v2922_v8, %v2921_v38  ;;  %v2836_v10 = vadd.s32 1, %v2832_v26  ;;  %v2903_v4 = vor.u32 8388608, %v2902_v58  ;;  %vm2927_vm0 = vcmp.lt.s32.totalorder %v3847_v44, 1 }
  0xb6   : > { %v2926_v37 = vor.u32 %v2925_v46, %v2924_v49  ;;  %v2833_v3 = vmul.u32 %v3925_v36, %v3953_v18  ;;  %vm2835_vm1 = vc.u32 %v3982_v55, %v3984_v56  ;;  %vm2930_vm2 = vcmp.lt.s32.totalorder %v3847_v44, 4 }
  0xb7   : > { %v2935_v25 = vsel %vm2927_vm0, %v2914_v13, %v2917_v61  ;;  %v2837_v42 = vsel %vm2835_vm1, %v2836_v10, %v2832_v26  ;;  %vm2929_vm3 = vcmp.lt.s32.totalorder %v3847_v44, 3  ;;  %v2936_v0 = vsel %vm2930_vm2, %v2923_v57, 920167782 }
  0xb8   : > { %v2939_v62 = vsel %vm2927_vm0, %v2917_v61, %v2920_v27  ;;  %v2838_v48 = vadd.s32 %v2837_v42, %v2833_v3  ;;  %vm2928_vm4 = vcmp.lt.s32.totalorder %v3847_v44, 2  ;;  %v2937_v36 = vsel %vm2929_vm3, %v2920_v27, %v2936_v0 }
  0xb9   : > { %v2940_v18 = vsel %vm2930_vm2, %v2926_v37, 1326507024  ;;  %v1658_v58 = vand.u32 2139095040, %v3942_v14  ;;  %v2938_v26 = vsel %vm2928_vm4, %v2935_v25, %v2937_v36  ;;  %v4009_v43 = vshll.u32 %v2903_v4, 8 }
  0xba   : > { %v2941_v50 = vsel %vm2929_vm3, %v2923_v57, %v2940_v18  ;;  %vm2131_vm5 = vcmp.gt.s32.totalorder %v3949_v6, 0  ;;  %v2839_v47 = vadd.s32 536870912, %v2838_v48  ;;  %v2969_v38 = vshrl.u32 %v2938_v26, 16 }
  0xbb   : > { %v2942_v60 = vsel %vm2928_vm4, %v2939_v62, %v2941_v50  ;;  %v2944_v8 = vand.u32 65535, %v4009_v43  ;;  %v2945_v49 = vshrl.u32 %v4009_v43, 16  ;;  %vm2286_vm6 = vcmp.gt.s32.totalorder %v2285_v9, 0 }
  0xbc   : > { %v2946_v46 = vand.u32 65535, %v2942_v60  ;;  %v2947_v10 = vshrl.u32 %v2942_v60, 16  ;;  %v6344_v37 = vand.u32 2139095040, %v3915_v7  ;;  %v2840_v57 = vshrl.u32 %v2839_v47, 30 }
  0xbd   : > { %v2968_v4 = vand.u32 65535, %v2938_v26  ;;  %vm2742_vm7 = vcmp.lt.s32.totalorder %v3789_v31, 0  ;;  %v2911_v25 = vshrl.u32 %v6337_v5, %v3850_v45  ;;  %v2932_v42 = vsel %vm2930_vm2, %v2920_v27, 2102212464 }
  0xbe   : > { %v1504_v3 = vshrl.u32 %v6344_v37, 23  ;;  %v2949_v0 = vmul.u32 %v2947_v10, %v2944_v8  ;;  %v2950_v62 = vmul.u32 %v2946_v46, %v2945_v49  ;;  %v4026_v36 = vsel %vm2131_vm5, %v3949_v6, 0 }
  0xbf   : > { %v4028_v18 = vshrl.u32 %v1658_v58, 23  ;;  %v2841_v50 = vshll.u32 %v2840_v57, 30  ;;  %v2971_v47 = vmul.u32 %v2969_v38, %v2944_v8  ;;  %v4030_v26 = vsel %vm2286_vm6, %v2285_v9, 0 }
  0xc0   : > { %v2931_v60 = vsel %vm2927_vm0, %v2911_v25, %v2914_v13  ;;  %v2948_v45 = vmul.u32 %v2946_v46, %v2944_v8  ;;  %v2952_v37 = vshll.u32 %v2949_v0, 16  ;;  %v2933_v27 = vsel %vm2929_vm3, %v2917_v61, %v2932_v42 }
  0xc1   : > { %v2842_v14 = vsub.s32 %v2838_v48, %v2841_v50  ;;  %v2951_v7 = vmul.u32 %v2947_v10, %v2945_v49  ;;  %v2972_v40 = vmul.u32 %v2968_v4, %v2945_v49  ;;  %v6345_v6 = vand.u32 2147483647, %v3789_v31 }
  0xc2   : > { %v2954_v41 = vshll.u32 %v2950_v62, 16  ;;  %vm2956_vm9 = vc.u32 %v2948_v45, %v2952_v37  ;;  %v2958_v9 = vadd.s32 %v2952_v37, %v2948_v45  ;;  %v2974_v20 = vshll.u32 %v2971_v47, 16 }
  0xc3   : > { %vm4038_vm8 = vcmp.le.f32.partialorder %v6345_v6, 0.7853982  ;;  %vm2843_vm10 = vcmp.lt.s32.totalorder %v2842_v14, 0  ;;  %v2844_v13 = vsub.s32 0, %v2842_v14  ;;  %v2864_v46 = vsub.s32 4, %v2840_v57 }
  0xc4   : > { %v2957_v48 = vsel %vm2956_vm9, 1, %v6336_v34  ;;  %v2953_v25 = vshrl.u32 %v2949_v0, 16  ;;  %vm2960_vm11 = vc.u32 %v2958_v9, %v2954_v41  ;;  %v2970_v61 = vmul.u32 %v2968_v4, %v2944_v8 }
  0xc5   : > { %v2959_v50 = vadd.s32 %v2957_v48, %v2951_v7  ;;  %v2845_v10 = vsel %vm2843_vm10, %v2844_v13, %v2842_v14  ;;  %v2961_v42 = vsel %vm2960_vm11, 1, %v6336_v34  ;;  %v2973_v6 = vmul.u32 %v2969_v38, %v2945_v49 }
  0xc6   : > { %v2976_v33 = vshll.u32 %v2972_v40, 16  ;;  %v2846_v30 = vclz %v2845_v10  ;;  %vm2978_vm12 = vc.u32 %v2970_v61, %v2974_v20  ;;  %v2980_v19 = vadd.s32 %v2974_v20, %v2970_v61 }
  0xc7   : > { %v2963_v39 = vadd.s32 %v2961_v42, %v2959_v50  ;;  %v2865_v45 = vsel %vm2742_vm7, %v2864_v46, %v2840_v57  ;;  %v2934_v37 = vsel %vm2928_vm4, %v2931_v60, %v2933_v27  ;;  %v2955_v32 = vshrl.u32 %v2950_v62, 16 }
  0xc8   : > { %v2979_v7 = vsel %vm2978_vm12, 1, %v6336_v34  ;;  %v3575_v41 = vadd.s32 4294967294, %v2846_v30  ;;  %vm2982_vm13 = vc.u32 %v2980_v19, %v2976_v33  ;;  %v4049_v0 = vadd.s32 4294967169, %v1504_v3 }
  0xc9   : > { %v2964_v8 = vadd.s32 %v2963_v39, %v2953_v25  ;;  %v2981_v4 = vadd.s32 %v2979_v7, %v2973_v6  ;;  %v2834_v38 = vadd.s32 %v3984_v56, %v3982_v55  ;;  %v2983_v20 = vsel %vm2982_vm13, 1, %v6336_v34 }
  0xca   : > { %v6313_v49 = vand.u32 2147483647, %v3805_v51  ;;  %vm3576_vm14 = vcmp.lt.s32.totalorder %v3575_v41, 0  ;;  %v2975_v44 = vshrl.u32 %v2971_v47, 16  ;;  %v2867_v30 = vsel %vm4038_vm8, 0, %v2865_v45 }
  0xcb   : > { %v4055_v57 = vadd.s32 %v2964_v8, %v2955_v32  ;;  %v2985_v62 = vadd.s32 %v2983_v20, %v2981_v4  ;;  %v2849_v60 = vsel %vm3576_vm14, 0, %v3575_v41  ;;  %v4059_v39 = vadd.s32 %v2980_v19, %v2976_v33 }
  0xcc   : > { %v2988_v3 = vmul.u32 %v4009_v43, %v2934_v37  ;;  %v2850_v27 = vsub.s32 32, %v2849_v60  ;;  %v2854_v9 = vsub.s32 4294967266, %v2849_v60  ;;  %v2977_v56 = vshrl.u32 %v2972_v40, 16 }
  0xcd   : > { %v2986_v55 = vadd.s32 %v2985_v62, %v2975_v44  ;;  %v2851_v13 = vshll.u32 %v2842_v14, %v2849_v60  ;;  %vm2990_vm15 = vc.u32 %v4055_v57, %v4059_v39  ;;  %v2437_v32 = vand.u32 8388607, %v6313_v49 }
  0xce   : > { %v2448_v47 = vshrl.u32 %v6338_v52, %v3908_v1  ;;  %v2852_v46 = vshrl.u32 %v2834_v38, %v2850_v27  ;;  %v2855_v48 = vadd.s32 127, %v2854_v9  ;;  %v2451_v19 = vshrl.u32 %v6340_v59, %v3908_v1 }
  0xcf   : > { %v2987_v33 = vadd.s32 %v2986_v55, %v2977_v56  ;;  %v2450_v40 = vshll.u32 %v6338_v52, %v3881_v16  ;;  %v2453_v14 = vshll.u32 %v6340_v59, %v3881_v16  ;;  %v2454_v43 = vshrl.u32 %v6341_v21, %v3908_v1 }
  0xd0   : > { %v2457_v25 = vshrl.u32 %v6342_v12, %v3908_v1  ;;  %v2853_v50 = vor.u32 %v2852_v46, %v2851_v13  ;;  %v2856_v61 = vshll.u32 %v2855_v48, 23  ;;  %v2456_v42 = vshll.u32 %v6341_v21, %v3881_v16 }
  0xd1   : > { %v2991_v10 = vadd.s32 1, %v2987_v33  ;;  %v4080_v6 = vor.u32 %v2451_v19, %v2450_v40  ;;  %v2455_v45 = vor.u32 %v2454_v43, %v2453_v14  ;;  %v2459_v37 = vshll.u32 %v6342_v12, %v3881_v16 }
  0xd2   : > { %v2460_v7 = vshrl.u32 %v6343_v53, %v3908_v1  ;;  %v4087_v41 = vadd.s32 4294967169, %v4028_v18  ;;  %v2857_v8 = vor.u32 4788187, %v2856_v61  ;;  %v2458_v38 = vor.u32 %v2457_v25, %v2456_v42 }
  0xd3   : > { %v2992_v4 = vsel %vm2990_vm15, %v2991_v10, %v2987_v33  ;;  %v2884_v20 = vadd.s32 3, %v2867_v30  ;;  %v2447_v62 = vshll.u32 %v6337_v5, %v3881_v16  ;;  %v2860_v9 = vcvt.s32.f32 %v2853_v50 }
  0xd4   : > { %v2993_v44 = vadd.s32 %v2992_v4, %v2988_v3  ;;  %v2461_v60 = vor.u32 %v2460_v7, %v2459_v37  ;;  %v2858_v27 = vand.u32 2147483647, %v2857_v8  ;;  %v2438_v56 = vor.u32 8388608, %v2437_v32 }
  0xd5   : > { %vm2462_vm0 = vcmp.lt.s32.totalorder %v3879_v15, 1  ;;  %v2449_v18 = vor.u32 %v2448_v47, %v2447_v62  ;;  %vm2465_vm1 = vcmp.lt.s32.totalorder %v3879_v15, 4  ;;  %vm2464_vm2 = vcmp.lt.s32.totalorder %v3879_v15, 3 }
  0xd6   : > { %v2994_v55 = vadd.s32 536870912, %v2993_v44  ;;  %v2474_v13 = vsel %vm2462_vm0, %v4080_v6, %v2455_v45  ;;  %v2861_v46 = vmul.f32 %v2860_v9, %v2858_v27  ;;  %v2471_v16 = vsel %vm2465_vm1, %v2458_v38, 920167782 }
  0xd7   : > { %v2475_v30 = vsel %vm2465_vm1, %v2461_v60, 1326507024  ;;  %v4105_v3 = vshrl.u32 %v4026_v36, 5  ;;  %vm2463_vm3 = vcmp.lt.s32.totalorder %v3879_v15, 2  ;;  %v4111_v48 = vand.u32 31, %v4026_v36 }
  0xd8   : > { %v2995_v32 = vshrl.u32 %v2994_v55, 30  ;;  %v2476_v47 = vsel %vm2464_vm2, %v2458_v38, %v2475_v30  ;;  %v2862_v33 = vxor.u32 2147483648, %v2861_v46  ;;  %v4115_v40 = vshll.u32 %v2438_v56, 8 }
  0xd9   : > { %v2477_v19 = vsel %vm2463_vm3, %v2474_v13, %v2476_v47  ;;  %v2470_v43 = vsel %vm2462_vm0, %v2449_v18, %v4080_v6  ;;  %v2472_v25 = vsel %vm2464_vm2, %v2455_v45, %v2471_v16  ;;  %v4124_v36 = vand.u32 3, %v2884_v20 }
  0xda   : > { %v2996_v14 = vshll.u32 %v2995_v32, 30  ;;  %v2482_v50 = vshrl.u32 %v2477_v19, 16  ;;  %v2863_v61 = vsel %vm2742_vm7, %v2862_v33, %v2861_v46  ;;  %vm2897_vm4 = vcmp.lt.s32.totalorder %v3795_v35, 0 }
  0xdb   : > { %v2479_v10 = vand.u32 65535, %v4115_v40  ;;  %v4131_v42 = vsel %vm4038_vm8, %v3789_v31, %v2863_v61  ;;  %v2446_v7 = vshrl.u32 %v6337_v5, %v3908_v1  ;;  %v2481_v8 = vand.u32 65535, %v2477_v19 }
  0xdc   : > { %v4133_v37 = vsub.s32 %v2993_v44, %v2996_v14  ;;  %v2868_v4 = vmul.f32 %v4131_v42, %v4131_v42  ;;  %v2989_v38 = vadd.s32 %v4059_v39, %v4055_v57  ;;  %v4143_v20 = vsel %vm2463_vm3, %v2470_v43, %v2472_v25 }
  0xdd   : > { %v2484_v62 = vmul.u32 %v2482_v50, %v2479_v10  ;;  %v2467_v44 = vsel %vm2465_vm1, %v2455_v45, 2102212464  ;;  %v2480_v1 = vshrl.u32 %v4115_v40, 16  ;;  %v3019_v9 = vsub.s32 4, %v2995_v32 }
  0xde   : > { %vm2998_vm5 = vcmp.lt.s32.totalorder %v4133_v37, 0  ;;  %v2999_v58 = vsub.s32 0, %v4133_v37  ;;  %v2869_v60 = vmul.f32 -0.001358992, %v2868_v4  ;;  %v2876_v27 = vmul.f32 -0.00019511016, %v2868_v4 }
  0xdf   : > { %v2487_v56 = vshll.u32 %v2484_v62, 16  ;;  %v2483_v39 = vmul.u32 %v2481_v8, %v2479_v10  ;;  %v4151_v55 = vmul.u32 %v2481_v8, %v2480_v1  ;;  %v2504_v13 = vshrl.u32 %v4143_v20, 16 }
  0xe0   : > { %v3000_v57 = vsel %vm2998_vm5, %v2999_v58, %v4133_v37  ;;  %v2870_v46 = vadd.f32 0.041655596, %v2869_v60  ;;  %v2877_v16 = vadd.f32 0.008332121, %v2876_v27  ;;  %v2466_v47 = vsel %vm2462_vm0, %v2446_v7, %v2449_v18 }
  0xe1   : > { %v3001_v30 = vclz %v3000_v57  ;;  %v2468_v45 = vsel %vm2464_vm2, %v4080_v6, %v2467_v44  ;;  %v2486_v33 = vmul.u32 %v2482_v50, %v2480_v1  ;;  %vm2491_vm6 = vc.u32 %v2483_v39, %v2487_v56 }
  0xe2   : > { %v2503_v19 = vand.u32 65535, %v4143_v20  ;;  %v2871_v14 = vmul.f32 %v2870_v46, %v2868_v4  ;;  %v2878_v43 = vmul.f32 %v2877_v16, %v2868_v4  ;;  %v2492_v61 = vsel %vm2491_vm6, 1, %v6336_v34 }
  0xe3   : > { %v3578_v25 = vadd.s32 4294967294, %v3001_v30  ;;  %v6348_v8 = vand.u32 2147483647, %v3795_v35  ;;  %v4169_v18 = vsel %vm2897_vm4, %v3019_v9, %v2995_v32  ;;  %v2489_v6 = vshll.u32 %v4151_v55, 16 }
  0xe4   : > { %v2493_v50 = vadd.s32 %v2487_v56, %v2483_v39  ;;  %v2506_v7 = vmul.u32 %v2504_v13, %v2479_v10  ;;  %v2872_v20 = vadd.f32 -0.4999988, %v2871_v14  ;;  %v2879_v44 = vadd.f32 -0.16666654, %v2878_v43 }
  0xe5   : > { %vm4163_vm7 = vcmp.le.f32.partialorder %v6348_v8, 0.7853982  ;;  %vm3579_vm8 = vcmp.lt.s32.totalorder %v3578_v25, 0  ;;  %v2494_v60 = vadd.s32 %v2492_v61, %v2486_v33  ;;  %vm2887_vm9 = vcmp.eq.s32.totalorder %v4124_v36, 0 }
  0xe6   : > { %vm2890_vm10 = vcmp.eq.s32.totalorder %v4124_v36, 2  ;;  %v3004_v27 = vsel %vm3579_vm8, 0, %v3578_v25  ;;  %vm2495_vm11 = vc.u32 %v2493_v50, %v2489_v6  ;;  %v2507_v57 = vmul.u32 %v2503_v19, %v2480_v1 }
  0xe7   : > { %v2509_v46 = vshll.u32 %v2506_v7, 16  ;;  %v2873_v16 = vmul.f32 %v2872_v20, %v2868_v4  ;;  %v2880_v30 = vmul.f32 %v2879_v44, %v2868_v4  ;;  %vm2886_vm12 = vcmp.lt.s32.totalorder %v4124_v36, 2 }
  0xe8   : > { %v3005_v32 = vsub.s32 32, %v3004_v27  ;;  %v2488_v9 = vshrl.u32 %v2484_v62, 16  ;;  %vm2883_vm13 = vweird.f32 %v3789_v31  ;;  %v3006_v56 = vshll.u32 %v4133_v37, %v3004_v27 }
  0xe9   : > { %v3009_v39 = vsub.s32 4294967266, %v3004_v27  ;;  %v2496_v33 = vsel %vm2495_vm11, 1, %v6336_v34  ;;  %v2505_v14 = vmul.u32 %v2503_v19, %v2479_v10  ;;  %v2874_v43 = vadd.f32 1.0, %v2873_v16 }
  0xea   : > { %v2881_v61 = vadd.f32 1.0, %v2880_v30  ;;  %v3007_v25 = vshrl.u32 %v2989_v38, %v3005_v32  ;;  %v2498_v8 = vadd.s32 %v2496_v33, %v2494_v60  ;;  %v2511_v50 = vshll.u32 %v2507_v57, 16 }
  0xeb   : > { %v3010_v6 = vadd.s32 127, %v3009_v39  ;;  %vm2513_vm14 = vc.u32 %v2505_v14, %v2509_v46  ;;  %v2515_v4 = vadd.s32 %v2509_v46, %v2505_v14  ;;  %v2891_v44 = vxor.u32 2147483648, %v2874_v43 }
  0xec   : > { %v2882_v20 = vmul.f32 %v2881_v61, %v4131_v42  ;;  %v2499_v62 = vadd.s32 %v2498_v8, %v2488_v9  ;;  %v2508_v49 = vmul.u32 %v2504_v13, %v2480_v1  ;;  %v3008_v29 = vor.u32 %v3007_v25, %v3006_v56 }
  0xed   : > { %v3011_v23 = vshll.u32 %v3010_v6, 23  ;;  %v2514_v37 = vsel %vm2513_vm14, 1, %v6336_v34  ;;  %vm2517_vm15 = vc.u32 %v2515_v4, %v2511_v50  ;;  %v3022_v10 = vsel %vm4163_vm7, 0, %v4169_v18 }
  0xee   : > { %v2888_v27 = vxor.u32 2147483648, %v2882_v20  ;;  %v2469_v38 = vsel %vm2463_vm3, %v2466_v47, %v2468_v45  ;;  %v2490_v19 = vshrl.u32 %v4151_v55, 16  ;;  %v2510_v42 = vshrl.u32 %v2506_v7, 16 }
  0xef   : > { %v3012_v60 = vor.u32 4788187, %v3011_v23  ;;  %v2516_v46 = vadd.s32 %v2514_v37, %v2508_v49  ;;  %v2518_v1 = vsel %vm2517_vm15, 1, %v6336_v34  ;;  %v2892_v16 = vsel %vm2890_vm10, %v2891_v44, %v2882_v20 }
  0xf0   : > { %v2889_v13 = vsel %vm2887_vm9, %v2874_v43, %v2888_v27  ;;  %v4191_v30 = vadd.s32 %v2499_v62, %v2490_v19  ;;  %v2585_v18 = vand.u32 2147483647, %v3807_v54  ;;  %v3015_v55 = vcvt.s32.f32 %v3008_v29 }
  0xf1   : > { %v2893_v15 = vsel %vm2886_vm12, %v2889_v13, %v2892_v16  ;;  %v3013_v47 = vand.u32 2147483647, %v3012_v60  ;;  %v2520_v23 = vadd.s32 %v2518_v1, %v2516_v46  ;;  %v4197_v49 = vshrl.u32 %v4030_v26, 5 }
  0xf2   : > { %v4200_v45 = vand.u32 31, %v4030_v26  ;;  %v2894_v7 = vsel %vm2883_vm13, nan, %v2893_v15  ;;  %v4204_v32 = vadd.s32 %v2515_v4, %v2511_v50  ;;  %v2512_v56 = vshrl.u32 %v2507_v57, 16 }
  0xf3   : > { %3144 = vmatpush.msra.mxu0 %v2894_v7  ;;  %v3016_v9 = vmul.f32 %v3015_v55, %v3013_v47  ;;  %v2521_v39 = vadd.s32 %v2520_v23, %v2510_v42  ;;  %v2523_v36 = vmul.u32 %v4115_v40, %v2469_v38  ;;  %v3039_v33 = vadd.s32 3, %v3022_v10 }
  0xf4   : > { %vm2525_vm0 = vc.u32 %v4191_v30, %v4204_v32  ;;  %v2592_v29 = vand.u32 8388607, %v2585_v18  ;;  %v2606_v26 = vshrl.u32 %v6340_v59, %v3911_v2  ;;  %v2603_v43 = vshrl.u32 %v6338_v52, %v3911_v2 }
  0xf5   : > { %v3017_v31 = vxor.u32 2147483648, %v3016_v9  ;;  %v2522_v14 = vadd.s32 %v2521_v39, %v2512_v56  ;;  %v2609_v57 = vshrl.u32 %v6341_v21, %v3911_v2  ;;  %v2605_v40 = vshll.u32 %v6338_v52, %v3885_v22 }
  0xf6   : > { %v2608_v61 = vshll.u32 %v6340_v59, %v3885_v22  ;;  %v2611_v25 = vshll.u32 %v6341_v21, %v3885_v22  ;;  %v2612_v8 = vshrl.u32 %v6342_v12, %v3911_v2  ;;  %v2614_v4 = vshll.u32 %v6342_v12, %v3885_v22 }
  0xf7   : > { %v3018_v6 = vsel %vm2897_vm4, %v3017_v31, %v3016_v9  ;;  %v2526_v50 = vadd.s32 1, %v2522_v14  ;;  %v2615_v20 = vshrl.u32 %v6343_v53, %v3911_v2  ;;  %v2602_v62 = vshll.u32 %v6337_v5, %v3885_v22 }
  0xf8   : > { %v4234_v44 = vsel %vm4163_vm7, %v3795_v35, %v3018_v6  ;;  %v4238_v37 = vor.u32 %v2606_v26, %v2605_v40  ;;  %v4240_v27 = vor.u32 %v2609_v57, %v2608_v61  ;;  %v2613_v19 = vor.u32 %v2612_v8, %v2611_v25 }
  0xf9   : > { %v3023_v10 = vmul.f32 %v4234_v44, %v4234_v44  ;;  %v2527_v38 = vsel %vm2525_vm0, %v2526_v50, %v2522_v14  ;;  %v2616_v60 = vor.u32 %v2615_v20, %v2614_v4  ;;  %v4247_v42 = vand.u32 3, %v3039_v33 }
  0xfa   : > { %v2528_v58 = vadd.s32 %v2527_v38, %v2523_v36  ;;  %v2593_v46 = vor.u32 8388608, %v2592_v29  ;;  %v2604_v1 = vor.u32 %v2603_v43, %v2602_v62  ;;  %vm2617_vm1 = vcmp.lt.s32.totalorder %v3883_v17, 1 }
  0xfb   : > { %v3024_v13 = vmul.f32 -0.001358992, %v3023_v10  ;;  %v3031_v22 = vmul.f32 -0.00019511016, %v3023_v10  ;;  %vm2620_vm2 = vcmp.lt.s32.totalorder %v3883_v17, 4  ;;  %vm2619_vm3 = vcmp.lt.s32.totalorder %v3883_v17, 3 }
  0xfc   : > { %v2529_v16 = vadd.s32 536870912, %v2528_v58  ;;  %v2629_v15 = vsel %vm2617_vm1, %v4238_v37, %v4240_v27  ;;  %v2630_v47 = vsel %vm2620_vm2, %v2616_v60, 1326507024  ;;  %v4260_v55 = vmul.f32 %v3930_v63, %v3783_v24 }
  0xfd   : > { %v3025_v23 = vadd.f32 0.041655596, %v3024_v13  ;;  %v3032_v7 = vadd.f32 0.008332121, %v3031_v22  ;;  %v2626_v9 = vsel %vm2620_vm2, %v2613_v19, 920167782  ;;  %v2631_v39 = vsel %vm2619_vm3, %v2613_v19, %v2630_v47 }
  0xfe   : > { %v2530_v56 = vshrl.u32 %v2529_v16, 30  ;;  %vm2618_vm4 = vcmp.lt.s32.totalorder %v3883_v17, 2  ;;  %v4267_v36 = vshll.u32 %v2593_v46, 8  ;;  %v4270_v33 = vadd.s32 1, %v4049_v0 }
  0xff   : > { %v3026_v29 = vmul.f32 %v3025_v23, %v3023_v10  ;;  %v3033_v26 = vmul.f32 %v3032_v7, %v3023_v10  ;;  %v2632_v63 = vsel %vm2618_vm4, %v2629_v15, %v2631_v39  ;;  %vm2432_vm5 = vcmp.lt.s32.totalorder %v3805_v51, 0 }
 0x100   : > { %v2531_v31 = vshll.u32 %v2530_v56, 30  ;;  %v2625_v14 = vsel %vm2617_vm1, %v2604_v1, %v4238_v37  ;;  %v2627_v43 = vsel %vm2619_vm3, %v4240_v27, %v2626_v9  ;;  %v2636_v0 = vand.u32 65535, %v2632_v63 }
 0x101   : > { %v3027_v57 = vadd.f32 -0.4999988, %v3026_v29  ;;  %v3034_v40 = vadd.f32 -0.16666654, %v3033_v26  ;;  %v2637_v61 = vshrl.u32 %v2632_v63, 16  ;;  %vm3042_vm6 = vcmp.eq.s32.totalorder %v4247_v42, 0 }
 0x102   : > { %vm3045_vm7 = vcmp.eq.s32.totalorder %v4247_v42, 2  ;;  %v2524_v25 = vadd.s32 %v4204_v32, %v4191_v30  ;;  %v4285_v8 = vsub.s32 %v2528_v58, %v2531_v31  ;;  %v2634_v6 = vand.u32 65535, %v4267_v36 }
 0x103   : > { %v3028_v50 = vmul.f32 %v3027_v57, %v3023_v10  ;;  %v3035_v4 = vmul.f32 %v3034_v40, %v3023_v10  ;;  %vm3041_vm8 = vcmp.lt.s32.totalorder %v4247_v42, 2  ;;  %v2628_v20 = vsel %vm2618_vm4, %v2625_v14, %v2627_v43 }
 0x104   : > { %v2635_v62 = vshrl.u32 %v4267_v36, 16  ;;  %vm3038_vm9 = vweird.f32 %v3795_v35  ;;  %vm2533_vm10 = vcmp.lt.s32.totalorder %v4285_v8, 0  ;;  %v2534_v38 = vsub.s32 0, %v4285_v8 }
 0x105   : > { %v2554_v30 = vsub.s32 4, %v2530_v56  ;;  %v2639_v32 = vmul.u32 %v2637_v61, %v2634_v6  ;;  %v3029_v19 = vadd.f32 1.0, %v3028_v50  ;;  %v3036_v60 = vadd.f32 1.0, %v3035_v4 }
 0x106   : > { %v2601_v10 = vshrl.u32 %v6337_v5, %v3911_v2  ;;  %v2640_v58 = vmul.u32 %v2636_v0, %v2635_v62  ;;  %v2535_v46 = vsel %vm2533_vm10, %v2534_v38, %v4285_v8  ;;  %v2658_v22 = vand.u32 65535, %v2628_v20 }
 0x107   : > { %v2642_v13 = vshll.u32 %v2639_v32, 16  ;;  %v2659_v16 = vshrl.u32 %v2628_v20, 16  ;;  %v3037_v15 = vmul.f32 %v3036_v60, %v4234_v44  ;;  %v3046_v47 = vxor.u32 2147483648, %v3029_v19 }
 0x108   : > { %v2536_v23 = vclz %v2535_v46  ;;  %v2638_v7 = vmul.u32 %v2636_v0, %v2634_v6  ;;  %v2555_v9 = vsel %vm2432_vm5, %v2554_v30, %v2530_v56  ;;  %v2621_v39 = vsel %vm2617_vm1, %v2601_v10, %v2604_v1 }
 0x109   : > { %v2622_v2 = vsel %vm2620_vm2, %v4240_v27, 2102212464  ;;  %v2641_v29 = vmul.u32 %v2637_v61, %v2635_v62  ;;  %v3043_v26 = vxor.u32 2147483648, %v3037_v15  ;;  %v6351_v63 = vand.u32 2147483647, %v3805_v51 }
 0x10a   : > { %v3569_v44 = vadd.s32 4294967294, %v2536_v23  ;;  %v2644_v14 = vshll.u32 %v2640_v58, 16  ;;  %vm2646_vm12 = vc.u32 %v2638_v7, %v2642_v13  ;;  %v3047_v56 = vsel %vm3045_vm7, %v3046_v47, %v3037_v15 }
 0x10b   : > { %vm4308_vm11 = vcmp.le.f32.partialorder %v6351_v63, 0.7853982  ;;  %v2647_v1 = vsel %vm2646_vm12, 1, %v6336_v34  ;;  %v2648_v43 = vadd.s32 %v2642_v13, %v2638_v7  ;;  %v2661_v57 = vmul.u32 %v2659_v16, %v2634_v6 }
 0x10c   : > { %v3044_v27 = vsel %vm3042_vm6, %v3029_v19, %v3043_v26  ;;  %vm3570_vm13 = vcmp.lt.s32.totalorder %v3569_v44, 0  ;;  %v2649_v40 = vadd.s32 %v2647_v1, %v2641_v29  ;;  %v2662_v0 = vmul.u32 %v2658_v22, %v2635_v62 }
 0x10d   : > { %v3048_v61 = vsel %vm3041_vm8, %v3044_v27, %v3047_v56  ;;  %v2539_v50 = vsel %vm3570_vm13, 0, %v3569_v44  ;;  %vm2650_vm14 = vc.u32 %v2648_v43, %v2644_v14  ;;  %v2664_v4 = vshll.u32 %v2661_v57, 16 }
 0x10e   : > { %v3049_v20 = vsel %vm3038_vm9, nan, %v3048_v61  ;;  %v2540_v38 = vsub.s32 32, %v2539_v50  ;;  %v2544_v30 = vsub.s32 4294967266, %v2539_v50  ;;  %v2660_v60 = vmul.u32 %v2658_v22, %v2634_v6 }
 0x10f   : > { %3173 = vmatpush.msra.mxu1 %v3049_v20  ;;  %v2541_v10 = vshll.u32 %v4285_v8, %v2539_v50  ;;  %v2643_v46 = vshrl.u32 %v2639_v32, 16  ;;  %v2651_v19 = vsel %vm2650_vm14, 1, %v6336_v34  ;;  %v2663_v13 = vmul.u32 %v2659_v16, %v2635_v62  ;;  %v527_v62 = vpop.permute.xlu0 %526 }
 0x110   : > { %v2542_v15 = vshrl.u32 %v2524_v25, %v2540_v38  ;;  %v2545_v47 = vadd.s32 127, %v2544_v30  ;;  %v2653_v42 = vadd.s32 %v2651_v19, %v2649_v40  ;;  %vm2668_vm15 = vc.u32 %v2660_v60, %v2664_v4 }
 0x111   : > { %v2623_v23 = vsel %vm2619_vm3, %v4238_v37, %v2622_v2  ;;  %v2666_v35 = vshll.u32 %v2662_v0, 16  ;;  %v2669_v7 = vsel %vm2668_vm15, 1, %v6336_v34  ;;  %v2670_v29 = vadd.s32 %v2664_v4, %v2660_v60 }
 0x112   : > { %v2543_v6 = vor.u32 %v2542_v15, %v2541_v10  ;;  %v2546_v22 = vshll.u32 %v2545_v47, 23  ;;  %v2654_v26 = vadd.s32 %v2653_v42, %v2643_v46  ;;  %v2671_v8 = vadd.s32 %v2669_v7, %v2663_v13 }
 0x113   : > { %v4328_v32 = vsub.s32 32, %v4111_v48  ;;  %v2557_v25 = vsel %vm4308_vm11, 0, %v2555_v9  ;;  %v2645_v16 = vshrl.u32 %v2640_v58, 16  ;;  %vm2672_vm0 = vc.u32 %v2670_v29, %v2666_v35 }
 0x114   : > { %v2547_v63 = vor.u32 4788187, %v2546_v22  ;;  %v2624_v37 = vsel %vm2618_vm4, %v2621_v39, %v2623_v23  ;;  %v2673_v2 = vsel %vm2672_vm0, 1, %v6336_v34  ;;  %v2120_v44 = vand.u32 2147483647, %v3827_v28 }
 0x115   : > { %v4337_v14 = vadd.s32 1, %v4087_v41  ;;  %v4339_v56 = vadd.s32 %v2654_v26, %v2645_v16  ;;  %v2665_v1 = vshrl.u32 %v2661_v57, 16  ;;  %v2675_v43 = vadd.s32 %v2673_v2, %v2671_v8 }
 0x116   : > { %v4342_v27 = vadd.f32 %v527_v62, %v3947_v11  ;;  %v2548_v58 = vand.u32 2147483647, %v2547_v63  ;;  %v2550_v9 = vcvt.s32.f32 %v2543_v6  ;;  %v2574_v40 = vadd.s32 3, %v2557_v25 }
 0x117   : > { %v2667_v61 = vshrl.u32 %v2662_v0, 16  ;;  %v4344_v17 = vadd.s32 %v2670_v29, %v2666_v35  ;;  %v2676_v39 = vadd.s32 %v2675_v43, %v2665_v1  ;;  %v2678_v50 = vmul.u32 %v4267_v36, %v2624_v37 }
 0x118   : > { %v2551_v4 = vmul.f32 %v2550_v9, %v2548_v58  ;;  %v2127_v41 = vand.u32 8388607, %v2120_v44  ;;  %v2141_v57 = vshrl.u32 %v6340_v59, %v4328_v32  ;;  %v2144_v11 = vshrl.u32 %v6341_v21, %v4328_v32  ;;  %v4406_v58 = vpop.permute.xlu1 %460 }
 0x119   : > { %v2677_v20 = vadd.s32 %v2676_v39, %v2667_v61  ;;  %vm2680_vm1 = vc.u32 %v4339_v56, %v4344_v17  ;;  %v2146_v0 = vshll.u32 %v6341_v21, %v4111_v48  ;;  %v2147_v36 = vshrl.u32 %v6342_v12, %v4328_v32 }
 0x11a   : > { %v2552_v38 = vxor.u32 2147483648, %v2551_v4  ;;  %v2138_v30 = vshrl.u32 %v6338_v52, %v4328_v32  ;;  %v2140_v60 = vshll.u32 %v6338_v52, %v4111_v48  ;;  %v2143_v10 = vshll.u32 %v6340_v59, %v4111_v48 }
 0x11b   : > { %v2681_v46 = vadd.s32 1, %v2677_v20  ;;  %v2148_v19 = vor.u32 %v2147_v36, %v2146_v0  ;;  %v2149_v13 = vshll.u32 %v6342_v12, %v4111_v48  ;;  %v2150_v15 = vshrl.u32 %v6343_v53, %v4328_v32 }
 0x11c   : > { %v2553_v47 = vsel %vm2432_vm5, %v2552_v38, %v2551_v4  ;;  %v2137_v42 = vshll.u32 %v6337_v5, %v4111_v48  ;;  %v4373_v23 = vor.u32 %v2141_v57, %v2140_v60  ;;  %v4375_v35 = vor.u32 %v2144_v11, %v2143_v10  ;;  %v6354_v11 = vld [vmem:[#allocation2_spill] sm:$0xff] }
 0x11d   : > { %v4380_v7 = vsel %vm4308_vm11, %v3805_v51, %v2553_v47  ;;  %v2682_v29 = vsel %vm2680_vm1, %v2681_v46, %v2677_v20  ;;  %v2128_v6 = vor.u32 8388608, %v2127_v41  ;;  %v2151_v22 = vor.u32 %v2150_v15, %v2149_v13 }
 0x11e   : > { %v2558_v26 = vmul.f32 %v4380_v7, %v4380_v7  ;;  %v2683_v8 = vadd.s32 %v2682_v29, %v2678_v50  ;;  %v4387_v48 = vor.u32 %v2138_v30, %v2137_v42  ;;  %vm2155_vm2 = vcmp.lt.s32.totalorder %v4105_v3, 4 }
 0x11f   : > { %vm2152_vm3 = vcmp.lt.s32.totalorder %v4105_v3, 1  ;;  %vm2154_vm4 = vcmp.lt.s32.totalorder %v4105_v3, 3  ;;  %v2161_v31 = vsel %vm2155_vm2, %v2148_v19, 920167782  ;;  %v2165_v25 = vsel %vm2155_vm2, %v2151_v22, 1326507024 }
 0x120   : > { %v2559_v16 = vmul.f32 -0.001358992, %v2558_v26  ;;  %v2566_v63 = vmul.f32 -0.00019511016, %v2558_v26  ;;  %v2684_v37 = vadd.s32 536870912, %v2683_v8  ;;  %v2164_v2 = vsel %vm2152_vm3, %v4373_v23, %v4375_v35 }
 0x121   : > { %v4401_v1 = vsub.s32 32, %v4200_v45  ;;  %v4404_v43 = vadd.f32 %v527_v62, %v4260_v55  ;;  %v2166_v9 = vsel %vm2154_vm4, %v2148_v19, %v2165_v25  ;;  %v4410_v61 = vshll.u32 %v2128_v6, 8 }
 0x122   : > { %v2560_v39 = vadd.f32 0.041655596, %v2559_v16  ;;  %v2567_v50 = vadd.f32 0.008332121, %v2566_v63  ;;  %v4412_v4 = vshrl.u32 %v2684_v37, 30  ;;  %vm2153_vm5 = vcmp.lt.s32.totalorder %v4105_v3, 2 }
 0x123   : > { %v4415_v41 = vand.u32 3, %v2574_v40  ;;  %v2160_v55 = vsel %vm2152_vm3, %v4387_v48, %v4373_v23  ;;  %v2162_v62 = vsel %vm2154_vm4, %v4375_v35, %v2161_v31  ;;  %v2167_v57 = vsel %vm2153_vm5, %v2164_v2, %v2166_v9 }
 0x124   : > { %v4428_v20 = vmul.f32 %v4406_v58, %v6354_v11  ;;  %v2561_v0 = vmul.f32 %v2560_v39, %v2558_v26  ;;  %v2568_v36 = vmul.f32 %v2567_v50, %v2558_v26  ;;  %v2686_v40 = vshll.u32 %v4412_v4, 30 }
 0x125   : > { %v2169_v38 = vand.u32 65535, %v4410_v61  ;;  %v4433_v30 = vshrl.u32 %v4410_v61, 16  ;;  %v2171_v60 = vand.u32 65535, %v2167_v57  ;;  %v2172_v10 = vshrl.u32 %v2167_v57, 16 }
 0x126   : > { %v2562_v46 = vadd.f32 -0.4999988, %v2561_v0  ;;  %v2569_v19 = vadd.f32 -0.16666654, %v2568_v36  ;;  %v4435_v13 = vsub.s32 %v2683_v8, %v2686_v40  ;;  %v2163_v15 = vsel %vm2153_vm5, %v2160_v55, %v2162_v62 }
 0x127   : > { %vm2577_vm6 = vcmp.eq.s32.totalorder %v4415_v41, 0  ;;  %vm2580_vm7 = vcmp.eq.s32.totalorder %v4415_v41, 2  ;;  %v2136_v47 = vshrl.u32 %v6337_v5, %v4328_v32  ;;  %v2174_v42 = vmul.u32 %v2172_v10, %v2169_v38 }
 0x128   : > { %v4444_v29 = vmul.u32 %v2171_v60, %v4433_v30  ;;  %v2563_v6 = vmul.f32 %v2562_v46, %v2558_v26  ;;  %v2570_v22 = vmul.f32 %v2569_v19, %v2558_v26  ;;  %vm2576_vm8 = vcmp.lt.s32.totalorder %v4415_v41, 2 }
 0x129   : > { %vm2688_vm9 = vcmp.lt.s32.totalorder %v4435_v13, 0  ;;  %v2689_v8 = vsub.s32 0, %v4435_v13  ;;  %vm2573_vm10 = vweird.f32 %v3805_v51  ;;  %vm2587_vm11 = vcmp.lt.s32.totalorder %v3807_v54, 0 }
 0x12a   : > { %v2679_v31 = vadd.s32 %v4344_v17, %v4339_v56  ;;  %v2173_v32 = vmul.u32 %v2171_v60, %v2169_v38  ;;  %v2177_v25 = vshll.u32 %v2174_v42, 16  ;;  %v2193_v16 = vand.u32 65535, %v2163_v15 }
 0x12b   : > { %v2564_v63 = vadd.f32 1.0, %v2563_v6  ;;  %v2571_v37 = vadd.f32 1.0, %v2570_v22  ;;  %v2690_v26 = vsel %vm2688_vm9, %v2689_v8, %v4435_v13  ;;  %v2194_v2 = vshrl.u32 %v2163_v15, 16 }
 0x12c   : > { %v2691_v9 = vclz %v2690_v26  ;;  %v2176_v39 = vmul.u32 %v2172_v10, %v4433_v30  ;;  %v2179_v50 = vshll.u32 %v4444_v29, 16  ;;  %vm2181_vm12 = vc.u32 %v2173_v32, %v2177_v25 }
 0x12d   : > { %v2572_v55 = vmul.f32 %v2571_v37, %v4380_v7  ;;  %v2581_v62 = vxor.u32 2147483648, %v2564_v63  ;;  %v2182_v57 = vsel %vm2181_vm12, 1, %v6336_v34  ;;  %v2183_v56 = vadd.s32 %v2177_v25, %v2173_v32 }
 0x12e   : > { %vm4460_vm13 = vcmp.le.f32.partialorder %v2585_v18, 0.7853982  ;;  %v3572_v11 = vadd.s32 4294967294, %v2691_v9  ;;  %v2709_v0 = vsub.s32 4, %v4412_v4  ;;  %v2156_v36 = vsel %vm2152_vm3, %v2136_v47, %v4387_v48 }
 0x12f   : > { %v2157_v7 = vsel %vm2155_vm2, %v4375_v35, 2102212464  ;;  %v2578_v40 = vxor.u32 2147483648, %v2572_v55  ;;  %v2178_v60 = vshrl.u32 %v2174_v42, 16  ;;  %v2184_v10 = vadd.s32 %v2182_v57, %v2176_v39 }
 0x130   : > { %vm2185_vm14 = vc.u32 %v2183_v56, %v2179_v50  ;;  %v2582_v18 = vsel %vm2580_vm7, %v2581_v62, %v2572_v55  ;;  %vm3573_vm15 = vcmp.lt.s32.totalorder %v3572_v11, 0  ;;  %v2196_v19 = vmul.u32 %v2194_v2, %v2169_v38  ;;  %v6357_v56 = vld [vmem:[#allocation9_spill] sm:$0xff] }
 0x131   : > { %v2186_v46 = vsel %vm2185_vm14, 1, %v6336_v34  ;;  %v2579_v15 = vsel %vm2577_vm6, %v2564_v63, %v2578_v40  ;;  %v2694_v6 = vsel %vm3573_vm15, 0, %v3572_v11  ;;  %v2197_v47 = vmul.u32 %v2193_v16, %v4433_v30 }
 0x132   : > { %v2188_v48 = vadd.s32 %v2186_v46, %v2184_v10  ;;  %v2583_v35 = vsel %vm2576_vm8, %v2579_v15, %v2582_v18  ;;  %v2695_v42 = vsub.s32 32, %v2694_v6  ;;  %v2699_v22 = vsub.s32 4294967266, %v2694_v6 }
 0x133   : > { %v2195_v8 = vmul.u32 %v2193_v16, %v2169_v38  ;;  %v2584_v32 = vsel %vm2573_vm10, nan, %v2583_v35  ;;  %v2710_v25 = vsel %vm2587_vm11, %v2709_v0, %v4412_v4  ;;  %v2199_v26 = vshll.u32 %v2196_v19, 16 }
 0x134   : > { %v2189_v37 = vadd.s32 %v2188_v48, %v2178_v60  ;;  %3145 = vmatpush.msra.mxu0 %v2584_v32  ;;  %v2696_v63 = vshll.u32 %v4435_v13, %v2694_v6  ;;  %v2697_v9 = vshrl.u32 %v2679_v31, %v2695_v42  ;;  %v2700_v39 = vadd.s32 127, %v2699_v22 }
 0x135   : > { %v2180_v41 = vshrl.u32 %v4444_v29, 16  ;;  %v2198_v50 = vmul.u32 %v2194_v2, %v4433_v30  ;;  %v2201_v55 = vshll.u32 %v2197_v47, 16  ;;  %vm2203_vm0 = vc.u32 %v2195_v8, %v2199_v26 }
 0x136   : > { %v2205_v38 = vadd.s32 %v2199_v26, %v2195_v8  ;;  %v2698_v51 = vor.u32 %v2697_v9, %v2696_v63  ;;  %v2701_v16 = vshll.u32 %v2700_v39, 23  ;;  %v2158_v4 = vsel %vm2154_vm4, %v4373_v23, %v2157_v7 }
 0x137   : > { %v2204_v62 = vsel %vm2203_vm0, 1, %v6336_v34  ;;  %v2712_v13 = vsel %vm4460_vm13, 0, %v2710_v25  ;;  %v4493_v31 = vadd.s32 %v2189_v37, %v2180_v41  ;;  %v4497_v30 = vmul.f32 %v4406_v58, %v3783_v24 }
 0x138   : > { %v2206_v57 = vadd.s32 %v2204_v62, %v2198_v50  ;;  %vm2207_vm1 = vc.u32 %v2205_v38, %v2201_v55  ;;  %v2702_v29 = vor.u32 4788187, %v2701_v16  ;;  %v2275_v11 = vand.u32 2147483647, %v6357_v56 }
 0x139   : > { %v2208_v2 = vsel %vm2207_vm1, 1, %v6336_v34  ;;  %v1193_v23 = vand.u32 2139095040, %v4342_v27  ;;  %v2200_v0 = vshrl.u32 %v2196_v19, 16  ;;  %v4502_v7 = vadd.s32 %v2205_v38, %v2201_v55 }
 0x13a   : > { %v2210_v40 = vadd.s32 %v2208_v2, %v2206_v57  ;;  %v2703_v60 = vand.u32 2147483647, %v2702_v29  ;;  %v2705_v10 = vcvt.s32.f32 %v2698_v51  ;;  %v2729_v18 = vadd.s32 3, %v2712_v13 }
 0x13b   : > { %v2159_v46 = vsel %vm2153_vm5, %v2156_v36, %v2158_v4  ;;  %v2202_v15 = vshrl.u32 %v2197_v47, 16  ;;  %vm2215_vm2 = vc.u32 %v4493_v31, %v4502_v7  ;;  %v2296_v58 = vshrl.u32 %v6340_v59, %v4401_v1 }
 0x13c   : > { %v2211_v24 = vadd.s32 %v2210_v40, %v2200_v0  ;;  %v2706_v6 = vmul.f32 %v2705_v10, %v2703_v60  ;;  %v2282_v19 = vand.u32 8388607, %v2275_v11  ;;  %v2293_v48 = vshrl.u32 %v6338_v52, %v4401_v1 }
 0x13d   : > { %v2299_v35 = vshrl.u32 %v6341_v21, %v4401_v1  ;;  %v2295_v36 = vshll.u32 %v6338_v52, %v4200_v45  ;;  %v2298_v47 = vshll.u32 %v6340_v59, %v4200_v45  ;;  %v2302_v42 = vshrl.u32 %v6342_v12, %v4401_v1 }
 0x13e   : > { %v2212_v3 = vadd.s32 %v2211_v24, %v2202_v15  ;;  %vm1511_vm3 = vcmp.gt.s32.totalorder %v4270_v33, 0  ;;  %v2707_v22 = vxor.u32 2147483648, %v2706_v6  ;;  %v2292_v8 = vshll.u32 %v6337_v5, %v4200_v45 }
 0x13f   : > { %v2304_v32 = vshll.u32 %v6342_v12, %v4200_v45  ;;  %v2305_v25 = vshrl.u32 %v6343_v53, %v4401_v1  ;;  %v4529_v26 = vor.u32 %v2296_v58, %v2295_v36  ;;  %v2300_v63 = vor.u32 %v2299_v35, %v2298_v47 }
 0x140   : > { %v2216_v37 = vadd.s32 1, %v2212_v3  ;;  %v2301_v9 = vshll.u32 %v6341_v21, %v4200_v45  ;;  %v2708_v39 = vsel %vm2587_vm11, %v2707_v22, %v2706_v6  ;;  %v2213_v41 = vmul.u32 %v4410_v61, %v2159_v46 }
 0x141   : > { %v2283_v50 = vor.u32 8388608, %v2282_v19  ;;  %v2306_v55 = vor.u32 %v2305_v25, %v2304_v32  ;;  %v4539_v38 = vsel %vm4460_vm13, %v3807_v54, %v2708_v39  ;;  %v4544_v16 = vor.u32 %v2293_v48, %v2292_v8 }
 0x142   : > { %v2217_v51 = vsel %vm2215_vm2, %v2216_v37, %v2212_v3  ;;  %v2303_v4 = vor.u32 %v2302_v42, %v2301_v9  ;;  %v2713_v45 = vmul.f32 %v4539_v38, %v4539_v38  ;;  %vm2307_vm4 = vcmp.lt.s32.totalorder %v4197_v49, 1 }
 0x143   : > { %v2218_v62 = vadd.s32 %v2217_v51, %v2213_v41  ;;  %vm2310_vm5 = vcmp.lt.s32.totalorder %v4197_v49, 4  ;;  %v4550_v61 = vand.u32 3, %v2729_v18  ;;  %vm2308_vm6 = vcmp.lt.s32.totalorder %v4197_v49, 2 }
 0x144   : > { %v2319_v17 = vsel %vm2307_vm4, %v4529_v26, %v2300_v63  ;;  %v2320_v13 = vsel %vm2310_vm5, %v2306_v55, 1326507024  ;;  %v2714_v57 = vmul.f32 -0.001358992, %v2713_v45  ;;  %v2721_v29 = vmul.f32 -0.00019511016, %v2713_v45 }
 0x145   : > { %v2219_v2 = vadd.s32 536870912, %v2218_v62  ;;  %vm2309_vm7 = vcmp.lt.s32.totalorder %v4197_v49, 3  ;;  %v2315_v0 = vsel %vm2307_vm4, %v4544_v16, %v4529_v26  ;;  %v2316_v40 = vsel %vm2310_vm5, %v2303_v4, 920167782  ;;  %v6362_v49 = vld [vmem:[#allocation11_spill] sm:$0xff] }
 0x146   : > { %v2321_v60 = vsel %vm2309_vm7, %v2303_v4, %v2320_v13  ;;  %v4567_v10 = vshll.u32 %v2283_v50, 8  ;;  %v2715_v18 = vadd.f32 0.041655596, %v2714_v57  ;;  %v2722_v46 = vadd.f32 0.008332121, %v2721_v29 }
 0x147   : > { %v2220_v15 = vshrl.u32 %v2219_v2, 30  ;;  %v2322_v24 = vsel %vm2308_vm6, %v2319_v17, %v2321_v60  ;;  %v2317_v47 = vsel %vm2309_vm7, %v2300_v63, %v2316_v40  ;;  %v4582_v42 = vsel %vm1511_vm3, %v4270_v33, 0 }
 0x148   : > { %v4572_v58 = vand.u32 65535, %v4567_v10  ;;  %v4575_v6 = vshrl.u32 %v4567_v10, 16  ;;  %v2326_v19 = vand.u32 65535, %v2322_v24  ;;  %v2327_v48 = vshrl.u32 %v2322_v24, 16 }
 0x149   : > { %v2716_v35 = vmul.f32 %v2715_v18, %v2713_v45  ;;  %v2723_v3 = vmul.f32 %v2722_v46, %v2713_v45  ;;  %v2221_v36 = vshll.u32 %v2220_v15, 30  ;;  %v1348_v22 = vand.u32 2139095040, %v4404_v43 }
 0x14a   : > { %v4586_v8 = vmul.u32 %v2327_v48, %v4572_v58  ;;  %v4589_v32 = vmul.u32 %v2326_v19, %v4575_v6  ;;  %vm2122_vm8 = vcmp.lt.s32.totalorder %v3827_v28, 0  ;;  %v2291_v39 = vshrl.u32 %v6337_v5, %v4401_v1 }
 0x14b   : > { %v2717_v25 = vadd.f32 -0.4999988, %v2716_v35  ;;  %v2724_v37 = vadd.f32 -0.16666654, %v2723_v3  ;;  %v4592_v9 = vsub.s32 %v2218_v62, %v2221_v36  ;;  %v2312_v33 = vsel %vm2310_vm5, %v2300_v63, 2102212464 }
 0x14c   : > { %v2318_v41 = vsel %vm2308_vm6, %v2315_v0, %v2317_v47  ;;  %v2328_v50 = vmul.u32 %v2326_v19, %v4572_v58  ;;  %v2332_v55 = vshll.u32 %v4586_v8, 16  ;;  %vm2731_vm9 = vcmp.lt.s32.totalorder %v4550_v61, 2 }
 0x14d   : > { %v2718_v51 = vmul.f32 %v2717_v25, %v2713_v45  ;;  %v2725_v4 = vmul.f32 %v2724_v37, %v2713_v45  ;;  %vm2223_vm10 = vcmp.lt.s32.totalorder %v4592_v9, 0  ;;  %v2224_v62 = vsub.s32 0, %v4592_v9 }
 0x14e   : > { %vm2728_vm11 = vweird.f32 %v3807_v54  ;;  %vm4608_vm12 = vcmp.le.f32.partialorder %v2120_v44, 0.7853982  ;;  %v2331_v63 = vmul.u32 %v2327_v48, %v4575_v6  ;;  %v2334_v17 = vshll.u32 %v4589_v32, 16 }
 0x14f   : > { %vm2336_vm13 = vc.u32 %v2328_v50, %v2332_v55  ;;  %v2338_v45 = vadd.s32 %v2332_v55, %v2328_v50  ;;  %v2719_v13 = vadd.f32 1.0, %v2718_v51  ;;  %v2726_v57 = vadd.f32 1.0, %v2725_v4 }
 0x150   : > { %v2225_v29 = vsel %vm2223_vm10, %v2224_v62, %v4592_v9  ;;  %v2337_v2 = vsel %vm2336_vm13, 1, %v6336_v34  ;;  %vm1666_vm14 = vcmp.gt.s32.totalorder %v4337_v14, 0  ;;  %v2244_v40 = vsub.s32 4, %v2220_v15 }
 0x151   : > { %v2226_v0 = vclz %v2225_v29  ;;  %v2339_v44 = vadd.s32 %v2337_v2, %v2331_v63  ;;  %vm2340_vm15 = vc.u32 %v2338_v45, %v2334_v17  ;;  %v2727_v60 = vmul.f32 %v2726_v57, %v4539_v38  ;;  %v6360_v2 = vld [vmem:[#allocation3_spill] sm:$0xff] }
 0x152   : > { %v2736_v18 = vxor.u32 2147483648, %v2719_v13  ;;  %v2341_v46 = vsel %vm2340_vm15, 1, %v6336_v34  ;;  %v2348_v24 = vand.u32 65535, %v2318_v41  ;;  %vm2732_vm0 = vcmp.eq.s32.totalorder %v4550_v61, 0 }
 0x153   : > { %vm2735_vm1 = vcmp.eq.s32.totalorder %v4550_v61, 2  ;;  %v2214_v19 = vadd.s32 %v4502_v7, %v4493_v31  ;;  %v3563_v48 = vadd.s32 4294967294, %v2226_v0  ;;  %v2733_v35 = vxor.u32 2147483648, %v2727_v60 }
 0x154   : > { %v2311_v3 = vsel %vm2307_vm4, %v2291_v39, %v4544_v16  ;;  %v2313_v38 = vsel %vm2309_vm7, %v4529_v26, %v2312_v33  ;;  %v2349_v36 = vshrl.u32 %v2318_v41, 16  ;;  %v2737_v47 = vsel %vm2735_vm1, %v2736_v18, %v2727_v60 }
 0x155   : > { %vm3564_vm2 = vcmp.lt.s32.totalorder %v3563_v48, 0  ;;  %v2245_v25 = vsel %vm2122_vm8, %v2244_v40, %v2220_v15  ;;  %v2343_v37 = vadd.s32 %v2341_v46, %v2339_v44  ;;  %v2734_v50 = vsel %vm2732_vm0, %v2719_v13, %v2733_v35 }
 0x156   : > { %v2229_v55 = vsel %vm3564_vm2, 0, %v3563_v48  ;;  %v2351_v31 = vmul.u32 %v2349_v36, %v4572_v58  ;;  %v2352_v7 = vmul.u32 %v2348_v24, %v4575_v6  ;;  %v2738_v16 = vsel %vm2731_vm9, %v2734_v50, %v2737_v47 }
 0x157   : > { %v2230_v39 = vsub.s32 32, %v2229_v55  ;;  %v2234_v51 = vsub.s32 4294967266, %v2229_v55  ;;  %v2333_v26 = vshrl.u32 %v4586_v8, 16  ;;  %v2739_v33 = vsel %vm2728_vm11, nan, %v2738_v16 }
 0x158   : > { %v2247_v15 = vsel %vm4608_vm12, 0, %v2245_v25  ;;  %v2350_v41 = vmul.u32 %v2348_v24, %v4572_v58  ;;  %v2354_v4 = vshll.u32 %v2351_v31, 16  ;;  %3174 = vmatpush.msra.mxu1 %v2739_v33  ;;  %v2231_v62 = vshll.u32 %v4592_v9, %v2229_v55  ;;  %v6361_v25 = vld [vmem:[#allocation7_spill] sm:$0xff] }
 0x159   : > { %v2232_v63 = vshrl.u32 %v2214_v19, %v2230_v39  ;;  %v2235_v17 = vadd.s32 127, %v2234_v51  ;;  %v2344_v61 = vadd.s32 %v2343_v37, %v2333_v26  ;;  %v2353_v45 = vmul.u32 %v2349_v36, %v4575_v6 }
 0x15a   : > { %v2356_v13 = vshll.u32 %v2352_v7, 16  ;;  %vm2358_vm3 = vc.u32 %v2350_v41, %v2354_v4  ;;  %v2360_v8 = vadd.s32 %v2354_v4, %v2350_v41  ;;  %v1810_v0 = vand.u32 2147483647, %v6360_v2 }
 0x15b   : > { %v2233_v57 = vor.u32 %v2232_v63, %v2231_v62  ;;  %v2236_v54 = vshll.u32 %v2235_v17, 23  ;;  %v2359_v29 = vsel %vm2358_vm3, 1, %v6336_v34  ;;  %v4648_v58 = vsel %vm1666_vm14, %v4337_v14, 0 }
 0x15c   : > { %v2335_v9 = vshrl.u32 %v4589_v32, 16  ;;  %v2361_v40 = vadd.s32 %v2359_v29, %v2353_v45  ;;  %vm2362_vm4 = vc.u32 %v2360_v8, %v2356_v13  ;;  %v2264_v6 = vadd.s32 3, %v2247_v15 }
 0x15d   : > { %v2237_v44 = vor.u32 4788187, %v2236_v54  ;;  %v2314_v60 = vsel %vm2308_vm6, %v2311_v3, %v2313_v38  ;;  %v2363_v18 = vsel %vm2362_vm4, 1, %v6336_v34  ;;  %v2355_v24 = vshrl.u32 %v2351_v31, 16 }
 0x15e   : > { %v4654_v46 = vadd.s32 %v2344_v61, %v2335_v9  ;;  %v2357_v19 = vshrl.u32 %v2352_v7, 16  ;;  %v2365_v48 = vadd.s32 %v2363_v18, %v2361_v40  ;;  %v2240_v36 = vcvt.s32.f32 %v2233_v57 }
 0x15f   : > { %v2238_v35 = vand.u32 2147483647, %v2237_v44  ;;  %v4656_v14 = vadd.s32 %v2360_v8, %v2356_v13  ;;  %v1817_v32 = vand.u32 8388607, %v1810_v0  ;;  %v1830_v37 = vshll.u32 %v6338_v52, %v6361_v25  ;;  %v6363_v13 = vld [vmem:[#allocation10_spill] sm:$0xff] }
 0x160   : > { %v2366_v47 = vadd.s32 %v2365_v48, %v2355_v24  ;;  %v1831_v3 = vshrl.u32 %v6340_v59, %v6362_v49  ;;  %v1833_v38 = vshll.u32 %v6340_v59, %v6361_v25  ;;  %v1827_v55 = vshll.u32 %v6337_v5, %v6361_v25 }
 0x161   : > { %v2241_v50 = vmul.f32 %v2240_v36, %v2238_v35  ;;  %v1834_v31 = vshrl.u32 %v6341_v21, %v6362_v49  ;;  %v1836_v7 = vshll.u32 %v6341_v21, %v6361_v25  ;;  %v1828_v39 = vshrl.u32 %v6338_v52, %v6362_v49 }
 0x162   : > { %v2367_v16 = vadd.s32 %v2366_v47, %v2357_v19  ;;  %v1837_v51 = vshrl.u32 %v6342_v12, %v6362_v49  ;;  %v1839_v26 = vshll.u32 %v6342_v12, %v6361_v25  ;;  %v2368_v15 = vmul.u32 %v4567_v10, %v2314_v60 }
 0x163   : > { %v2242_v33 = vxor.u32 2147483648, %v2241_v50  ;;  %vm2370_vm5 = vc.u32 %v4654_v46, %v4656_v14  ;;  %v1840_v41 = vshrl.u32 %v6343_v53, %v6362_v49  ;;  %v4683_v62 = vor.u32 %v1831_v3, %v1830_v37 }
 0x164   : > { %v2371_v4 = vadd.s32 1, %v2367_v16  ;;  %v1835_v63 = vor.u32 %v1834_v31, %v1833_v38  ;;  %v1838_v17 = vor.u32 %v1837_v51, %v1836_v7  ;;  %vm1842_vm6 = vcmp.lt.s32.totalorder %v6363_v13, 1 }
 0x165   : > { %v2243_v61 = vsel %vm2122_vm8, %v2242_v33, %v2241_v50  ;;  %v1841_v45 = vor.u32 %v1840_v41, %v1839_v26  ;;  %vm1845_vm7 = vcmp.lt.s32.totalorder %v6363_v13, 4  ;;  %v1818_v57 = vor.u32 8388608, %v1817_v32 }
 0x166   : > { %v4692_v10 = vsel %vm4608_vm12, %v3827_v28, %v2243_v61  ;;  %v2372_v8 = vsel %vm2370_vm5, %v2371_v4, %v2367_v16  ;;  %v4694_v54 = vor.u32 %v1828_v39, %v1827_v55  ;;  %vm1844_vm8 = vcmp.lt.s32.totalorder %v6363_v13, 3 }
 0x167   : > { %v2248_v29 = vmul.f32 %v4692_v10, %v4692_v10  ;;  %v2373_v9 = vadd.s32 %v2372_v8, %v2368_v15  ;;  %v1851_v40 = vsel %vm1845_vm7, %v1838_v17, 920167782  ;;  %v4702_v44 = vshrl.u32 %v4582_v42, 5 }
 0x168   : > { %vm1843_vm9 = vcmp.lt.s32.totalorder %v6363_v13, 2  ;;  %v1854_v1 = vsel %vm1842_vm6, %v4683_v62, %v1835_v63  ;;  %v1855_v60 = vsel %vm1845_vm7, %v1841_v45, 1326507024  ;;  %v4710_v19 = vand.u32 3, %v2264_v6 }
 0x169   : > { %v2249_v18 = vmul.f32 -0.001358992, %v2248_v29  ;;  %v2256_v24 = vmul.f32 -0.00019511016, %v2248_v29  ;;  %v2374_v48 = vadd.s32 536870912, %v2373_v9  ;;  %v1850_v35 = vsel %vm1842_vm6, %v4694_v54, %v4683_v62 }
 0x16a   : > { %v1852_v36 = vsel %vm1844_vm8, %v1835_v63, %v1851_v40  ;;  %v1856_v32 = vsel %vm1844_vm8, %v1838_v17, %v1855_v60  ;;  %v4720_v47 = vshll.u32 %v1818_v57, 8  ;;  %v4731_v7 = vand.u32 31, %v4582_v42 }
 0x16b   : > { %v2250_v25 = vadd.f32 0.041655596, %v2249_v18  ;;  %v2257_v37 = vadd.f32 0.008332121, %v2256_v24  ;;  %v4722_v3 = vshrl.u32 %v2374_v48, 30  ;;  %v1857_v6 = vsel %vm1843_vm9, %v1854_v1, %v1856_v32 }
 0x16c   : > { %v1859_v38 = vand.u32 65535, %v4720_v47  ;;  %v4728_v50 = vshrl.u32 %v4720_v47, 16  ;;  %v1861_v55 = vand.u32 65535, %v1857_v6  ;;  %v1862_v31 = vshrl.u32 %v1857_v6, 16 }
 0x16d   : > { %v2251_v16 = vmul.f32 %v2250_v25, %v2248_v29  ;;  %v2258_v39 = vmul.f32 %v2257_v37, %v2248_v29  ;;  %v2376_v51 = vshll.u32 %v4722_v3, 30  ;;  %v4735_v26 = vshrl.u32 %v4648_v58, 5 }
 0x16e   : > { %v1863_v33 = vmul.u32 %v1861_v55, %v1859_v38  ;;  %v1864_v15 = vmul.u32 %v1862_v31, %v1859_v38  ;;  %v4738_v41 = vmul.u32 %v1861_v55, %v4728_v50  ;;  %v1853_v42 = vsel %vm1843_vm9, %v1850_v35, %v1852_v36 }
 0x16f   : > { %v2252_v4 = vadd.f32 -0.4999988, %v2251_v16  ;;  %v2259_v17 = vadd.f32 -0.16666654, %v2258_v39  ;;  %v4740_v61 = vsub.s32 %v2373_v9, %v2376_v51  ;;  %vm2267_vm10 = vcmp.eq.s32.totalorder %v4710_v19, 0 }
 0x170   : > { %v1826_v45 = vshrl.u32 %v6337_v5, %v6362_v49  ;;  %v1847_v8 = vsel %vm1845_vm7, %v1835_v63, 2102212464  ;;  %v1867_v57 = vshll.u32 %v1864_v15, 16  ;;  %v1869_v40 = vshll.u32 %v4738_v41, 16 }
 0x171   : > { %v2253_v1 = vmul.f32 %v2252_v4, %v2248_v29  ;;  %v2260_v60 = vmul.f32 %v2259_v17, %v2248_v29  ;;  %vm2266_vm11 = vcmp.lt.s32.totalorder %v4710_v19, 2  ;;  %vm2277_vm12 = vcmp.lt.s32.totalorder %v6357_v56, 0 }
 0x172   : > { %vm2378_vm13 = vcmp.lt.s32.totalorder %v4740_v61, 0  ;;  %v2379_v9 = vsub.s32 0, %v4740_v61  ;;  %vm2263_vm14 = vweird.f32 %v3827_v28  ;;  %v1866_v49 = vmul.u32 %v1862_v31, %v4728_v50 }
 0x173   : > { %vm1871_vm15 = vc.u32 %v1863_v33, %v1867_v57  ;;  %v1873_v18 = vadd.s32 %v1867_v57, %v1863_v33  ;;  %v1884_v63 = vshrl.u32 %v1853_v42, 16  ;;  %v2254_v24 = vadd.f32 1.0, %v2253_v1 }
 0x174   : > { %v2261_v48 = vadd.f32 1.0, %v2260_v60  ;;  %v2380_v35 = vsel %vm2378_vm13, %v2379_v9, %v4740_v61  ;;  %v1872_v29 = vsel %vm1871_vm15, 1, %v6336_v34  ;;  %v1883_v25 = vand.u32 65535, %v1853_v42 }
 0x175   : > { %v2381_v36 = vclz %v2380_v35  ;;  %v1874_v32 = vadd.s32 %v1872_v29, %v1866_v49  ;;  %vm1875_vm0 = vc.u32 %v1873_v18, %v1869_v40  ;;  %vm2270_vm1 = vcmp.eq.s32.totalorder %v4710_v19, 2  ;;  %v6366_v35 = vld [vmem:[#allocation4_spill] sm:$0xff] }
 0x176   : > { %v2262_v37 = vmul.f32 %v2261_v48, %v4692_v10  ;;  %v2271_v6 = vxor.u32 2147483648, %v2254_v24  ;;  %v1876_v55 = vsel %vm1875_vm0, 1, %v6336_v34  ;;  %v2369_v31 = vadd.s32 %v4656_v14, %v4654_v46 }
 0x177   : > { %v3566_v16 = vadd.s32 4294967294, %v2381_v36  ;;  %v2399_v39 = vsub.s32 4, %v4722_v3  ;;  %v1846_v51 = vsel %vm1842_vm6, %v1826_v45, %v4694_v54  ;;  %v1848_v10 = vsel %vm1844_vm8, %v4683_v62, %v1847_v8 }
 0x178   : > { %v2268_v33 = vxor.u32 2147483648, %v2262_v37  ;;  %v1878_v4 = vadd.s32 %v1876_v55, %v1874_v32  ;;  %v1886_v17 = vmul.u32 %v1884_v63, %v1859_v38  ;;  %v1868_v42 = vshrl.u32 %v1864_v15, 16 }
 0x179   : > { %vm3567_vm2 = vcmp.lt.s32.totalorder %v3566_v16, 0  ;;  %v1885_v57 = vmul.u32 %v1883_v25, %v1859_v38  ;;  %v1887_v40 = vmul.u32 %v1883_v25, %v4728_v50  ;;  %v2272_v14 = vsel %vm2270_vm1, %v2271_v6, %v2262_v37 }
 0x17a   : > { %v2269_v46 = vsel %vm2267_vm10, %v2254_v24, %v2268_v33  ;;  %v2384_v1 = vsel %vm3567_vm2, 0, %v3566_v16  ;;  %v1889_v54 = vshll.u32 %v1886_v17, 16  ;;  %v2400_v15 = vsel %vm2277_vm12, %v2399_v39, %v4722_v3 }
 0x17b   : > { %v2273_v45 = vsel %vm2266_vm11, %v2269_v46, %v2272_v14  ;;  %v2385_v60 = vsub.s32 32, %v2384_v1  ;;  %v2389_v62 = vsub.s32 4294967266, %v2384_v1  ;;  %v1879_v8 = vadd.s32 %v1878_v4, %v1868_v42  ;;  %v6367_v42 = vld [vmem:[#allocation8_spill] sm:$0xff] }
 0x17c   : > { %v2274_v38 = vsel %vm2263_vm14, nan, %v2273_v45  ;;  %v1888_v9 = vmul.u32 %v1884_v63, %v4728_v50  ;;  %v1891_v49 = vshll.u32 %v1887_v40, 16  ;;  %v2386_v18 = vshll.u32 %v4740_v61, %v2384_v1 }
 0x17d   : > { %3146 = vmatpush.msra.mxu0 %v2274_v38  ;;  %v2387_v24 = vshrl.u32 %v2369_v31, %v2385_v60  ;;  %v2390_v48 = vadd.s32 127, %v2389_v62  ;;  %vm1893_vm3 = vc.u32 %v1885_v57, %v1889_v54  ;;  %vm4786_vm4 = vcmp.le.f32.partialorder %v2275_v11, 0.7853982 }
 0x17e   : > { %v1894_v3 = vsel %vm1893_vm3, 1, %v6336_v34  ;;  %v1895_v28 = vadd.s32 %v1889_v54, %v1885_v57  ;;  %v1965_v29 = vand.u32 2147483647, %v6366_v35  ;;  %v1870_v63 = vshrl.u32 %v4738_v41, 16  ;;  %v6368_v57 = vld [vmem:[#allocation13_spill] sm:$0xff] }
 0x17f   : > { %v2388_v36 = vor.u32 %v2387_v24, %v2386_v18  ;;  %v2391_v50 = vshll.u32 %v2390_v48, 23  ;;  %v1896_v32 = vadd.s32 %v1894_v3, %v1888_v9  ;;  %v4794_v61 = vand.u32 31, %v4648_v58  ;;  %v6369_v3 = vld [vmem:[#allocation12_spill] sm:$0xff] }
 0x180   : > { %v2402_v25 = vsel %vm4786_vm4, 0, %v2400_v15  ;;  %v1849_v11 = vsel %vm1843_vm9, %v1846_v51, %v1848_v10  ;;  %vm1897_vm5 = vc.u32 %v1895_v28, %v1891_v49  ;;  %v4800_v6 = vadd.s32 %v1879_v8, %v1870_v63 }
 0x181   : > { %v2392_v37 = vor.u32 4788187, %v2391_v50  ;;  %v1890_v55 = vshrl.u32 %v1886_v17, 16  ;;  %v1898_v31 = vsel %vm1897_vm5, 1, %v6336_v34  ;;  %v1892_v16 = vshrl.u32 %v1887_v40, 16 }
 0x182   : > { %v4803_v39 = vadd.s32 %v1895_v28, %v1891_v49  ;;  %v1900_v41 = vadd.s32 %v1898_v31, %v1896_v32  ;;  %v1972_v58 = vand.u32 8388607, %v1965_v29  ;;  %v2395_v4 = vcvt.s32.f32 %v2388_v36 }
 0x183   : > { %v2393_v33 = vand.u32 2147483647, %v2392_v37  ;;  %v1982_v13 = vshll.u32 %v6337_v5, %v6367_v42  ;;  %v1985_v51 = vshll.u32 %v6338_v52, %v6367_v42  ;;  %v1986_v17 = vshrl.u32 %v6340_v59, %v6368_v57 }
 0x184   : > { %v1901_v10 = vadd.s32 %v1900_v41, %v1890_v55  ;;  %v1988_v40 = vshll.u32 %v6340_v59, %v6367_v42  ;;  %v1989_v46 = vshrl.u32 %v6341_v21, %v6368_v57  ;;  %v1983_v1 = vshrl.u32 %v6338_v52, %v6368_v57 }
 0x185   : > { %v2396_v14 = vmul.f32 %v2395_v4, %v2393_v33  ;;  %v1991_v54 = vshll.u32 %v6341_v21, %v6367_v42  ;;  %v1992_v45 = vshrl.u32 %v6342_v12, %v6368_v57  ;;  %v1903_v62 = vmul.u32 %v4720_v47, %v1849_v11 }
 0x186   : > { %v1902_v60 = vadd.s32 %v1901_v10, %v1892_v16  ;;  %vm1905_vm6 = vc.u32 %v4800_v6, %v4803_v39  ;;  %v1994_v15 = vshll.u32 %v6342_v12, %v6367_v42  ;;  %v1973_v8 = vor.u32 8388608, %v1972_v58 }
 0x187   : > { %v2397_v38 = vxor.u32 2147483648, %v2396_v14  ;;  %v1993_v9 = vor.u32 %v1992_v45, %v1991_v54  ;;  %v1995_v49 = vshrl.u32 %v6343_v53, %v6368_v57  ;;  %v4830_v24 = vor.u32 %v1986_v17, %v1985_v51 }
 0x188   : > { %v1906_v18 = vadd.s32 1, %v1902_v60  ;;  %v1990_v48 = vor.u32 %v1989_v46, %v1988_v40  ;;  %vm2000_vm7 = vcmp.lt.s32.totalorder %v6369_v3, 4  ;;  %v4835_v28 = vor.u32 %v1983_v1, %v1982_v13 }
 0x189   : > { %v2398_v47 = vsel %vm2277_vm12, %v2397_v38, %v2396_v14  ;;  %v1996_v36 = vor.u32 %v1995_v49, %v1994_v15  ;;  %vm1997_vm8 = vcmp.lt.s32.totalorder %v6369_v3, 1  ;;  %v1194_v50 = vshrl.u32 %v1193_v23, 23 }
 0x18a   : > { %v4843_v63 = vsel %vm4786_vm4, %v6357_v56, %v2398_v47  ;;  %v2419_v32 = vadd.s32 3, %v2402_v25  ;;  %v1907_v11 = vsel %vm1905_vm6, %v1906_v18, %v1902_v60  ;;  %vm1999_vm9 = vcmp.lt.s32.totalorder %v6369_v3, 3 }
 0x18b   : > { %v2403_v37 = vmul.f32 %v4843_v63, %v4843_v63  ;;  %v1908_v55 = vadd.s32 %v1907_v11, %v1903_v62  ;;  %v2006_v31 = vsel %vm2000_vm7, %v1993_v9, 920167782  ;;  %vm1998_vm10 = vcmp.lt.s32.totalorder %v6369_v3, 2 }
 0x18c   : > { %v2009_v23 = vsel %vm1997_vm8, %v4830_v24, %v1990_v48  ;;  %v2010_v19 = vsel %vm2000_vm7, %v1996_v36, 1326507024  ;;  %v4859_v25 = vshll.u32 %v1973_v8, 8  ;;  %v2005_v33 = vsel %vm1997_vm8, %v4835_v28, %v4830_v24 }
 0x18d   : > { %v2404_v16 = vmul.f32 -0.001358992, %v2403_v37  ;;  %v2411_v41 = vmul.f32 -0.00019511016, %v2403_v37  ;;  %v1909_v58 = vadd.s32 536870912, %v1908_v55  ;;  %v2007_v4 = vsel %vm1999_vm9, %v1990_v48, %v2006_v31 }
 0x18e   : > { %v2011_v42 = vsel %vm1999_vm9, %v1993_v9, %v2010_v19  ;;  %v2014_v13 = vand.u32 65535, %v4859_v25  ;;  %v4871_v51 = vshrl.u32 %v4859_v25, 16  ;;  %v4879_v14 = vshrl.u32 %v1348_v22, 23 }
 0x18f   : > { %v2405_v10 = vadd.f32 0.041655596, %v2404_v16  ;;  %v2412_v17 = vadd.f32 0.008332121, %v2411_v41  ;;  %v4873_v40 = vshrl.u32 %v1909_v58, 30  ;;  %v2012_v46 = vsel %vm1998_vm10, %v2009_v23, %v2011_v42 }
 0x190   : > { %v2420_v1 = vand.u32 3, %v2419_v32  ;;  %v2016_v54 = vand.u32 65535, %v2012_v46  ;;  %v2017_v45 = vshrl.u32 %v2012_v46, 16  ;;  %v2008_v38 = vsel %vm1998_vm10, %v2005_v33, %v2007_v4 }
 0x191   : > { %v2406_v60 = vmul.f32 %v2405_v10, %v2403_v37  ;;  %v2413_v62 = vmul.f32 %v2412_v17, %v2403_v37  ;;  %v1911_v15 = vshll.u32 %v4873_v40, 30  ;;  %v4884_v8 = vadd.s32 4294967169, %v1194_v50 }
 0x192   : > { %v2018_v9 = vmul.u32 %v2016_v54, %v2014_v13  ;;  %v2019_v49 = vmul.u32 %v2017_v45, %v2014_v13  ;;  %v4887_v18 = vmul.u32 %v2016_v54, %v4871_v51  ;;  %v1981_v32 = vshrl.u32 %v6337_v5, %v6368_v57 }
 0x193   : > { %v2407_v47 = vadd.f32 -0.4999988, %v2406_v60  ;;  %v2414_v22 = vadd.f32 -0.16666654, %v2413_v62  ;;  %v4889_v36 = vsub.s32 %v1908_v55, %v1911_v15  ;;  %vm2422_vm11 = vcmp.eq.s32.totalorder %v2420_v1, 0 }
 0x194   : > { %vm2425_vm12 = vcmp.eq.s32.totalorder %v2420_v1, 2  ;;  %v2002_v11 = vsel %vm2000_vm7, %v1990_v48, 2102212464  ;;  %v2022_v31 = vshll.u32 %v2019_v49, 16  ;;  %v2024_v50 = vshll.u32 %v4887_v18, 16 }
 0x195   : > { %v2039_v23 = vshrl.u32 %v2008_v38, 16  ;;  %v2408_v19 = vmul.f32 %v2407_v47, %v2403_v37  ;;  %v2415_v16 = vmul.f32 %v2414_v22, %v2403_v37  ;;  %vm2421_vm13 = vcmp.lt.s32.totalorder %v2420_v1, 2 }
 0x196   : > { %vm1913_vm14 = vcmp.lt.s32.totalorder %v4889_v36, 0  ;;  %v1914_v55 = vsub.s32 0, %v4889_v36  ;;  %vm2418_vm15 = vweird.f32 %v6357_v56  ;;  %v2021_v57 = vmul.u32 %v2017_v45, %v4871_v51 }
 0x197   : > { %vm2026_vm0 = vc.u32 %v2018_v9, %v2022_v31  ;;  %v2028_v41 = vadd.s32 %v2022_v31, %v2018_v9  ;;  %v2038_v58 = vand.u32 65535, %v2008_v38  ;;  %v2409_v33 = vadd.f32 1.0, %v2408_v19 }
 0x198   : > { %v2416_v48 = vadd.f32 1.0, %v2415_v16  ;;  %v1915_v4 = vsel %vm1913_vm14, %v1914_v55, %v4889_v36  ;;  %v2027_v42 = vsel %vm2026_vm0, 1, %v6336_v34  ;;  %vm1812_vm1 = vcmp.lt.s32.totalorder %v6360_v2, 0 }
 0x199   : > { %v1904_v37 = vadd.s32 %v4803_v39, %v4800_v6  ;;  %v1916_v10 = vclz %v1915_v4  ;;  %v2029_v17 = vadd.s32 %v2027_v42, %v2021_v57  ;;  %vm2030_vm2 = vc.u32 %v2028_v41, %v2024_v50  ;;  %v6370_v42 = vld [vmem:[#allocation18_spill] sm:$0xff] }
 0x19a   : > { %v2417_v46 = vmul.f32 %v2416_v48, %v4843_v63  ;;  %v2426_v54 = vxor.u32 2147483648, %v2409_v33  ;;  %v2031_v45 = vsel %vm2030_vm2, 1, %v6336_v34  ;;  %v2041_v60 = vmul.u32 %v2039_v23, %v2014_v13 }
 0x19b   : > { %v3557_v62 = vadd.s32 4294967294, %v1916_v10  ;;  %v2001_v15 = vsel %vm1997_vm8, %v1981_v32, %v4835_v28  ;;  %v2003_v38 = vsel %vm1999_vm9, %v4830_v24, %v2002_v11  ;;  %v2040_v9 = vmul.u32 %v2038_v58, %v2014_v13 }
 0x19c   : > { %v2423_v6 = vxor.u32 2147483648, %v2417_v46  ;;  %v2023_v39 = vshrl.u32 %v2019_v49, 16  ;;  %v2033_v47 = vadd.s32 %v2031_v45, %v2029_v17  ;;  %v2042_v22 = vmul.u32 %v2038_v58, %v4871_v51 }
 0x19d   : > { %vm3558_vm3 = vcmp.lt.s32.totalorder %v3557_v62, 0  ;;  %v1934_v63 = vsub.s32 4, %v4873_v40  ;;  %v2025_v31 = vshrl.u32 %v4887_v18, 16  ;;  %v2044_v50 = vshll.u32 %v2041_v60, 16 }
 0x19e   : > { %v2424_v19 = vsel %vm2422_vm11, %v2409_v33, %v2423_v6  ;;  %v2427_v28 = vsel %vm2425_vm12, %v2426_v54, %v2417_v46  ;;  %v1919_v32 = vsel %vm3558_vm3, 0, %v3557_v62  ;;  %v2034_v16 = vadd.s32 %v2033_v47, %v2023_v39 }
 0x19f   : > { %v2428_v24 = vsel %vm2421_vm13, %v2424_v19, %v2427_v28  ;;  %v1920_v13 = vsub.s32 32, %v1919_v32  ;;  %v1924_v11 = vsub.s32 4294967266, %v1919_v32  ;;  %v2046_v49 = vshll.u32 %v2042_v22, 16 }
 0x1a0   : > { %v2429_v55 = vsel %vm2418_vm15, nan, %v2428_v24  ;;  %v1921_v57 = vshll.u32 %v4889_v36, %v1919_v32  ;;  %v2043_v41 = vmul.u32 %v2039_v23, %v4871_v51  ;;  %vm2048_vm4 = vc.u32 %v2040_v9, %v2044_v50 }
 0x1a1   : > { %3175 = vmatpush.msra.mxu1 %v2429_v55  ;;  %v1922_v18 = vshrl.u32 %v1904_v37, %v1920_v13  ;;  %v1925_v58 = vadd.s32 127, %v1924_v11  ;;  %v2049_v33 = vsel %vm2048_vm4, 1, %v6336_v34  ;;  %v2050_v48 = vadd.s32 %v2044_v50, %v2040_v9 }
 0x1a2   : > { %v4925_v1 = vsub.s32 32, %v4731_v7  ;;  %v1935_v4 = vsel %vm1812_vm1, %v1934_v63, %v4873_v40  ;;  %v2051_v56 = vadd.s32 %v2049_v33, %v2043_v41  ;;  %v1500_v10 = vand.u32 2147483647, %v6370_v42 }
 0x1a3   : > { %v1923_v36 = vor.u32 %v1922_v18, %v1921_v57  ;;  %v1926_v17 = vshll.u32 %v1925_v58, 23  ;;  %v4931_v51 = vadd.s32 %v2034_v16, %v2025_v31  ;;  %vm2052_vm5 = vc.u32 %v2050_v48, %v2046_v49 }
 0x1a4   : > { %v4934_v23 = vadd.s32 1, %v4884_v8  ;;  %vm4938_vm6 = vcmp.le.f32.partialorder %v1810_v0, 0.7853982  ;;  %v2004_v40 = vsel %vm1998_vm10, %v2001_v15, %v2003_v38  ;;  %v2053_v46 = vsel %vm2052_vm5, 1, %v6336_v34 }
 0x1a5   : > { %v1927_v54 = vor.u32 4788187, %v1926_v17  ;;  %v2045_v45 = vshrl.u32 %v2041_v60, 16  ;;  %v4945_v62 = vadd.s32 %v2050_v48, %v2046_v49  ;;  %v2055_v9 = vadd.s32 %v2053_v46, %v2051_v56 }
 0x1a6   : > { %v1930_v6 = vcvt.s32.f32 %v1923_v36  ;;  %v1937_v8 = vsel %vm4938_vm6, 0, %v1935_v4  ;;  %v2047_v39 = vshrl.u32 %v2042_v22, 16  ;;  %v1507_v0 = vand.u32 8388607, %v1500_v10 }
 0x1a7   : > { %v1928_v47 = vand.u32 2147483647, %v1927_v54  ;;  %v2056_v63 = vadd.s32 %v2055_v9, %v2045_v45  ;;  %vm2060_vm7 = vc.u32 %v4931_v51, %v4945_v62  ;;  %v1518_v3 = vshrl.u32 %v6338_v52, %v4925_v1 }
 0x1a8   : > { %v1520_v60 = vshll.u32 %v6338_v52, %v4731_v7  ;;  %v1521_v15 = vshrl.u32 %v6340_v59, %v4925_v1  ;;  %v1523_v38 = vshll.u32 %v6340_v59, %v4731_v7  ;;  %v1524_v22 = vshrl.u32 %v6341_v21, %v4925_v1 }
 0x1a9   : > { %v1931_v31 = vmul.f32 %v1930_v6, %v1928_v47  ;;  %v2057_v50 = vadd.s32 %v2056_v63, %v2047_v39  ;;  %v1526_v19 = vshll.u32 %v6341_v21, %v4731_v7  ;;  %v1527_v28 = vshrl.u32 %v6342_v12, %v4925_v1 }
 0x1aa   : > { %v1517_v32 = vshll.u32 %v6337_v5, %v4731_v7  ;;  %v4969_v16 = vor.u32 %v1521_v15, %v1520_v60  ;;  %v1529_v24 = vshll.u32 %v6342_v12, %v4731_v7  ;;  %v1530_v13 = vshrl.u32 %v6343_v53, %v4925_v1 }
 0x1ab   : > { %v1932_v11 = vxor.u32 2147483648, %v1931_v31  ;;  %v2061_v49 = vadd.s32 1, %v2057_v50  ;;  %v4975_v55 = vor.u32 %v1524_v22, %v1523_v38  ;;  %v1528_v57 = vor.u32 %v1527_v28, %v1526_v19 }
 0x1ac   : > { %vm1201_vm8 = vcmp.gt.s32.totalorder %v4934_v23, 0  ;;  %v2058_v41 = vmul.u32 %v4859_v25, %v2004_v40  ;;  %v1508_v18 = vor.u32 8388608, %v1507_v0  ;;  %v1531_v58 = vor.u32 %v1530_v13, %v1529_v24 }
 0x1ad   : > { %v1933_v33 = vsel %vm1812_vm1, %v1932_v11, %v1931_v31  ;;  %v1954_v48 = vadd.s32 3, %v1937_v8  ;;  %v2062_v7 = vsel %vm2060_vm7, %v2061_v49, %v2057_v50  ;;  %v4984_v4 = vor.u32 %v1518_v3, %v1517_v32 }
 0x1ae   : > { %v4989_v56 = vsel %vm4938_vm6, %v6360_v2, %v1933_v33  ;;  %v2063_v36 = vadd.s32 %v2062_v7, %v2058_v41  ;;  %vm1532_vm9 = vcmp.lt.s32.totalorder %v4702_v44, 1  ;;  %vm1535_vm10 = vcmp.lt.s32.totalorder %v4702_v44, 4 }
 0x1af   : > { %v1938_v25 = vmul.f32 %v4989_v56, %v4989_v56  ;;  %vm1533_vm11 = vcmp.lt.s32.totalorder %v4702_v44, 2  ;;  %v1541_v17 = vsel %vm1535_vm10, %v1528_v57, 920167782  ;;  %v1544_v37 = vsel %vm1532_vm9, %v4969_v16, %v4975_v55 }
 0x1b0   : > { %v2064_v40 = vadd.s32 536870912, %v2063_v36  ;;  %vm1534_vm12 = vcmp.lt.s32.totalorder %v4702_v44, 3  ;;  %v1545_v46 = vsel %vm1535_vm10, %v1531_v58, 1326507024  ;;  %v5005_v54 = vshll.u32 %v1508_v18, 8 }
 0x1b1   : > { %v1939_v45 = vmul.f32 -0.001358992, %v1938_v25  ;;  %v1946_v9 = vmul.f32 -0.00019511016, %v1938_v25  ;;  %v1540_v6 = vsel %vm1532_vm9, %v4984_v4, %v4969_v16  ;;  %v1546_v8 = vsel %vm1534_vm12, %v1528_v57, %v1545_v46 }
 0x1b2   : > { %v2065_v39 = vshrl.u32 %v2064_v40, 30  ;;  %v1542_v0 = vsel %vm1534_vm12, %v4975_v55, %v1541_v17  ;;  %v1547_v47 = vsel %vm1533_vm11, %v1544_v37, %v1546_v8  ;;  %v1549_v63 = vand.u32 65535, %v5005_v54 }
 0x1b3   : > { %v1940_v3 = vadd.f32 0.041655596, %v1939_v45  ;;  %v1947_v60 = vadd.f32 0.008332121, %v1946_v9  ;;  %v1551_v15 = vand.u32 65535, %v1547_v47  ;;  %v1552_v38 = vshrl.u32 %v1547_v47, 16 }
 0x1b4   : > { %v5020_v22 = vsub.s32 32, %v4794_v61  ;;  %v1955_v31 = vand.u32 3, %v1954_v48  ;;  %v2066_v50 = vshll.u32 %v2065_v39, 30  ;;  %v1550_v19 = vshrl.u32 %v5005_v54, 16 }
 0x1b5   : > { %v5024_v28 = vadd.s32 4294967169, %v4879_v14  ;;  %v1941_v32 = vmul.f32 %v1940_v3, %v1938_v25  ;;  %v1948_v24 = vmul.f32 %v1947_v60, %v1938_v25  ;;  %v1554_v13 = vmul.u32 %v1552_v38, %v1549_v63 }
 0x1b6   : > { %v5029_v11 = vsel %vm1201_vm8, %v4934_v23, 0  ;;  %v5031_v49 = vsub.s32 %v2063_v36, %v2066_v50  ;;  %v1543_v57 = vsel %vm1533_vm11, %v1540_v6, %v1542_v0  ;;  %v5035_v41 = vmul.u32 %v1551_v15, %v1550_v19 }
 0x1b7   : > { %v1942_v18 = vadd.f32 -0.4999988, %v1941_v32  ;;  %v1949_v58 = vadd.f32 -0.16666654, %v1948_v24  ;;  %vm1967_vm13 = vcmp.lt.s32.totalorder %v6366_v35, 0  ;;  %v1557_v14 = vshll.u32 %v1554_v13, 16 }
 0x1b8   : > { %vm1957_vm14 = vcmp.eq.s32.totalorder %v1955_v31, 0  ;;  %vm1960_vm15 = vcmp.eq.s32.totalorder %v1955_v31, 2  ;;  %vm2068_vm0 = vcmp.lt.s32.totalorder %v5031_v49, 0  ;;  %v2069_v33 = vsub.s32 0, %v5031_v49 }
 0x1b9   : > { %v2089_v23 = vsub.s32 4, %v2065_v39  ;;  %v1553_v48 = vmul.u32 %v1551_v15, %v1549_v63  ;;  %v1943_v7 = vmul.f32 %v1942_v18, %v1938_v25  ;;  %v1950_v36 = vmul.f32 %v1949_v58, %v1938_v25 }
 0x1ba   : > { %vm1956_vm1 = vcmp.lt.s32.totalorder %v1955_v31, 2  ;;  %v1556_v17 = vmul.u32 %v1552_v38, %v1550_v19  ;;  %v1574_v37 = vshrl.u32 %v1543_v57, 16  ;;  %vm1953_vm2 = vweird.f32 %v6360_v2 }
 0x1bb   : > { %v2070_v40 = vsel %vm2068_vm0, %v2069_v33, %v5031_v49  ;;  %v1559_v46 = vshll.u32 %v5035_v41, 16  ;;  %vm1561_vm3 = vc.u32 %v1553_v48, %v1557_v14  ;;  %v1563_v45 = vadd.s32 %v1557_v14, %v1553_v48 }
 0x1bc   : > { %v1944_v9 = vadd.f32 1.0, %v1943_v7  ;;  %v1951_v6 = vadd.f32 1.0, %v1950_v36  ;;  %v2071_v8 = vclz %v2070_v40  ;;  %v1562_v0 = vsel %vm1561_vm3, 1, %v6336_v34 }
 0x1bd   : > { %v2059_v47 = vadd.s32 %v4945_v62, %v4931_v51  ;;  %v1516_v25 = vshrl.u32 %v6337_v5, %v4925_v1  ;;  %v1564_v3 = vadd.s32 %v1562_v0, %v1556_v17  ;;  %v1573_v60 = vand.u32 65535, %v1543_v57 }
 0x1be   : > { %v1952_v15 = vmul.f32 %v1951_v6, %v4989_v56  ;;  %v1961_v38 = vxor.u32 2147483648, %v1944_v9  ;;  %vm5051_vm4 = vcmp.le.f32.partialorder %v1965_v29, 0.7853982  ;;  %v3560_v32 = vadd.s32 4294967294, %v2071_v8 }
 0x1bf   : > { %vm1565_vm5 = vc.u32 %v1563_v45, %v1559_v46  ;;  %v2090_v24 = vsel %vm1967_vm13, %v2089_v23, %v2065_v39  ;;  %v1537_v1 = vsel %vm1535_vm10, %v4975_v55, 2102212464  ;;  %v1576_v62 = vmul.u32 %v1574_v37, %v1549_v63 }
 0x1c0   : > { %v1566_v51 = vsel %vm1565_vm5, 1, %v6336_v34  ;;  %v1958_v56 = vxor.u32 2147483648, %v1952_v15  ;;  %vm3561_vm6 = vcmp.lt.s32.totalorder %v3560_v32, 0  ;;  %v1558_v57 = vshrl.u32 %v1554_v13, 16 }
 0x1c1   : > { %v1568_v18 = vadd.s32 %v1566_v51, %v1564_v3  ;;  %v2074_v29 = vsel %vm3561_vm6, 0, %v3560_v32  ;;  %v1575_v58 = vmul.u32 %v1573_v60, %v1549_v63  ;;  %v1577_v14 = vmul.u32 %v1573_v60, %v1550_v19  ;;  %v5067_v63 = vpop.permute.xlu0 %516 }
 0x1c2   : > { %v1579_v33 = vshll.u32 %v1576_v62, 16  ;;  %v1959_v48 = vsel %vm1957_vm14, %v1944_v9, %v1958_v56  ;;  %v1962_v7 = vsel %vm1960_vm15, %v1961_v38, %v1952_v15  ;;  %v2075_v39 = vsub.s32 32, %v2074_v29  ;;  %v6375_v38 = vld [vmem:[#allocation20_spill] sm:$0xff] }
 0x1c3   : > { %v2079_v23 = vsub.s32 4294967266, %v2074_v29  ;;  %v1963_v36 = vsel %vm1956_vm1, %v1959_v48, %v1962_v7  ;;  %v2076_v55 = vshll.u32 %v5031_v49, %v2074_v29  ;;  %v1569_v17 = vadd.s32 %v1568_v18, %v1558_v57 }
 0x1c4   : > { %v1578_v40 = vmul.u32 %v1574_v37, %v1550_v19  ;;  %v1964_v13 = vsel %vm1953_vm2, nan, %v1963_v36  ;;  %v2077_v46 = vshrl.u32 %v2059_v47, %v2075_v39  ;;  %vm1583_vm7 = vc.u32 %v1575_v58, %v1579_v33 }
 0x1c5   : > { %v2080_v45 = vadd.s32 127, %v2079_v23  ;;  %3147 = vmatpush.msra.mxu0 %v1964_v13  ;;  %v1560_v9 = vshrl.u32 %v5035_v41, 16  ;;  %v1581_v6 = vshll.u32 %v1577_v14, 16  ;;  %v1584_v8 = vsel %vm1583_vm7, 1, %v6336_v34 }
 0x1c6   : > { %v1585_v31 = vadd.s32 %v1579_v33, %v1575_v58  ;;  %v2078_v0 = vor.u32 %v2077_v46, %v2076_v55  ;;  %v1536_v19 = vsel %vm1532_vm9, %v1516_v25, %v4984_v4  ;;  %v1586_v2 = vadd.s32 %v1584_v8, %v1578_v40 }
 0x1c7   : > { %v2081_v3 = vshll.u32 %v2080_v45, 23  ;;  %v2092_v49 = vsel %vm5051_vm4, 0, %v2090_v24  ;;  %v1538_v37 = vsel %vm1534_vm12, %v4969_v16, %v1537_v1  ;;  %v5079_v47 = vadd.s32 %v1569_v17, %v1560_v9 }
 0x1c8   : > { %vm1587_vm8 = vc.u32 %v1585_v31, %v1581_v6  ;;  %v5083_v41 = vadd.f32 %v5067_v63, %v4428_v20  ;;  %v1655_v4 = vand.u32 2147483647, %v6375_v38  ;;  %v5088_v25 = vand.u32 31, %v5029_v11 }
 0x1c9   : > { %v2082_v60 = vor.u32 4788187, %v2081_v3  ;;  %v1588_v15 = vsel %vm1587_vm8, 1, %v6336_v34  ;;  %v1580_v32 = vshrl.u32 %v1576_v62, 16  ;;  %v5090_v24 = vadd.s32 %v1585_v31, %v1581_v6 }
 0x1ca   : > { %v1590_v51 = vadd.s32 %v1588_v15, %v1586_v2  ;;  %v2085_v1 = vcvt.s32.f32 %v2078_v0  ;;  %v2109_v56 = vadd.s32 3, %v2092_v49  ;;  %v1539_v57 = vsel %vm1533_vm11, %v1536_v19, %v1538_v37 }
 0x1cb   : > { %v2083_v16 = vand.u32 2147483647, %v2082_v60  ;;  %v1582_v20 = vshrl.u32 %v1577_v14, 16  ;;  %vm1595_vm9 = vc.u32 %v5079_v47, %v5090_v24  ;;  %v1676_v29 = vshrl.u32 %v6340_v59, %v5020_v22 }
 0x1cc   : > { %v1591_v18 = vadd.s32 %v1590_v51, %v1580_v32  ;;  %v1662_v62 = vand.u32 8388607, %v1655_v4  ;;  %v1673_v33 = vshrl.u32 %v6338_v52, %v5020_v22  ;;  %v1679_v48 = vshrl.u32 %v6341_v21, %v5020_v22 }
 0x1cd   : > { %v2086_v58 = vmul.f32 %v2085_v1, %v2083_v16  ;;  %v1675_v14 = vshll.u32 %v6338_v52, %v4794_v61  ;;  %v1678_v7 = vshll.u32 %v6340_v59, %v4794_v61  ;;  %v1682_v39 = vshrl.u32 %v6342_v12, %v5020_v22 }
 0x1ce   : > { %v1592_v44 = vadd.s32 %v1591_v18, %v1582_v20  ;;  %v1672_v36 = vshll.u32 %v6337_v5, %v4794_v61  ;;  %v1684_v55 = vshll.u32 %v6342_v12, %v4794_v61  ;;  %v1685_v17 = vshrl.u32 %v6343_v53, %v5020_v22 }
 0x1cf   : > { %v2087_v23 = vxor.u32 2147483648, %v2086_v58  ;;  %v5116_v13 = vor.u32 %v1676_v29, %v1675_v14  ;;  %v5118_v46 = vor.u32 %v1679_v48, %v1678_v7  ;;  %v1681_v45 = vshll.u32 %v6341_v21, %v4794_v61 }
 0x1d0   : > { %v1596_v40 = vadd.s32 1, %v1592_v44  ;;  %v1593_v6 = vmul.u32 %v5005_v54, %v1539_v57  ;;  %v1663_v8 = vor.u32 8388608, %v1662_v62  ;;  %v1686_v31 = vor.u32 %v1685_v17, %v1684_v55 }
 0x1d1   : > { %v2088_v9 = vsel %vm1967_vm13, %v2087_v23, %v2086_v58  ;;  %v5133_v19 = vor.u32 %v1673_v33, %v1672_v36  ;;  %v1683_v2 = vor.u32 %v1682_v39, %v1681_v45  ;;  %vm1687_vm10 = vcmp.lt.s32.totalorder %v4735_v26, 1 }
 0x1d2   : > { %v5128_v0 = vsel %vm5051_vm4, %v6366_v35, %v2088_v9  ;;  %v1597_v3 = vsel %vm1595_vm9, %v1596_v40, %v1592_v44  ;;  %vm1690_vm11 = vcmp.lt.s32.totalorder %v4735_v26, 4  ;;  %v5139_v54 = vand.u32 3, %v2109_v56 }
 0x1d3   : > { %v2093_v61 = vmul.f32 %v5128_v0, %v5128_v0  ;;  %v1598_v49 = vadd.s32 %v1597_v3, %v1593_v6  ;;  %vm1688_vm12 = vcmp.lt.s32.totalorder %v4735_v26, 2  ;;  %v1699_v50 = vsel %vm1687_vm10, %v5116_v13, %v5118_v46 }
 0x1d4   : > { %v1700_v37 = vsel %vm1690_vm11, %v1686_v31, 1326507024  ;;  %vm1689_vm13 = vcmp.lt.s32.totalorder %v4735_v26, 3  ;;  %v1695_v51 = vsel %vm1687_vm10, %v5133_v19, %v5116_v13  ;;  %v1696_v16 = vsel %vm1690_vm11, %v1683_v2, 920167782 }
 0x1d5   : > { %v2094_v60 = vmul.f32 -0.001358992, %v2093_v61  ;;  %v2101_v15 = vmul.f32 -0.00019511016, %v2093_v61  ;;  %v1599_v32 = vadd.s32 536870912, %v1598_v49  ;;  %v1701_v1 = vsel %vm1689_vm13, %v1683_v2, %v1700_v37 }
 0x1d6   : > { %v5157_v56 = vshll.u32 %v1663_v8, 8  ;;  %v1702_v29 = vsel %vm1688_vm12, %v1699_v50, %v1701_v1  ;;  %v1697_v39 = vsel %vm1689_vm13, %v5118_v46, %v1696_v16  ;;  %v5174_v23 = vadd.s32 1, %v5024_v28 }
 0x1d7   : > { %v2095_v57 = vadd.f32 0.041655596, %v2094_v60  ;;  %v2102_v20 = vadd.f32 0.008332121, %v2101_v15  ;;  %v5159_v18 = vshrl.u32 %v1599_v32, 30  ;;  %v1706_v33 = vand.u32 65535, %v1702_v29 }
 0x1d8   : > { %v5164_v58 = vand.u32 65535, %v5157_v56  ;;  %v5167_v62 = vshrl.u32 %v5157_v56, 16  ;;  %v1707_v48 = vshrl.u32 %v1702_v29, 16  ;;  %v5178_v36 = vadd.f32 %v5067_v63, %v4497_v30 }
 0x1d9   : > { %v2096_v44 = vmul.f32 %v2095_v57, %v2093_v61  ;;  %v2103_v14 = vmul.f32 %v2102_v20, %v2093_v61  ;;  %v1601_v7 = vshll.u32 %v5159_v18, 30  ;;  %v5185_v40 = vsub.s32 32, %v5088_v25 }
 0x1da   : > { %v1709_v55 = vmul.u32 %v1707_v48, %v5164_v58  ;;  %v5182_v17 = vmul.u32 %v1706_v33, %v5167_v62  ;;  %vm2112_vm14 = vcmp.eq.s32.totalorder %v5139_v54, 0  ;;  %v1671_v28 = vshrl.u32 %v6337_v5, %v5020_v22 }
 0x1db   : > { %v2097_v45 = vadd.f32 -0.4999988, %v2096_v44  ;;  %v2104_v9 = vadd.f32 -0.16666654, %v2103_v14  ;;  %v5187_v6 = vsub.s32 %v1598_v49, %v1601_v7  ;;  %v1698_v30 = vsel %vm1688_vm12, %v1695_v51, %v1697_v39 }
 0x1dc   : > { %v1708_v63 = vmul.u32 %v1706_v33, %v5164_v58  ;;  %v1712_v8 = vshll.u32 %v1709_v55, 16  ;;  %vm2111_vm15 = vcmp.lt.s32.totalorder %v5139_v54, 2  ;;  %vm1502_vm0 = vcmp.lt.s32.totalorder %v6370_v42, 0 }
 0x1dd   : > { %v2098_v31 = vmul.f32 %v2097_v45, %v2093_v61  ;;  %v2105_v3 = vmul.f32 %v2104_v9, %v2093_v61  ;;  %vm1603_vm1 = vcmp.lt.s32.totalorder %v5187_v6, 0  ;;  %v1604_v2 = vsub.s32 0, %v5187_v6 }
 0x1de   : > { %vm2108_vm2 = vweird.f32 %v6366_v35  ;;  %v1711_v22 = vmul.u32 %v1707_v48, %v5167_v62  ;;  %v1714_v49 = vshll.u32 %v5182_v17, 16  ;;  %vm1716_vm3 = vc.u32 %v1708_v63, %v1712_v8 }
 0x1df   : > { %v1718_v50 = vadd.s32 %v1712_v8, %v1708_v63  ;;  %v2099_v37 = vadd.f32 1.0, %v2098_v31  ;;  %v2106_v60 = vadd.f32 1.0, %v2105_v3  ;;  %v1605_v61 = vsel %vm1603_vm1, %v1604_v2, %v5187_v6 }
 0x1e0   : > { %v1717_v15 = vsel %vm1716_vm3, 1, %v6336_v34  ;;  %v1606_v32 = vclz %v1605_v61  ;;  %v1692_v51 = vsel %vm1690_vm11, %v5118_v46, 2102212464  ;;  %vm1356_vm5 = vcmp.gt.s32.totalorder %v5174_v23, 0 }
 0x1e1   : > { %v1719_v16 = vadd.s32 %v1717_v15, %v1711_v22  ;;  %vm1720_vm4 = vc.u32 %v1718_v50, %v1714_v49  ;;  %v2107_v1 = vmul.f32 %v2106_v60, %v5128_v0  ;;  %v2116_v57 = vxor.u32 2147483648, %v2099_v37 }
 0x1e2   : > { %vm5211_vm6 = vcmp.le.f32.partialorder %v1500_v10, 0.7853982  ;;  %v1721_v29 = vsel %vm1720_vm4, 1, %v6336_v34  ;;  %v1728_v33 = vand.u32 65535, %v1698_v30  ;;  %vm2115_vm7 = vcmp.eq.s32.totalorder %v5139_v54, 2 }
 0x1e3   : > { %v1594_v46 = vadd.s32 %v5090_v24, %v5079_v47  ;;  %v3551_v48 = vadd.s32 4294967294, %v1606_v32  ;;  %v1624_v44 = vsub.s32 4, %v5159_v18  ;;  %v2113_v14 = vxor.u32 2147483648, %v2107_v1 }
 0x1e4   : > { %v1691_v0 = vsel %vm1687_vm10, %v1671_v28, %v5133_v19  ;;  %v1723_v10 = vadd.s32 %v1721_v29, %v1719_v16  ;;  %v1729_v7 = vshrl.u32 %v1698_v30, 16  ;;  %v2117_v39 = vsel %vm2115_vm7, %v2116_v57, %v2107_v1 }
 0x1e5   : > { %vm3552_vm8 = vcmp.lt.s32.totalorder %v3551_v48, 0  ;;  %v1693_v45 = vsel %vm1689_vm13, %v5116_v13, %v1692_v51  ;;  %v1713_v9 = vshrl.u32 %v1709_v55, 16  ;;  %v2114_v47 = vsel %vm2112_vm14, %v2099_v37, %v2113_v14 }
 0x1e6   : > { %v1609_v24 = vsel %vm3552_vm8, 0, %v3551_v48  ;;  %v1731_v63 = vmul.u32 %v1729_v7, %v5164_v58  ;;  %v1732_v8 = vmul.u32 %v1728_v33, %v5167_v62  ;;  %v2118_v19 = vsel %vm2111_vm15, %v2114_v47, %v2117_v39 }
 0x1e7   : > { %v1610_v28 = vsub.s32 32, %v1609_v24  ;;  %v1614_v30 = vsub.s32 4294967266, %v1609_v24  ;;  %v1625_v31 = vsel %vm1502_vm0, %v1624_v44, %v5159_v18  ;;  %v2119_v13 = vsel %vm2108_vm2, nan, %v2118_v19 }
 0x1e8   : > { %v1724_v55 = vadd.s32 %v1723_v10, %v1713_v9  ;;  %v1730_v3 = vmul.u32 %v1728_v33, %v5164_v58  ;;  %v1734_v2 = vshll.u32 %v1731_v63, 16  ;;  %3176 = vmatpush.msra.mxu1 %v2119_v13  ;;  %v1611_v22 = vshll.u32 %v5187_v6, %v1609_v24 }
 0x1e9   : > { %v1612_v49 = vshrl.u32 %v1594_v46, %v1610_v28  ;;  %v1615_v50 = vadd.s32 127, %v1614_v30  ;;  %v1715_v54 = vshrl.u32 %v5182_v17, 16  ;;  %v1733_v37 = vmul.u32 %v1729_v7, %v5167_v62 }
 0x1ea   : > { %v1736_v60 = vshll.u32 %v1732_v8, 16  ;;  %vm1738_vm9 = vc.u32 %v1730_v3, %v1734_v2  ;;  %v1740_v61 = vadd.s32 %v1734_v2, %v1730_v3  ;;  %v1627_v35 = vsel %vm5211_vm6, 0, %v1625_v31 }
 0x1eb   : > { %v1613_v18 = vor.u32 %v1612_v49, %v1611_v22  ;;  %v1616_v15 = vshll.u32 %v1615_v50, 23  ;;  %v1739_v58 = vsel %vm1738_vm9, 1, %v6336_v34  ;;  %v5244_v32 = vadd.s32 %v1724_v55, %v1715_v54 }
 0x1ec   : > { %v1741_v51 = vadd.s32 %v1739_v58, %v1733_v37  ;;  %vm1742_vm10 = vc.u32 %v1740_v61, %v1736_v60  ;;  %v1190_v6 = vand.u32 2147483647, %v4342_v27  ;;  %v5248_v17 = vshrl.u32 %v5029_v11, 5 }
 0x1ed   : > { %v5253_v62 = vsel %vm1356_vm5, %v5174_v23, 0  ;;  %v1617_v16 = vor.u32 4788187, %v1616_v15  ;;  %v1743_v1 = vsel %vm1742_vm10, 1, %v6336_v34  ;;  %v1694_v57 = vsel %vm1688_vm12, %v1691_v0, %v1693_v45 }
 0x1ee   : > { %v1735_v29 = vshrl.u32 %v1731_v63, 16  ;;  %v5258_v33 = vadd.s32 %v1740_v61, %v1736_v60  ;;  %v1745_v46 = vadd.s32 %v1743_v1, %v1741_v51  ;;  %v1620_v44 = vcvt.s32.f32 %v1613_v18 }
 0x1ef   : > { %v1618_v48 = vand.u32 2147483647, %v1617_v16  ;;  %v1644_v14 = vadd.s32 3, %v1627_v35  ;;  %v1737_v11 = vshrl.u32 %v1732_v8, 16  ;;  %v1197_v23 = vand.u32 8388607, %v1190_v6 }
 0x1f0   : > { %v1746_v10 = vadd.s32 %v1745_v46, %v1735_v29  ;;  %vm1750_vm11 = vc.u32 %v5244_v32, %v5258_v33  ;;  %v1211_v7 = vshrl.u32 %v6340_v59, %v5185_v40  ;;  %v1208_v0 = vshrl.u32 %v6338_v52, %v5185_v40 }
 0x1f1   : > { %v1621_v26 = vmul.f32 %v1620_v44, %v1618_v48  ;;  %v1210_v39 = vshll.u32 %v6338_v52, %v5088_v25  ;;  %v1214_v45 = vshrl.u32 %v6341_v21, %v5185_v40  ;;  %v1213_v47 = vshll.u32 %v6340_v59, %v5088_v25 }
 0x1f2   : > { %v1747_v9 = vadd.s32 %v1746_v10, %v1737_v11  ;;  %v1216_v24 = vshll.u32 %v6341_v21, %v5088_v25  ;;  %v1217_v63 = vshrl.u32 %v6342_v12, %v5185_v40  ;;  %v1207_v19 = vshll.u32 %v6337_v5, %v5088_v25 }
 0x1f3   : > { %v1622_v8 = vxor.u32 2147483648, %v1621_v26  ;;  %v1219_v28 = vshll.u32 %v6342_v12, %v5088_v25  ;;  %v1220_v30 = vshrl.u32 %v6343_v53, %v5185_v40  ;;  %v5284_v13 = vor.u32 %v1211_v7, %v1210_v39 }
 0x1f4   : > { %v1751_v31 = vadd.s32 1, %v1747_v9  ;;  %v5286_v55 = vor.u32 %v1214_v45, %v1213_v47  ;;  %v1218_v3 = vor.u32 %v1217_v63, %v1216_v24  ;;  %v1748_v22 = vmul.u32 %v5157_v56, %v1694_v57 }
 0x1f5   : > { %v1623_v2 = vsel %vm1502_vm0, %v1622_v8, %v1621_v26  ;;  %v1198_v49 = vor.u32 8388608, %v1197_v23  ;;  %v1221_v50 = vor.u32 %v1220_v30, %v1219_v28  ;;  %v5299_v37 = vor.u32 %v1208_v0, %v1207_v19 }
 0x1f6   : > { %v5294_v25 = vsel %vm5211_vm6, %v6370_v42, %v1623_v2  ;;  %v1752_v54 = vsel %vm1750_vm11, %v1751_v31, %v1747_v9  ;;  %vm1225_vm12 = vcmp.lt.s32.totalorder %v5248_v17, 4  ;;  %vm1222_vm13 = vcmp.lt.s32.totalorder %v5248_v17, 1 }
 0x1f7   : > { %v1628_v60 = vmul.f32 %v5294_v25, %v5294_v25  ;;  %v1753_v61 = vadd.s32 %v1752_v54, %v1748_v22  ;;  %v1231_v56 = vsel %vm1225_vm12, %v1218_v3, 920167782  ;;  %v5307_v20 = vand.u32 3, %v1644_v14 }
 0x1f8   : > { %vm1223_vm14 = vcmp.lt.s32.totalorder %v5248_v17, 2  ;;  %v1234_v18 = vsel %vm1222_vm13, %v5284_v13, %v5286_v55  ;;  %v1235_v15 = vsel %vm1225_vm12, %v1221_v50, 1326507024  ;;  %vm1224_vm15 = vcmp.lt.s32.totalorder %v5248_v17, 3 }
 0x1f9   : > { %v1629_v35 = vmul.f32 -0.001358992, %v1628_v60  ;;  %v1636_v58 = vmul.f32 -0.00019511016, %v1628_v60  ;;  %v1754_v51 = vadd.s32 536870912, %v1753_v61  ;;  %v1230_v16 = vsel %vm1222_vm13, %v5299_v37, %v5284_v13 }
 0x1fa   : > { %v1232_v1 = vsel %vm1224_vm15, %v5286_v55, %v1231_v56  ;;  %v1236_v57 = vsel %vm1224_vm15, %v1218_v3, %v1235_v15  ;;  %v5326_v29 = vshll.u32 %v1198_v49, 8  ;;  %v5339_v9 = vand.u32 31, %v5253_v62 }
 0x1fb   : > { %v1630_v46 = vadd.f32 0.041655596, %v1629_v35  ;;  %v1637_v48 = vadd.f32 0.008332121, %v1636_v58  ;;  %v1755_v44 = vshrl.u32 %v1754_v51, 30  ;;  %v1237_v14 = vsel %vm1223_vm14, %v1234_v18, %v1236_v57 }
 0x1fc   : > { %v5331_v11 = vand.u32 65535, %v5326_v29  ;;  %v5334_v10 = vshrl.u32 %v5326_v29, 16  ;;  %v1241_v23 = vand.u32 65535, %v1237_v14  ;;  %v1242_v7 = vshrl.u32 %v1237_v14, 16 }
 0x1fd   : > { %v1631_v26 = vmul.f32 %v1630_v46, %v1628_v60  ;;  %v1638_v0 = vmul.f32 %v1637_v48, %v1628_v60  ;;  %v1756_v39 = vshll.u32 %v1755_v44, 30  ;;  %v1233_v45 = vsel %vm1223_vm14, %v1230_v16, %v1232_v1 }
 0x1fe   : > { %v573_v47 = vand.u32 2139095040, %v5083_v41  ;;  %v1244_v24 = vmul.u32 %v1242_v7, %v5331_v11  ;;  %v5344_v63 = vmul.u32 %v1241_v23, %v5334_v10  ;;  %vm1657_vm0 = vcmp.lt.s32.totalorder %v6375_v38, 0 }
 0x1ff   : > { %v1632_v8 = vadd.f32 -0.4999988, %v1631_v26  ;;  %v1639_v19 = vadd.f32 -0.16666654, %v1638_v0  ;;  %v5347_v28 = vsub.s32 %v1753_v61, %v1756_v39  ;;  %vm1647_vm1 = vcmp.eq.s32.totalorder %v5307_v20, 0 }
 0x200   : > { %v1206_v30 = vshrl.u32 %v6337_v5, %v5185_v40  ;;  %v1243_v31 = vmul.u32 %v1241_v23, %v5331_v11  ;;  %v1247_v3 = vshll.u32 %v1244_v24, 16  ;;  %v1264_v2 = vshrl.u32 %v1233_v45, 16 }
 0x201   : > { %v1633_v22 = vmul.f32 %v1632_v8, %v1628_v60  ;;  %v1640_v49 = vmul.f32 %v1639_v19, %v1628_v60  ;;  %vm1646_vm2 = vcmp.lt.s32.totalorder %v5307_v20, 2  ;;  %vm1758_vm3 = vcmp.lt.s32.totalorder %v5347_v28, 0 }
 0x202   : > { %v1759_v50 = vsub.s32 0, %v5347_v28  ;;  %vm1643_vm4 = vweird.f32 %v6370_v42  ;;  %v1246_v54 = vmul.u32 %v1242_v7, %v5334_v10  ;;  %v1249_v61 = vshll.u32 %v5344_v63, 16 }
 0x203   : > { %vm1251_vm5 = vc.u32 %v1243_v31, %v1247_v3  ;;  %v1253_v40 = vadd.s32 %v1247_v3, %v1243_v31  ;;  %v1634_v56 = vadd.f32 1.0, %v1633_v22  ;;  %v1641_v18 = vadd.f32 1.0, %v1640_v49 }
 0x204   : > { %v1760_v15 = vsel %vm1758_vm3, %v1759_v50, %v5347_v28  ;;  %v1252_v60 = vsel %vm1251_vm5, 1, %v6336_v34  ;;  %v1779_v58 = vsub.s32 4, %v1755_v44  ;;  %v1263_v46 = vand.u32 65535, %v1233_v45 }
 0x205   : > { %v1761_v35 = vclz %v1760_v15  ;;  %v1254_v51 = vadd.s32 %v1252_v60, %v1246_v54  ;;  %vm1255_vm6 = vc.u32 %v1253_v40, %v1249_v61  ;;  %v1642_v16 = vmul.f32 %v1641_v18, %v5294_v25 }
 0x206   : > { %v1651_v1 = vxor.u32 2147483648, %v1634_v56  ;;  %v1256_v57 = vsel %vm1255_vm6, 1, %v6336_v34  ;;  %vm1650_vm7 = vcmp.eq.s32.totalorder %v5307_v20, 2  ;;  %vm5366_vm8 = vcmp.le.f32.partialorder %v1655_v4, 0.7853982 }
 0x207   : > { %v1749_v14 = vadd.s32 %v5258_v33, %v5244_v32  ;;  %v3554_v23 = vadd.s32 4294967294, %v1761_v35  ;;  %v1226_v25 = vsel %vm1222_vm13, %v1206_v30, %v5299_v37  ;;  %v1648_v7 = vxor.u32 2147483648, %v1642_v16 }
 0x208   : > { %v1227_v26 = vsel %vm1225_vm12, %v5286_v55, 2102212464  ;;  %v1258_v0 = vadd.s32 %v1256_v57, %v1254_v51  ;;  %v1266_v39 = vmul.u32 %v1264_v2, %v5331_v11  ;;  %v1652_v4 = vsel %vm1650_vm7, %v1651_v1, %v1642_v16 }
 0x209   : > { %vm3555_vm9 = vcmp.lt.s32.totalorder %v3554_v23, 0  ;;  %v1780_v45 = vsel %vm1657_vm0, %v1779_v58, %v1755_v44  ;;  %v1248_v8 = vshrl.u32 %v1244_v24, 16  ;;  %v1649_v32 = vsel %vm1647_vm1, %v1634_v56, %v1648_v7 }
 0x20a   : > { %v1764_v33 = vsel %vm3555_vm9, 0, %v3554_v23  ;;  %v1267_v37 = vmul.u32 %v1263_v46, %v5334_v10  ;;  %v1269_v19 = vshll.u32 %v1266_v39, 16  ;;  %v1653_v30 = vsel %vm1646_vm2, %v1649_v32, %v1652_v4 }
 0x20b   : > { %v1765_v55 = vsub.s32 32, %v1764_v33  ;;  %v1769_v31 = vsub.s32 4294967266, %v1764_v33  ;;  %v1265_v3 = vmul.u32 %v1263_v46, %v5331_v11  ;;  %v1654_v22 = vsel %vm1643_vm4, nan, %v1653_v30 }
 0x20c   : > { %v1250_v44 = vshrl.u32 %v5344_v63, 16  ;;  %v1259_v24 = vadd.s32 %v1258_v0, %v1248_v8  ;;  %v1268_v49 = vmul.u32 %v1264_v2, %v5334_v10  ;;  %3148 = vmatpush.msra.mxu0 %v1654_v22  ;;  %v1766_v50 = vshll.u32 %v5347_v28, %v1764_v33  ;;  %v427_v2 = vld [vmem:[%s6262_s4 + $0x10] sm:$0xff] }
 0x20d   : > { %v1767_v54 = vshrl.u32 %v1749_v14, %v1765_v55  ;;  %v1770_v61 = vadd.s32 127, %v1769_v31  ;;  %vm1273_vm10 = vc.u32 %v1265_v3, %v1269_v19  ;;  %v1271_v20 = vshll.u32 %v1267_v37, 16  ;;  %3094 = vperm.xlu1 %3619, %v427_v2  }
 0x20e   : > { %v1274_v40 = vsel %vm1273_vm10, 1, %v6336_v34  ;;  %v1275_v56 = vadd.s32 %v1269_v19, %v1265_v3  ;;  %v1345_v11 = vand.u32 2147483647, %v4404_v43  ;;  %v1228_v63 = vsel %vm1224_vm15, %v5284_v13, %v1227_v26 }
 0x20f   : > { %v1768_v18 = vor.u32 %v1767_v54, %v1766_v50  ;;  %v1771_v42 = vshll.u32 %v1770_v61, 23  ;;  %v1276_v15 = vadd.s32 %v1274_v40, %v1268_v49  ;;  %v5398_v10 = vsub.s32 32, %v5339_v9 }
 0x210   : > { %v1782_v28 = vsel %vm5366_vm8, 0, %v1780_v45  ;;  %v5405_v60 = vadd.s32 %v1259_v24, %v1250_v44  ;;  %vm1277_vm11 = vc.u32 %v1275_v56, %v1271_v20  ;;  %v5408_v35 = vshrl.u32 %v5253_v62, 5 }
 0x211   : > { %v1772_v58 = vor.u32 4788187, %v1771_v42  ;;  %v1278_v13 = vsel %vm1277_vm11, 1, %v6336_v34  ;;  %v1352_v51 = vand.u32 8388607, %v1345_v11  ;;  %v1229_v16 = vsel %vm1223_vm14, %v1226_v25, %v1228_v63 }
 0x212   : > { %v1270_v1 = vshrl.u32 %v1266_v39, 16  ;;  %v5415_v57 = vadd.s32 %v1275_v56, %v1271_v20  ;;  %v1280_v46 = vadd.s32 %v1278_v13, %v1276_v15  ;;  %v1775_v23 = vcvt.s32.f32 %v1768_v18 }
 0x213   : > { %v1773_v14 = vand.u32 2147483647, %v1772_v58  ;;  %v1799_v7 = vadd.s32 3, %v1782_v28  ;;  %v1272_v26 = vshrl.u32 %v1267_v37, 16  ;;  %v1366_v0 = vshrl.u32 %v6340_v59, %v5398_v10 }
 0x214   : > { %v1281_v62 = vadd.s32 %v1280_v46, %v1270_v1  ;;  %vm1285_vm12 = vc.u32 %v5405_v60, %v5415_v57  ;;  %v1369_v4 = vshrl.u32 %v6341_v21, %v5398_v10  ;;  %v1353_v25 = vor.u32 8388608, %v1352_v51 }
 0x215   : > { %v1776_v17 = vmul.f32 %v1775_v23, %v1773_v14  ;;  %v1371_v39 = vshll.u32 %v6341_v21, %v5339_v9  ;;  %v1372_v45 = vshrl.u32 %v6342_v12, %v5398_v10  ;;  %v1363_v32 = vshrl.u32 %v6338_v52, %v5398_v10  ;;  %3623 = vset.pattern.permute.xlu1 %v6336_v34 }
 0x216   : > { %v1282_v8 = vadd.s32 %v1281_v62, %v1272_v26  ;;  %v1365_v33 = vshll.u32 %v6338_v52, %v5339_v9  ;;  %v1368_v37 = vshll.u32 %v6340_v59, %v5339_v9  ;;  %v1374_v55 = vshll.u32 %v6342_v12, %v5339_v9 }
 0x217   : > { %v1777_v19 = vxor.u32 2147483648, %v1776_v17  ;;  %v1373_v30 = vor.u32 %v1372_v45, %v1371_v39  ;;  %v1375_v31 = vshrl.u32 %v6343_v53, %v5398_v10  ;;  %v1362_v22 = vshll.u32 %v6337_v5, %v5339_v9 }
 0x218   : > { %v1286_v3 = vadd.s32 1, %v1282_v8  ;;  %v5439_v44 = vor.u32 %v1366_v0, %v1365_v33  ;;  %v1370_v24 = vor.u32 %v1369_v4, %v1368_v37  ;;  %v574_v49 = vshrl.u32 %v573_v47, 23 }
 0x219   : > { %v1778_v50 = vsel %vm1657_vm0, %v1777_v19, %v1776_v17  ;;  %v1283_v54 = vmul.u32 %v5326_v29, %v1229_v16  ;;  %v1376_v61 = vor.u32 %v1375_v31, %v1374_v55  ;;  %v5455_v40 = vor.u32 %v1363_v32, %v1362_v22 }
 0x21a   : > { %v5450_v20 = vsel %vm5366_vm8, %v6375_v38, %v1778_v50  ;;  %v1287_v9 = vsel %vm1285_vm12, %v1286_v3, %v1282_v8  ;;  %vm1380_vm13 = vcmp.lt.s32.totalorder %v5408_v35, 4  ;;  %vm1377_vm14 = vcmp.lt.s32.totalorder %v5408_v35, 1 }
 0x21b   : > { %v1783_v47 = vmul.f32 %v5450_v20, %v5450_v20  ;;  %v1288_v29 = vadd.s32 %v1287_v9, %v1283_v54  ;;  %v1386_v56 = vsel %vm1380_vm13, %v1373_v30, 920167782  ;;  %v5463_v48 = vand.u32 3, %v1799_v7 }
 0x21c   : > { %v1389_v18 = vsel %vm1377_vm14, %v5439_v44, %v1370_v24  ;;  %v1390_v42 = vsel %vm1380_vm13, %v1376_v61, 1326507024  ;;  %v5470_v63 = vshll.u32 %v1353_v25, 8  ;;  %vm1379_vm15 = vcmp.lt.s32.totalorder %v5408_v35, 3 }
 0x21d   : > { %v1784_v15 = vmul.f32 -0.001358992, %v1783_v47  ;;  %v1791_v28 = vmul.f32 -0.00019511016, %v1783_v47  ;;  %v1289_v2 = vadd.s32 536870912, %v1288_v29  ;;  %vm1378_vm0 = vcmp.lt.s32.totalorder %v5408_v35, 2 }
 0x21e   : > { %v1385_v58 = vsel %vm1377_vm14, %v5455_v40, %v5439_v44  ;;  %v1387_v13 = vsel %vm1379_vm15, %v1370_v24, %v1386_v56  ;;  %v1391_v51 = vsel %vm1379_vm15, %v1373_v30, %v1390_v42  ;;  %v1394_v23 = vand.u32 65535, %v5470_v63  ;;  %v6383_v35 = vld [vmem:[#allocation19_spill] sm:$0xff] }
 0x21f   : > { %v1785_v16 = vadd.f32 0.041655596, %v1784_v15  ;;  %v1792_v1 = vadd.f32 0.008332121, %v1791_v28  ;;  %v5482_v46 = vshrl.u32 %v1289_v2, 30  ;;  %v1392_v14 = vsel %vm1378_vm0, %v1389_v18, %v1391_v51 }
 0x220   : > { %v1395_v7 = vshrl.u32 %v5470_v63, 16  ;;  %v1396_v26 = vand.u32 65535, %v1392_v14  ;;  %v1397_v62 = vshrl.u32 %v1392_v14, 16  ;;  %v1388_v25 = vsel %vm1378_vm0, %v1385_v58, %v1387_v13 }
 0x221   : > { %v1786_v0 = vmul.f32 %v1785_v16, %v1783_v47  ;;  %v1793_v4 = vmul.f32 %v1792_v1, %v1783_v47  ;;  %v1291_v17 = vshll.u32 %v5482_v46, 30  ;;  %v5491_v39 = vadd.s32 4294967169, %v574_v49 }
 0x222   : > { %v1361_v45 = vshrl.u32 %v6337_v5, %v5398_v10  ;;  %v1399_v8 = vmul.u32 %v1397_v62, %v1394_v23  ;;  %v5495_v32 = vmul.u32 %v1396_v26, %v1395_v7  ;;  %v1382_v30 = vsel %vm1380_vm13, %v1370_v24, 2102212464 }
 0x223   : > { %v1787_v33 = vadd.f32 -0.4999988, %v1786_v0  ;;  %v1794_v37 = vadd.f32 -0.16666654, %v1793_v4  ;;  %v5497_v19 = vsub.s32 %v1288_v29, %v1291_v17  ;;  %vm1802_vm1 = vcmp.eq.s32.totalorder %v5463_v48, 0 }
 0x224   : > { %vm1805_vm2 = vcmp.eq.s32.totalorder %v5463_v48, 2  ;;  %v1398_v55 = vmul.u32 %v1396_v26, %v1394_v23  ;;  %v1402_v31 = vshll.u32 %v1399_v8, 16  ;;  %v1418_v3 = vand.u32 65535, %v1388_v25 }
 0x225   : > { %v1419_v22 = vshrl.u32 %v1388_v25, 16  ;;  %v1788_v49 = vmul.f32 %v1787_v33, %v1783_v47  ;;  %v1795_v10 = vmul.f32 %v1794_v37, %v1783_v47  ;;  %vm1801_vm3 = vcmp.lt.s32.totalorder %v5463_v48, 2 }
 0x226   : > { %vm1293_vm4 = vcmp.lt.s32.totalorder %v5497_v19, 0  ;;  %v1294_v50 = vsub.s32 0, %v5497_v19  ;;  %vm1798_vm5 = vweird.f32 %v6375_v38  ;;  %v1401_v54 = vmul.u32 %v1397_v62, %v1395_v7 }
 0x227   : > { %v1404_v24 = vshll.u32 %v5495_v32, 16  ;;  %vm1406_vm6 = vc.u32 %v1398_v55, %v1402_v31  ;;  %v1408_v61 = vadd.s32 %v1402_v31, %v1398_v55  ;;  %v1789_v9 = vadd.f32 1.0, %v1788_v49 }
 0x228   : > { %v1796_v29 = vadd.f32 1.0, %v1795_v10  ;;  %v1295_v56 = vsel %vm1293_vm4, %v1294_v50, %v5497_v19  ;;  %v1407_v18 = vsel %vm1406_vm6, 1, %v6336_v34  ;;  %vm1192_vm7 = vcmp.lt.s32.totalorder %v4342_v27, 0  ;;  %v6380_v10 = vld [vmem:[#allocation5_spill] sm:$0xff] }
 0x229   : > { %v1284_v47 = vadd.s32 %v5415_v57, %v5405_v60  ;;  %v1296_v42 = vclz %v1295_v56  ;;  %v1409_v15 = vadd.s32 %v1407_v18, %v1401_v54  ;;  %vm1410_vm8 = vc.u32 %v1408_v61, %v1404_v24 }
 0x22a   : > { %v1797_v28 = vmul.f32 %v1796_v29, %v5450_v20  ;;  %v1806_v2 = vxor.u32 2147483648, %v1789_v9  ;;  %v1411_v58 = vsel %vm1410_vm8, 1, %v6336_v34  ;;  %v1421_v13 = vmul.u32 %v1419_v22, %v1394_v23 }
 0x22b   : > { %v3545_v51 = vadd.s32 4294967294, %v1296_v42  ;;  %v1381_v16 = vsel %vm1377_vm14, %v1361_v45, %v5455_v40  ;;  %v1383_v1 = vsel %vm1379_vm15, %v5439_v44, %v1382_v30  ;;  %v1420_v14 = vmul.u32 %v1418_v3, %v1394_v23 }
 0x22c   : > { %v1803_v60 = vxor.u32 2147483648, %v1797_v28  ;;  %v1314_v57 = vsub.s32 4, %v5482_v46  ;;  %v1413_v26 = vadd.s32 %v1411_v58, %v1409_v15  ;;  %v1422_v62 = vmul.u32 %v1418_v3, %v1395_v7 }
 0x22d   : > { %vm3546_vm9 = vcmp.lt.s32.totalorder %v3545_v51, 0  ;;  %v1403_v20 = vshrl.u32 %v1399_v8, 16  ;;  %v1405_v0 = vshrl.u32 %v5495_v32, 16  ;;  %v1424_v4 = vshll.u32 %v1421_v13, 16 }
 0x22e   : > { %v1804_v17 = vsel %vm1802_vm1, %v1789_v9, %v1803_v60  ;;  %v1807_v40 = vsel %vm1805_vm2, %v1806_v2, %v1797_v28  ;;  %v1299_v25 = vsel %vm3546_vm9, 0, %v3545_v51  ;;  %v1423_v45 = vmul.u32 %v1419_v22, %v1395_v7 }
 0x22f   : > { %v1808_v44 = vsel %vm1801_vm3, %v1804_v17, %v1807_v40  ;;  %v1300_v23 = vsub.s32 32, %v1299_v25  ;;  %v1304_v33 = vsub.s32 4294967266, %v1299_v25  ;;  %v1414_v37 = vadd.s32 %v1413_v26, %v1403_v20 }
 0x230   : > { %v1809_v8 = vsel %vm1798_vm5, nan, %v1808_v44  ;;  %v1301_v32 = vshll.u32 %v5497_v19, %v1299_v25  ;;  %v1426_v30 = vshll.u32 %v1422_v62, 16  ;;  %vm1428_vm10 = vc.u32 %v1420_v14, %v1424_v4 }
 0x231   : > { %3177 = vmatpush.msra.mxu1 %v1809_v8  ;;  %v1302_v55 = vshrl.u32 %v1284_v47, %v1300_v23  ;;  %v1305_v31 = vadd.s32 127, %v1304_v33  ;;  %v1429_v3 = vsel %vm1428_vm10, 1, %v6336_v34  ;;  %v1430_v49 = vadd.s32 %v1424_v4, %v1420_v14 }
 0x232   : > { %v728_v7 = vand.u32 2139095040, %v5178_v36  ;;  %v1315_v48 = vsel %vm1192_vm7, %v1314_v57, %v5482_v46  ;;  %v1431_v22 = vadd.s32 %v1429_v3, %v1423_v45  ;;  %v880_v38 = vand.u32 2147483647, %v6380_v10 }
 0x233   : > { %v1303_v50 = vor.u32 %v1302_v55, %v1301_v32  ;;  %v1306_v54 = vshll.u32 %v1305_v31, 23  ;;  %v5538_v19 = vadd.s32 %v1414_v37, %v1405_v0  ;;  %vm1432_vm11 = vc.u32 %v1430_v49, %v1426_v30 }
 0x234   : > { %v5541_v24 = vadd.s32 1, %v5491_v39  ;;  %vm5545_vm12 = vcmp.le.f32.partialorder %v1190_v6, 0.7853982  ;;  %v1384_v46 = vsel %vm1378_vm0, %v1381_v16, %v1383_v1  ;;  %v1433_v9 = vsel %vm1432_vm11, 1, %v6336_v34 }
 0x235   : > { %v1307_v29 = vor.u32 4788187, %v1306_v54  ;;  %v1425_v56 = vshrl.u32 %v1421_v13, 16  ;;  %v5552_v18 = vadd.s32 %v1430_v49, %v1426_v30  ;;  %v1435_v47 = vadd.s32 %v1433_v9, %v1431_v22  ;;  %v6384_v13 = vld [vmem:[#allocation15_spill] sm:$0xff]  ;;  %v6385_v49 = vld [vmem:[#allocation14_spill] sm:$0xff] }
 0x236   : > { %v1310_v42 = vcvt.s32.f32 %v1303_v50  ;;  %v1317_v39 = vsel %vm5545_vm12, 0, %v1315_v48  ;;  %v1427_v15 = vshrl.u32 %v1422_v62, 16  ;;  %v887_v6 = vand.u32 8388607, %v880_v38 }
 0x237   : > { %v1308_v28 = vand.u32 2147483647, %v1307_v29  ;;  %v1436_v2 = vadd.s32 %v1435_v47, %v1425_v56  ;;  %vm1440_vm13 = vc.u32 %v5538_v19, %v5552_v18  ;;  %v898_v58 = vshrl.u32 %v6338_v52, %v6383_v35 }
 0x238   : > { %v900_v51 = vshll.u32 %v6338_v52, %v6384_v13  ;;  %v901_v16 = vshrl.u32 %v6340_v59, %v6383_v35  ;;  %v903_v1 = vshll.u32 %v6340_v59, %v6384_v13  ;;  %v904_v14 = vshrl.u32 %v6341_v21, %v6383_v35 }
 0x239   : > { %v1311_v60 = vmul.f32 %v1310_v42, %v1308_v28  ;;  %v1437_v57 = vadd.s32 %v1436_v2, %v1427_v15  ;;  %v906_v26 = vshll.u32 %v6341_v21, %v6384_v13  ;;  %v907_v62 = vshrl.u32 %v6342_v12, %v6383_v35 }
 0x23a   : > { %v897_v20 = vshll.u32 %v6337_v5, %v6384_v13  ;;  %v5576_v0 = vor.u32 %v901_v16, %v900_v51  ;;  %v909_v4 = vshll.u32 %v6342_v12, %v6384_v13  ;;  %v910_v17 = vshrl.u32 %v6343_v53, %v6383_v35  ;;  %v6386_v13 = vld [vmem:[#allocation17_spill] sm:$0xff] }
 0x23b   : > { %v1312_v40 = vxor.u32 2147483648, %v1311_v60  ;;  %v1441_v25 = vadd.s32 1, %v1437_v57  ;;  %v5582_v45 = vor.u32 %v904_v14, %v903_v1  ;;  %v908_v44 = vor.u32 %v907_v62, %v906_v26 }
 0x23c   : > { %vm581_vm14 = vcmp.gt.s32.totalorder %v5541_v24, 0  ;;  %v1438_v23 = vmul.u32 %v5470_v63, %v1384_v46  ;;  %v888_v33 = vor.u32 8388608, %v887_v6  ;;  %v911_v37 = vor.u32 %v910_v17, %v909_v4 }
 0x23d   : > { %v1313_v8 = vsel %vm1192_vm7, %v1312_v40, %v1311_v60  ;;  %v1334_v32 = vadd.s32 3, %v1317_v39  ;;  %v1442_v30 = vsel %vm1440_vm13, %v1441_v25, %v1437_v57  ;;  %v5591_v55 = vor.u32 %v898_v58, %v897_v20 }
 0x23e   : > { %v5596_v31 = vsel %vm5545_vm12, %v4342_v27, %v1313_v8  ;;  %v1443_v3 = vadd.s32 %v1442_v30, %v1438_v23  ;;  %vm912_vm15 = vcmp.lt.s32.totalorder %v6385_v49, 1  ;;  %vm915_vm0 = vcmp.lt.s32.totalorder %v6385_v49, 4 }
 0x23f   : > { %v1318_v63 = vmul.f32 %v5596_v31, %v5596_v31  ;;  %vm913_vm1 = vcmp.lt.s32.totalorder %v6385_v49, 2  ;;  %v921_v48 = vsel %vm915_vm0, %v908_v44, 920167782  ;;  %v924_v22 = vsel %vm912_vm15, %v5576_v0, %v5582_v45 }
 0x240   : > { %v1444_v50 = vadd.s32 536870912, %v1443_v3  ;;  %vm914_vm2 = vcmp.lt.s32.totalorder %v6385_v49, 3  ;;  %v925_v54 = vsel %vm915_vm0, %v911_v37, 1326507024  ;;  %v5612_v61 = vshll.u32 %v888_v33, 8 }
 0x241   : > { %v1319_v46 = vmul.f32 -0.001358992, %v1318_v63  ;;  %v1326_v9 = vmul.f32 -0.00019511016, %v1318_v63  ;;  %v920_v29 = vsel %vm912_vm15, %v5591_v55, %v5576_v0  ;;  %v926_v56 = vsel %vm914_vm2, %v908_v44, %v925_v54 }
 0x242   : > { %v1445_v47 = vshrl.u32 %v1444_v50, 30  ;;  %v922_v42 = vsel %vm914_vm2, %v5582_v45, %v921_v48  ;;  %v927_v39 = vsel %vm913_vm1, %v924_v22, %v926_v56  ;;  %v929_v15 = vand.u32 65535, %v5612_v61 }
 0x243   : > { %v1320_v6 = vadd.f32 0.041655596, %v1319_v46  ;;  %v1327_v28 = vadd.f32 0.008332121, %v1326_v9  ;;  %v931_v2 = vand.u32 65535, %v927_v39  ;;  %v932_v58 = vshrl.u32 %v927_v39, 16 }
 0x244   : > { %v5627_v51 = vsub.s32 32, %v6386_v13  ;;  %v1335_v16 = vand.u32 3, %v1334_v32  ;;  %v1446_v1 = vshll.u32 %v1445_v47, 30  ;;  %v930_v14 = vshrl.u32 %v5612_v61, 16 }
 0x245   : > { %v5632_v60 = vshrl.u32 %v728_v7, 23  ;;  %v1321_v57 = vmul.f32 %v1320_v6, %v1318_v63  ;;  %v1328_v26 = vmul.f32 %v1327_v28, %v1318_v63  ;;  %v934_v62 = vmul.u32 %v932_v58, %v929_v15 }
 0x246   : > { %v5637_v20 = vsel %vm581_vm14, %v5541_v24, 0  ;;  %v5639_v4 = vsub.s32 %v1443_v3, %v1446_v1  ;;  %v923_v17 = vsel %vm913_vm1, %v920_v29, %v922_v42  ;;  %v5643_v40 = vmul.u32 %v931_v2, %v930_v14 }
 0x247   : > { %v1322_v25 = vadd.f32 -0.4999988, %v1321_v57  ;;  %v1329_v44 = vadd.f32 -0.16666654, %v1328_v26  ;;  %vm1347_vm3 = vcmp.lt.s32.totalorder %v4404_v43, 0  ;;  %v937_v7 = vshll.u32 %v934_v62, 16 }
 0x248   : > { %vm1337_vm4 = vcmp.eq.s32.totalorder %v1335_v16, 0  ;;  %vm1340_vm5 = vcmp.eq.s32.totalorder %v1335_v16, 2  ;;  %vm1448_vm6 = vcmp.lt.s32.totalorder %v5639_v4, 0  ;;  %v1449_v23 = vsub.s32 0, %v5639_v4 }
 0x249   : > { %v1469_v24 = vsub.s32 4, %v1445_v47  ;;  %v933_v33 = vmul.u32 %v931_v2, %v929_v15  ;;  %v1323_v37 = vmul.f32 %v1322_v25, %v1318_v63  ;;  %v1330_v8 = vmul.f32 %v1329_v44, %v1318_v63 }
 0x24a   : > { %vm1336_vm7 = vcmp.lt.s32.totalorder %v1335_v16, 2  ;;  %v936_v32 = vmul.u32 %v932_v58, %v930_v14  ;;  %v954_v30 = vshrl.u32 %v923_v17, 16  ;;  %vm1333_vm8 = vweird.f32 %v4342_v27 }
 0x24b   : > { %v1450_v3 = vsel %vm1448_vm6, %v1449_v23, %v5639_v4  ;;  %v939_v48 = vshll.u32 %v5643_v40, 16  ;;  %vm941_vm9 = vc.u32 %v933_v33, %v937_v7  ;;  %v943_v22 = vadd.s32 %v937_v7, %v933_v33 }
 0x24c   : > { %v1324_v50 = vadd.f32 1.0, %v1323_v37  ;;  %v1331_v54 = vadd.f32 1.0, %v1330_v8  ;;  %v1451_v46 = vclz %v1450_v3  ;;  %v942_v9 = vsel %vm941_vm9, 1, %v6336_v34 }
 0x24d   : > { %v1439_v29 = vadd.s32 %v5552_v18, %v5538_v19  ;;  %v896_v63 = vshrl.u32 %v6337_v5, %v6383_v35  ;;  %v944_v56 = vadd.s32 %v942_v9, %v936_v32  ;;  %v953_v42 = vand.u32 65535, %v923_v17 }
 0x24e   : > { %v1332_v39 = vmul.f32 %v1331_v54, %v5596_v31  ;;  %v1341_v6 = vxor.u32 2147483648, %v1324_v50  ;;  %vm5659_vm10 = vcmp.le.f32.partialorder %v1345_v11, 0.7853982  ;;  %v3548_v2 = vadd.s32 4294967294, %v1451_v46 }
 0x24f   : > { %vm945_vm11 = vc.u32 %v943_v22, %v939_v48  ;;  %v1470_v58 = vsel %vm1347_vm3, %v1469_v24, %v1445_v47  ;;  %v917_v19 = vsel %vm915_vm0, %v5582_v45, 2102212464  ;;  %v956_v35 = vmul.u32 %v954_v30, %v929_v15 }
 0x250   : > { %v946_v18 = vsel %vm945_vm11, 1, %v6336_v34  ;;  %v1338_v31 = vxor.u32 2147483648, %v1332_v39  ;;  %vm3549_vm12 = vcmp.lt.s32.totalorder %v3548_v2, 0  ;;  %v938_v1 = vshrl.u32 %v934_v62, 16 }
 0x251   : > { %v948_v57 = vadd.s32 %v946_v18, %v944_v56  ;;  %v1454_v11 = vsel %vm3549_vm12, 0, %v3548_v2  ;;  %v955_v26 = vmul.u32 %v953_v42, %v929_v15  ;;  %v957_v17 = vmul.u32 %v953_v42, %v930_v14 }
 0x252   : > { %v959_v25 = vshll.u32 %v956_v35, 16  ;;  %v1339_v44 = vsel %vm1337_vm4, %v1324_v50, %v1338_v31  ;;  %v1342_v7 = vsel %vm1340_vm5, %v1341_v6, %v1332_v39  ;;  %v1455_v47 = vsub.s32 32, %v1454_v11 }
 0x253   : > { %v1459_v23 = vsub.s32 4294967266, %v1454_v11  ;;  %v1343_v24 = vsel %vm1336_vm7, %v1339_v44, %v1342_v7  ;;  %v1456_v45 = vshll.u32 %v5639_v4, %v1454_v11  ;;  %v949_v33 = vadd.s32 %v948_v57, %v938_v1 }
 0x254   : > { %v958_v37 = vmul.u32 %v954_v30, %v930_v14  ;;  %v1344_v62 = vsel %vm1333_vm8, nan, %v1343_v24  ;;  %v1457_v8 = vshrl.u32 %v1439_v29, %v1455_v47  ;;  %vm963_vm13 = vc.u32 %v955_v26, %v959_v25  ;;  %v6389_v29 = vld [vmem:[#allocation6_spill] sm:$0xff] }
 0x255   : > { %v1460_v32 = vadd.s32 127, %v1459_v23  ;;  %3149 = vmatpush.msra.mxu0 %v1344_v62  ;;  %v940_v15 = vshrl.u32 %v5643_v40, 16  ;;  %v961_v3 = vshll.u32 %v957_v17, 16  ;;  %v964_v48 = vsel %vm963_vm13, 1, %v6336_v34 }
 0x256   : > { %v965_v22 = vadd.s32 %v959_v25, %v955_v26  ;;  %v1458_v50 = vor.u32 %v1457_v8, %v1456_v45  ;;  %v916_v4 = vsel %vm912_vm15, %v896_v63, %v5591_v55  ;;  %v966_v14 = vadd.s32 %v964_v48, %v958_v37 }
 0x257   : > { %v1461_v16 = vshll.u32 %v1460_v32, 23  ;;  %v1472_v27 = vsel %vm5659_vm10, 0, %v1470_v58  ;;  %v918_v30 = vsel %vm914_vm2, %v5576_v0, %v917_v19  ;;  %v5685_v54 = vadd.s32 %v949_v33, %v940_v15 }
 0x258   : > { %vm967_vm14 = vc.u32 %v965_v22, %v961_v3  ;;  %v5688_v40 = vadd.s32 4294967169, %v5632_v60  ;;  %v1035_v56 = vand.u32 2147483647, %v6389_v29  ;;  %v5693_v55 = vand.u32 31, %v5637_v20 }
 0x259   : > { %v1462_v46 = vor.u32 4788187, %v1461_v16  ;;  %v968_v9 = vsel %vm967_vm14, 1, %v6336_v34  ;;  %v960_v63 = vshrl.u32 %v956_v35, 16  ;;  %v5695_v42 = vadd.s32 %v965_v22, %v961_v3  ;;  %v6390_v16 = vld [vmem:[#allocation16_spill] sm:$0xff] }
 0x25a   : > { %v970_v39 = vadd.s32 %v968_v9, %v966_v14  ;;  %v1465_v0 = vcvt.s32.f32 %v1458_v50  ;;  %v1489_v2 = vadd.s32 3, %v1472_v27  ;;  %v919_v58 = vsel %vm913_vm1, %v916_v4, %v918_v30 }
 0x25b   : > { %v1463_v6 = vand.u32 2147483647, %v1462_v46  ;;  %v962_v60 = vshrl.u32 %v957_v17, 16  ;;  %vm975_vm15 = vc.u32 %v5685_v54, %v5695_v42  ;;  %v1056_v18 = vshrl.u32 %v6340_v59, %v5627_v51 }
 0x25c   : > { %v971_v19 = vadd.s32 %v970_v39, %v960_v63  ;;  %v1042_v35 = vand.u32 8388607, %v1035_v56  ;;  %v1053_v1 = vshrl.u32 %v6338_v52, %v5627_v51  ;;  %v1059_v57 = vshrl.u32 %v6341_v21, %v5627_v51 }
 0x25d   : > { %v1466_v31 = vmul.f32 %v1465_v0, %v1463_v6  ;;  %v1055_v11 = vshll.u32 %v6338_v52, %v6386_v13  ;;  %v1058_v26 = vshll.u32 %v6340_v59, %v6386_v13  ;;  %v1062_v17 = vshrl.u32 %v6342_v12, %v5627_v51 }
 0x25e   : > { %v972_v49 = vadd.s32 %v971_v19, %v962_v60  ;;  %v1052_v44 = vshll.u32 %v6337_v5, %v6386_v13  ;;  %v1064_v7 = vshll.u32 %v6342_v12, %v6386_v13  ;;  %v1065_v47 = vshrl.u32 %v6343_v53, %v5627_v51 }
 0x25f   : > { %v1467_v25 = vxor.u32 2147483648, %v1466_v31  ;;  %v5721_v24 = vor.u32 %v1056_v18, %v1055_v11  ;;  %v5723_v45 = vor.u32 %v1059_v57, %v1058_v26  ;;  %v1061_v33 = vshll.u32 %v6341_v21, %v6386_v13 }
 0x260   : > { %v976_v23 = vadd.s32 1, %v972_v49  ;;  %v973_v62 = vmul.u32 %v5612_v61, %v919_v58  ;;  %v1043_v8 = vor.u32 8388608, %v1042_v35  ;;  %v1066_v32 = vor.u32 %v1065_v47, %v1064_v7 }
 0x261   : > { %v1468_v37 = vsel %vm1347_vm3, %v1467_v25, %v1466_v31  ;;  %v5738_v48 = vor.u32 %v1053_v1, %v1052_v44  ;;  %v1063_v22 = vor.u32 %v1062_v17, %v1061_v33  ;;  %vm1067_vm0 = vcmp.lt.s32.totalorder %v6390_v16, 1 }
 0x262   : > { %v5733_v15 = vsel %vm5659_vm10, %v4404_v43, %v1468_v37  ;;  %v977_v3 = vsel %vm975_vm15, %v976_v23, %v972_v49  ;;  %vm1070_vm1 = vcmp.lt.s32.totalorder %v6390_v16, 4  ;;  %v5744_v61 = vand.u32 3, %v1489_v2 }
 0x263   : > { %v1473_v13 = vmul.f32 %v5733_v15, %v5733_v15  ;;  %v978_v50 = vadd.s32 %v977_v3, %v973_v62  ;;  %vm1068_vm2 = vcmp.lt.s32.totalorder %v6390_v16, 2  ;;  %v1079_v28 = vsel %vm1067_vm0, %v5721_v24, %v5723_v45 }
 0x264   : > { %v1080_v4 = vsel %vm1070_vm1, %v1066_v32, 1326507024  ;;  %vm1069_vm3 = vcmp.lt.s32.totalorder %v6390_v16, 3  ;;  %v1075_v46 = vsel %vm1067_vm0, %v5738_v48, %v5721_v24  ;;  %v1076_v9 = vsel %vm1070_vm1, %v1063_v22, 920167782 }
 0x265   : > { %v1474_v14 = vmul.f32 -0.001358992, %v1473_v13  ;;  %v1481_v27 = vmul.f32 -0.00019511016, %v1473_v13  ;;  %v979_v30 = vadd.s32 536870912, %v978_v50  ;;  %v1081_v63 = vsel %vm1069_vm3, %v1063_v22, %v1080_v4 }
 0x266   : > { %v5762_v39 = vshll.u32 %v1043_v8, 8  ;;  %v1082_v58 = vsel %vm1068_vm2, %v1079_v28, %v1081_v63  ;;  %v1077_v49 = vsel %vm1069_vm3, %v5723_v45, %v1076_v9  ;;  %v5779_v11 = vadd.s32 1, %v5688_v40 }
 0x267   : > { %v1475_v6 = vadd.f32 0.041655596, %v1474_v14  ;;  %v1482_v0 = vadd.f32 0.008332121, %v1481_v27  ;;  %v5764_v2 = vshrl.u32 %v979_v30, 30  ;;  %v1086_v18 = vand.u32 65535, %v1082_v58 }
 0x268   : > { %v5769_v60 = vand.u32 65535, %v5762_v39  ;;  %v5772_v19 = vshrl.u32 %v5762_v39, 16  ;;  %v1087_v31 = vshrl.u32 %v1082_v58, 16  ;;  %v5786_v25 = vsub.s32 32, %v5693_v55 }
 0x269   : > { %v1476_v35 = vmul.f32 %v1475_v6, %v1473_v13  ;;  %v1483_v1 = vmul.f32 %v1482_v0, %v1473_v13  ;;  %v981_v57 = vshll.u32 %v5764_v2, 30  ;;  %vm1492_vm4 = vcmp.eq.s32.totalorder %v5744_v61, 0 }
 0x26a   : > { %v1089_v26 = vmul.u32 %v1087_v31, %v5769_v60  ;;  %v5783_v17 = vmul.u32 %v1086_v18, %v5772_v19  ;;  %v1051_v23 = vshrl.u32 %v6337_v5, %v5627_v51  ;;  %v1078_v40 = vsel %vm1068_vm2, %v1075_v46, %v1077_v49 }
 0x26b   : > { %v1477_v44 = vadd.f32 -0.4999988, %v1476_v35  ;;  %v1484_v7 = vadd.f32 -0.16666654, %v1483_v1  ;;  %v5788_v47 = vsub.s32 %v978_v50, %v981_v57  ;;  %v1088_v33 = vmul.u32 %v1086_v18, %v5769_v60 }
 0x26c   : > { %v1092_v37 = vshll.u32 %v1089_v26, 16  ;;  %vm1491_vm5 = vcmp.lt.s32.totalorder %v5744_v61, 2  ;;  %vm882_vm6 = vcmp.lt.s32.totalorder %v6380_v10, 0  ;;  %vm1488_vm8 = vweird.f32 %v4404_v43 }
 0x26d   : > { %v1478_v62 = vmul.f32 %v1477_v44, %v1473_v13  ;;  %v1485_v8 = vmul.f32 %v1484_v7, %v1473_v13  ;;  %vm983_vm7 = vcmp.lt.s32.totalorder %v5788_v47, 0  ;;  %v984_v32 = vsub.s32 0, %v5788_v47 }
 0x26e   : > { %v1091_v51 = vmul.u32 %v1087_v31, %v5772_v19  ;;  %v1094_v3 = vshll.u32 %v5783_v17, 16  ;;  %vm1096_vm9 = vc.u32 %v1088_v33, %v1092_v37  ;;  %v1098_v22 = vadd.s32 %v1092_v37, %v1088_v33 }
 0x26f   : > { %v1479_v50 = vadd.f32 1.0, %v1478_v62  ;;  %v1486_v28 = vadd.f32 1.0, %v1485_v8  ;;  %v985_v13 = vsel %vm983_vm7, %v984_v32, %v5788_v47  ;;  %v1097_v4 = vsel %vm1096_vm9, 1, %v6336_v34 }
 0x270   : > { %v986_v14 = vclz %v985_v13  ;;  %v1072_v27 = vsel %vm1070_vm1, %v5723_v45, 2102212464  ;;  %v1099_v30 = vadd.s32 %v1097_v4, %v1091_v51  ;;  %vm1100_vm10 = vc.u32 %v1098_v22, %v1094_v3 }
 0x271   : > { %vm736_vm11 = vcmp.gt.s32.totalorder %v5779_v11, 0  ;;  %v1487_v46 = vmul.f32 %v1486_v28, %v5733_v15  ;;  %v1496_v9 = vxor.u32 2147483648, %v1479_v50  ;;  %vm5812_vm12 = vcmp.le.f32.partialorder %v880_v38, 0.7853982 }
 0x272   : > { %v1101_v6 = vsel %vm1100_vm10, 1, %v6336_v34  ;;  %v1108_v0 = vand.u32 65535, %v1078_v40  ;;  %vm1495_vm13 = vcmp.eq.s32.totalorder %v5744_v61, 2  ;;  %v974_v45 = vadd.s32 %v5695_v42, %v5685_v54 }
 0x273   : > { %v3539_v58 = vadd.s32 4294967294, %v986_v14  ;;  %v1004_v18 = vsub.s32 4, %v5764_v2  ;;  %v1493_v31 = vxor.u32 2147483648, %v1487_v46  ;;  %v1071_v15 = vsel %vm1067_vm0, %v1051_v23, %v5738_v48 }
 0x274   : > { %v1103_v38 = vadd.s32 %v1101_v6, %v1099_v30  ;;  %v1109_v35 = vshrl.u32 %v1078_v40, 16  ;;  %v1497_v1 = vsel %vm1495_vm13, %v1496_v9, %v1487_v46  ;;  %v1073_v57 = vsel %vm1069_vm3, %v5721_v24, %v1072_v27 }
 0x275   : > { %vm3540_vm14 = vcmp.lt.s32.totalorder %v3539_v58, 0  ;;  %v1093_v49 = vshrl.u32 %v1089_v26, 16  ;;  %v1494_v54 = vsel %vm1492_vm4, %v1479_v50, %v1493_v31  ;;  %v1112_v7 = vmul.u32 %v1108_v0, %v5772_v19 }
 0x276   : > { %v989_v42 = vsel %vm3540_vm14, 0, %v3539_v58  ;;  %v1111_v44 = vmul.u32 %v1109_v35, %v5769_v60  ;;  %v1498_v48 = vsel %vm1491_vm5, %v1494_v54, %v1497_v1  ;;  %v1005_v33 = vsel %vm882_vm6, %v1004_v18, %v5764_v2 }
 0x277   : > { %v990_v23 = vsub.s32 32, %v989_v42  ;;  %v994_v40 = vsub.s32 4294967266, %v989_v42  ;;  %v1499_v24 = vsel %vm1488_vm8, nan, %v1498_v48  ;;  %v1104_v26 = vadd.s32 %v1103_v38, %v1093_v49 }
 0x278   : > { %v1110_v37 = vmul.u32 %v1108_v0, %v5769_v60  ;;  %v1114_v62 = vshll.u32 %v1111_v44, 16  ;;  %3178 = vmatpush.msra.mxu1 %v1499_v24  ;;  %v991_v8 = vshll.u32 %v5788_v47, %v989_v42  ;;  %v1095_v61 = vshrl.u32 %v5783_v17, 16 }
 0x279   : > { %v992_v32 = vshrl.u32 %v974_v45, %v990_v23  ;;  %v995_v51 = vadd.s32 127, %v994_v40  ;;  %v1113_v3 = vmul.u32 %v1109_v35, %v5772_v19  ;;  %v1116_v22 = vshll.u32 %v1112_v7, 16 }
 0x27a   : > { %vm1118_vm15 = vc.u32 %v1110_v37, %v1114_v62  ;;  %v1120_v50 = vadd.s32 %v1114_v62, %v1110_v37  ;;  %v1007_v43 = vsel %vm5812_vm12, 0, %v1005_v33  ;;  %v5845_v13 = vadd.s32 %v1104_v26, %v1095_v61 }
 0x27b   : > { %v993_v2 = vor.u32 %v992_v32, %v991_v8  ;;  %v996_v28 = vshll.u32 %v995_v51, 23  ;;  %v1119_v60 = vsel %vm1118_vm15, 1, %v6336_v34  ;;  %v570_v47 = vand.u32 2147483647, %v5083_v41 }
 0x27c   : > { %v1121_v4 = vadd.s32 %v1119_v60, %v1113_v3  ;;  %vm1122_vm0 = vc.u32 %v1120_v50, %v1116_v22  ;;  %v5849_v17 = vshrl.u32 %v5637_v20, 5  ;;  %v5854_v19 = vsel %vm736_vm11, %v5779_v11, 0 }
 0x27d   : > { %v997_v14 = vor.u32 4788187, %v996_v28  ;;  %v1123_v27 = vsel %vm1122_vm0, 1, %v6336_v34  ;;  %v1074_v30 = vsel %vm1068_vm2, %v1071_v15, %v1073_v57  ;;  %v1115_v46 = vshrl.u32 %v1111_v44, 16 }
 0x27e   : > { %v5859_v9 = vadd.s32 %v1120_v50, %v1116_v22  ;;  %v1125_v6 = vadd.s32 %v1123_v27, %v1121_v4  ;;  %v1000_v45 = vcvt.s32.f32 %v993_v2  ;;  %v1024_v58 = vadd.s32 3, %v1007_v43 }
 0x27f   : > { %v998_v0 = vand.u32 2147483647, %v997_v14  ;;  %v1117_v20 = vshrl.u32 %v1112_v7, 16  ;;  %v577_v11 = vand.u32 8388607, %v570_v47  ;;  %v591_v31 = vshrl.u32 %v6340_v59, %v5786_v25 }
 0x280   : > { %v1126_v18 = vadd.s32 %v1125_v6, %v1115_v46  ;;  %vm1130_vm1 = vc.u32 %v5845_v13, %v5859_v9  ;;  %v588_v15 = vshrl.u32 %v6338_v52, %v5786_v25  ;;  %v590_v38 = vshll.u32 %v6338_v52, %v5693_v55 }
 0x281   : > { %v1001_v16 = vmul.f32 %v1000_v45, %v998_v0  ;;  %v594_v35 = vshrl.u32 %v6341_v21, %v5786_v25  ;;  %v593_v57 = vshll.u32 %v6340_v59, %v5693_v55  ;;  %v596_v49 = vshll.u32 %v6341_v21, %v5693_v55 }
 0x282   : > { %v1127_v1 = vadd.s32 %v1126_v18, %v1117_v20  ;;  %v597_v54 = vshrl.u32 %v6342_v12, %v5786_v25  ;;  %v587_v44 = vshll.u32 %v6337_v5, %v5693_v55  ;;  %v599_v7 = vshll.u32 %v6342_v12, %v5693_v55 }
 0x283   : > { %v1002_v42 = vxor.u32 2147483648, %v1001_v16  ;;  %v600_v48 = vshrl.u32 %v6343_v53, %v5786_v25  ;;  %v5885_v40 = vor.u32 %v591_v31, %v590_v38  ;;  %v5887_v33 = vor.u32 %v594_v35, %v593_v57 }
 0x284   : > { %v1131_v23 = vadd.s32 1, %v1127_v1  ;;  %v598_v24 = vor.u32 %v597_v54, %v596_v49  ;;  %v1128_v37 = vmul.u32 %v5762_v39, %v1074_v30  ;;  %v578_v62 = vor.u32 8388608, %v577_v11 }
 0x285   : > { %v1003_v26 = vsel %vm882_vm6, %v1002_v42, %v1001_v16  ;;  %v601_v8 = vor.u32 %v600_v48, %v599_v7  ;;  %v5898_v51 = vor.u32 %v588_v15, %v587_v44  ;;  %vm605_vm2 = vcmp.lt.s32.totalorder %v5849_v17, 4 }
 0x286   : > { %v1006_v55 = vsel %vm5812_vm12, %v6380_v10, %v1003_v26  ;;  %v1132_v32 = vsel %vm1130_vm1, %v1131_v23, %v1127_v1  ;;  %vm602_vm3 = vcmp.lt.s32.totalorder %v5849_v17, 1  ;;  %v611_v39 = vsel %vm605_vm2, %v598_v24, 920167782 }
 0x287   : > { %v1008_v61 = vmul.f32 %v1006_v55, %v1006_v55  ;;  %v1133_v3 = vadd.s32 %v1132_v32, %v1128_v37  ;;  %v5904_v22 = vand.u32 3, %v1024_v58  ;;  %vm603_vm4 = vcmp.lt.s32.totalorder %v5849_v17, 2 }
 0x288   : > { %v614_v63 = vsel %vm602_vm3, %v5885_v40, %v5887_v33  ;;  %v615_v50 = vsel %vm605_vm2, %v601_v8, 1326507024  ;;  %vm604_vm5 = vcmp.lt.s32.totalorder %v5849_v17, 3  ;;  %v610_v60 = vsel %vm602_vm3, %v5898_v51, %v5885_v40 }
 0x289   : > { %v1009_v2 = vmul.f32 -0.001358992, %v1008_v61  ;;  %v1016_v28 = vmul.f32 -0.00019511016, %v1008_v61  ;;  %v1134_v43 = vadd.s32 536870912, %v1133_v3  ;;  %v612_v4 = vsel %vm604_vm5, %v5887_v33, %v611_v39 }
 0x28a   : > { %v616_v14 = vsel %vm604_vm5, %v598_v24, %v615_v50  ;;  %v5923_v27 = vshll.u32 %v578_v62, 8  ;;  %v613_v15 = vsel %vm603_vm4, %v610_v60, %v612_v4  ;;  %v5937_v38 = vshrl.u32 %v5854_v19, 5 }
 0x28b   : > { %v1010_v30 = vadd.f32 0.041655596, %v1009_v2  ;;  %v1017_v46 = vadd.f32 0.008332121, %v1016_v28  ;;  %v5925_v6 = vshrl.u32 %v1134_v43, 30  ;;  %v617_v0 = vsel %vm603_vm4, %v614_v63, %v616_v14 }
 0x28c   : > { %v619_v45 = vand.u32 65535, %v5923_v27  ;;  %v5931_v58 = vshrl.u32 %v5923_v27, 16  ;;  %v621_v20 = vand.u32 65535, %v617_v0  ;;  %v622_v18 = vshrl.u32 %v617_v0, 16 }
 0x28d   : > { %v1011_v11 = vmul.f32 %v1010_v30, %v1008_v61  ;;  %v1018_v31 = vmul.f32 %v1017_v46, %v1008_v61  ;;  %v1136_v16 = vshll.u32 %v5925_v6, 30  ;;  %v5943_v57 = vand.u32 31, %v5854_v19 }
 0x28e   : > { %v624_v35 = vmul.u32 %v622_v18, %v619_v45  ;;  %v5940_v1 = vmul.u32 %v621_v20, %v5931_v58  ;;  %v586_v44 = vshrl.u32 %v6337_v5, %v5786_v25  ;;  %v623_v7 = vmul.u32 %v621_v20, %v619_v45 }
 0x28f   : > { %v1012_v49 = vadd.f32 -0.4999988, %v1011_v11  ;;  %v1019_v54 = vadd.f32 -0.16666654, %v1018_v31  ;;  %v1137_v42 = vsub.s32 %v1133_v3, %v1136_v16  ;;  %v644_v23 = vshrl.u32 %v613_v15, 16 }
 0x290   : > { %v627_v48 = vshll.u32 %v624_v35, 16  ;;  %vm1026_vm6 = vcmp.lt.s32.totalorder %v5904_v22, 2  ;;  %vm1023_vm8 = vweird.f32 %v6380_v10  ;;  %v626_v19 = vmul.u32 %v622_v18, %v5931_v58 }
 0x291   : > { %v1013_v24 = vmul.f32 %v1012_v49, %v1008_v61  ;;  %v1020_v26 = vmul.f32 %v1019_v54, %v1008_v61  ;;  %vm1138_vm7 = vcmp.lt.s32.totalorder %v1137_v42, 0  ;;  %v1139_v37 = vsub.s32 0, %v1137_v42 }
 0x292   : > { %v629_v62 = vshll.u32 %v5940_v1, 16  ;;  %vm631_vm9 = vc.u32 %v623_v7, %v627_v48  ;;  %v633_v8 = vadd.s32 %v627_v48, %v623_v7  ;;  %v607_v61 = vsel %vm605_vm2, %v5887_v33, 2102212464 }
 0x293   : > { %v1014_v32 = vadd.f32 1.0, %v1013_v24  ;;  %v1021_v3 = vadd.f32 1.0, %v1020_v26  ;;  %v1140_v25 = vsel %vm1138_vm7, %v1139_v37, %v1137_v42  ;;  %v632_v39 = vsel %vm631_vm9, 1, %v6336_v34 }
 0x294   : > { %v1141_v63 = vclz %v1140_v25  ;;  %v634_v50 = vadd.s32 %v632_v39, %v626_v19  ;;  %vm635_vm10 = vc.u32 %v633_v8, %v629_v62  ;;  %v643_v60 = vand.u32 65535, %v613_v15 }
 0x295   : > { %v1022_v2 = vmul.f32 %v1021_v3, %v1006_v55  ;;  %v1031_v28 = vxor.u32 2147483648, %v1014_v32  ;;  %v636_v43 = vsel %vm635_vm10, 1, %v6336_v34  ;;  %vm1027_vm11 = vcmp.eq.s32.totalorder %v5904_v22, 0 }
 0x296   : > { %vm1030_vm12 = vcmp.eq.s32.totalorder %v5904_v22, 2  ;;  %v1129_v4 = vadd.s32 %v5859_v9, %v5845_v13  ;;  %v3542_v14 = vadd.s32 4294967294, %v1141_v63  ;;  %v606_v33 = vsel %vm602_vm3, %v586_v44, %v5898_v51 }
 0x297   : > { %v1028_v30 = vxor.u32 2147483648, %v1022_v2  ;;  %v638_v46 = vadd.s32 %v636_v43, %v634_v50  ;;  %v646_v0 = vmul.u32 %v644_v23, %v619_v45  ;;  %v1032_v55 = vsel %vm1030_vm12, %v1031_v28, %v1022_v2 }
 0x298   : > { %vm3543_vm13 = vcmp.lt.s32.totalorder %v3542_v14, 0  ;;  %v608_v20 = vsel %vm604_vm5, %v5885_v40, %v607_v61  ;;  %v628_v18 = vshrl.u32 %v624_v35, 16  ;;  %v647_v16 = vmul.u32 %v643_v60, %v5931_v58 }
 0x299   : > { %v1029_v11 = vsel %vm1027_vm11, %v1014_v32, %v1028_v30  ;;  %v1144_v31 = vsel %vm3543_vm13, 0, %v3542_v14  ;;  %v649_v13 = vshll.u32 %v646_v0, 16  ;;  %v645_v51 = vmul.u32 %v643_v60, %v619_v45 }
 0x29a   : > { %v1033_v9 = vsel %vm1026_vm6, %v1029_v11, %v1032_v55  ;;  %v1145_v15 = vsub.s32 32, %v1144_v31  ;;  %v1149_v49 = vsub.s32 4294967266, %v1144_v31  ;;  %v630_v44 = vshrl.u32 %v5940_v1, 16 }
 0x29b   : > { %v1034_v54 = vsel %vm1023_vm8, nan, %v1033_v9  ;;  %v639_v7 = vadd.s32 %v638_v46, %v628_v18  ;;  %v648_v40 = vmul.u32 %v644_v23, %v5931_v58  ;;  %v1146_v35 = vshll.u32 %v1137_v42, %v1144_v31  ;;  %v425_v42 = vld [vmem:[%s6262_s4] sm:$0xff]  ;;  %v426_v23 = vld [vmem:[%s6262_s4 + $0x8] sm:$0xff] }
 0x29c   : > { %3150 = vmatpush.msra.mxu0 %v1034_v54  ;;  %v1147_v48 = vshrl.u32 %v1129_v4, %v1145_v15  ;;  %v1150_v24 = vadd.s32 127, %v1149_v49  ;;  %vm653_vm14 = vc.u32 %v645_v51, %v649_v13  ;;  %v651_v26 = vshll.u32 %v647_v16, 16  ;;  %3052 = vperm.xlu1 %3623, %v425_v42  }
 0x29d   : > { %v654_v22 = vsel %vm653_vm14, 1, %v6336_v34  ;;  %v655_v37 = vadd.s32 %v649_v13, %v645_v51  ;;  %v725_v19 = vand.u32 2147483647, %v5178_v36  ;;  %v1159_v10 = vsub.s32 4, %v5925_v6  ;;  %3057 = vperm.xlu2 %3620, %v426_v23   ;;  %3090 = vperm.xlu0 %3621, %v426_v23  }
 0x29e   : > { %v1148_v45 = vor.u32 %v1147_v48, %v1146_v35  ;;  %v1151_v62 = vshll.u32 %v1150_v24, 23  ;;  %v656_v8 = vadd.s32 %v654_v22, %v648_v40  ;;  %v5977_v1 = vsub.s32 32, %v5943_v57  ;;  %v3630_v22 = vld [vmem:[%s6262_s4 + $0x10] sm:$0xff] }
 0x29f   : > { %vm5981_vm15 = vcmp.le.f32.partialorder %v1035_v56, 0.7853982  ;;  %v5991_v32 = vadd.s32 %v639_v7, %v630_v44  ;;  %vm657_vm0 = vc.u32 %v655_v37, %v651_v26  ;;  %vm1037_vm1 = vcmp.lt.s32.totalorder %v6389_v29, 0 }
 0x2a0   : > { %v1152_v3 = vor.u32 4788187, %v1151_v62  ;;  %v658_v56 = vsel %vm657_vm0, 1, %v6336_v34  ;;  %v732_v25 = vand.u32 8388607, %v725_v19  ;;  %v609_v39 = vsel %vm603_vm4, %v606_v33, %v608_v20 }
 0x2a1   : > { %v650_v63 = vshrl.u32 %v646_v0, 16  ;;  %v5999_v61 = vadd.s32 %v655_v37, %v651_v26  ;;  %v660_v50 = vadd.s32 %v658_v56, %v656_v8  ;;  %v1155_v28 = vcvt.s32.f32 %v1148_v45 }
 0x2a2   : > { %v1153_v2 = vand.u32 2147483647, %v1152_v3  ;;  %v1160_v43 = vsel %vm1037_vm1, %v1159_v10, %v5925_v6  ;;  %v652_v60 = vshrl.u32 %v647_v16, 16  ;;  %v746_v17 = vshrl.u32 %v6340_v59, %v5977_v1 }
 0x2a3   : > { %v661_v4 = vadd.s32 %v660_v50, %v650_v63  ;;  %vm665_vm2 = vc.u32 %v5991_v32, %v5999_v61  ;;  %v749_v14 = vshrl.u32 %v6341_v21, %v5977_v1  ;;  %v733_v33 = vor.u32 8388608, %v732_v25 }
 0x2a4   : > { %v1156_v30 = vmul.f32 %v1155_v28, %v1153_v2  ;;  %v751_v46 = vshll.u32 %v6341_v21, %v5943_v57  ;;  %v752_v0 = vshrl.u32 %v6342_v12, %v5977_v1  ;;  %v743_v55 = vshrl.u32 %v6338_v52, %v5977_v1 }
 0x2a5   : > { %v662_v6 = vadd.s32 %v661_v4, %v652_v60  ;;  %v745_v20 = vshll.u32 %v6338_v52, %v5943_v57  ;;  %v748_v18 = vshll.u32 %v6340_v59, %v5943_v57  ;;  %v754_v16 = vshll.u32 %v6342_v12, %v5943_v57  ;;  %3622 = vset.pattern.permute.xlu0 %v6336_v34 }
 0x2a6   : > { %v1157_v11 = vxor.u32 2147483648, %v1156_v30  ;;  %v753_v31 = vor.u32 %v752_v0, %v751_v46  ;;  %v755_v21 = vshrl.u32 %v6343_v53, %v5977_v1  ;;  %v742_v9 = vshll.u32 %v6337_v5, %v5943_v57  ;;  %3062 = vperm.xlu0 %3622, %v3630_v22  }
 0x2a7   : > { %v666_v13 = vadd.s32 1, %v662_v6  ;;  %v6026_v15 = vor.u32 %v746_v17, %v745_v20  ;;  %v6028_v49 = vor.u32 %v749_v14, %v748_v18  ;;  %v1162_v59 = vsel %vm5981_vm15, 0, %v1160_v43 }
 0x2a8   : > { %v1158_v52 = vsel %vm1037_vm1, %v1157_v11, %v1156_v30  ;;  %v663_v51 = vmul.u32 %v5923_v27, %v609_v39  ;;  %v756_v12 = vor.u32 %v755_v21, %v754_v16  ;;  %v6395_v54 = vmov 1  }
 0x2a9   : > { %3624 = vset.pattern.permute.xlu2 %v6395_v54  ;;  %v1161_v53 = vsel %vm5981_vm15, %v6389_v29, %v1158_v52  ;;  %v667_v57 = vsel %vm665_vm2, %v666_v13, %v662_v6  ;;  %v6042_v44 = vor.u32 %v743_v55, %v742_v9  ;;  %vm760_vm3 = vcmp.lt.s32.totalorder %v5937_v38, 4 }
 0x2aa   : > { %3086 = vperm.xlu2 %3624, %v425_v42   ;;  %v1163_v7 = vmul.f32 %v1161_v53, %v1161_v53  ;;  %v668_v40 = vadd.s32 %v667_v57, %v663_v51  ;;  %vm757_vm4 = vcmp.lt.s32.totalorder %v5937_v38, 1  ;;  %v766_v27 = vsel %vm760_vm3, %v753_v31, 920167782 }
 0x2ab   : > { %v1179_v35 = vadd.s32 3, %v1162_v59  ;;  %v769_v48 = vsel %vm757_vm4, %v6026_v15, %v6028_v49  ;;  %v770_v24 = vsel %vm760_vm3, %v756_v12, 1326507024  ;;  %v6055_v26 = vshll.u32 %v733_v33, 8 }
 0x2ac   : > { %v1164_v37 = vmul.f32 -0.001358992, %v1163_v7  ;;  %v1171_v45 = vmul.f32 -0.00019511016, %v1163_v7  ;;  %v669_v62 = vadd.s32 536870912, %v668_v40  ;;  %vm759_vm5 = vcmp.lt.s32.totalorder %v5937_v38, 3 }
 0x2ad   : > { %vm758_vm6 = vcmp.lt.s32.totalorder %v5937_v38, 2  ;;  %v765_v10 = vsel %vm757_vm4, %v6042_v44, %v6026_v15  ;;  %v767_v8 = vsel %vm759_vm5, %v6028_v49, %v766_v27  ;;  %v771_v58 = vsel %vm759_vm5, %v753_v31, %v770_v24 }
 0x2ae   : > { %v1165_v42 = vadd.f32 0.041655596, %v1164_v37  ;;  %v1172_v23 = vadd.f32 0.008332121, %v1171_v45  ;;  %v6071_v3 = vshrl.u32 %v669_v62, 30  ;;  %v772_v56 = vsel %vm758_vm6, %v769_v48, %v771_v58 }
 0x2af   : > { %v774_v25 = vand.u32 65535, %v6055_v26  ;;  %v775_v39 = vshrl.u32 %v6055_v26, 16  ;;  %v776_v63 = vand.u32 65535, %v772_v56  ;;  %v777_v50 = vshrl.u32 %v772_v56, 16 }
 0x2b0   : > { %v1166_v2 = vmul.f32 %v1165_v42, %v1163_v7  ;;  %v1173_v28 = vmul.f32 %v1172_v23, %v1163_v7  ;;  %v671_v43 = vshll.u32 %v6071_v3, 30  ;;  %v768_v60 = vsel %vm758_vm6, %v765_v10, %v767_v8 }
 0x2b1   : > { %v779_v4 = vmul.u32 %v777_v50, %v774_v25  ;;  %v6080_v17 = vmul.u32 %v776_v63, %v775_v39  ;;  %v1180_v33 = vand.u32 3, %v1179_v35  ;;  %v778_v0 = vmul.u32 %v776_v63, %v774_v25 }
 0x2b2   : > { %3625 = vset.pattern.permute.xlu2 %v6336_v34  ;;  %v1167_v14 = vadd.f32 -0.4999988, %v1166_v2  ;;  %v1174_v30 = vadd.f32 -0.16666654, %v1173_v28  ;;  %v672_v46 = vsub.s32 %v668_v40, %v671_v43  ;;  %v798_v55 = vand.u32 65535, %v768_v60 }
 0x2b3   : > { %v782_v6 = vshll.u32 %v779_v4, 16  ;;  %v799_v20 = vshrl.u32 %v768_v60, 16  ;;  %v781_v16 = vmul.u32 %v777_v50, %v775_v39  ;;  %v784_v21 = vshll.u32 %v6080_v17, 16 }
 0x2b4   : > { %v1168_v18 = vmul.f32 %v1167_v14, %v1163_v7  ;;  %v1175_v11 = vmul.f32 %v1174_v30, %v1163_v7  ;;  %vm673_vm7 = vcmp.lt.s32.totalorder %v672_v46, 0  ;;  %v674_v31 = vsub.s32 0, %v672_v46 }
 0x2b5   : > { %vm786_vm8 = vc.u32 %v778_v0, %v782_v6  ;;  %v788_v13 = vadd.s32 %v782_v6, %v778_v0  ;;  %vm1178_vm9 = vweird.f32 %v6389_v29  ;;  %v801_v7 = vmul.u32 %v799_v20, %v774_v25 }
 0x2b6   : > { %v1169_v9 = vadd.f32 1.0, %v1168_v18  ;;  %v1176_v52 = vadd.f32 1.0, %v1175_v11  ;;  %v675_v59 = vsel %vm673_vm7, %v674_v31, %v672_v46  ;;  %v787_v51 = vsel %vm786_vm8, 1, %v6336_v34 }
 0x2b7   : > { %v676_v12 = vclz %v675_v59  ;;  %vm790_vm10 = vc.u32 %v788_v13, %v784_v21  ;;  %v789_v27 = vadd.s32 %v787_v51, %v781_v16  ;;  %vm1181_vm11 = vcmp.lt.s32.totalorder %v1180_v33, 2 }
 0x2b8   : > { %v1177_v57 = vmul.f32 %v1176_v52, %v1161_v53  ;;  %v1186_v40 = vxor.u32 2147483648, %v1169_v9  ;;  %vm1182_vm12 = vcmp.eq.s32.totalorder %v1180_v33, 0  ;;  %v791_v48 = vsel %vm790_vm10, 1, %v6336_v34 }
 0x2b9   : > { %v3533_v35 = vadd.s32 4294967294, %v676_v12  ;;  %vm1185_vm13 = vcmp.eq.s32.totalorder %v1180_v33, 2  ;;  %v664_v22 = vadd.s32 %v5999_v61, %v5991_v32  ;;  %v802_v37 = vmul.u32 %v798_v55, %v775_v39 }
 0x2ba   : > { %v1183_v24 = vxor.u32 2147483648, %v1177_v57  ;;  %v783_v45 = vshrl.u32 %v779_v4, 16  ;;  %v800_v62 = vmul.u32 %v798_v55, %v774_v25  ;;  %v804_v10 = vshll.u32 %v801_v7, 16 }
 0x2bb   : > { %vm3534_vm14 = vcmp.lt.s32.totalorder %v3533_v35, 0  ;;  %v1187_v53 = vsel %vm1185_vm13, %v1186_v40, %v1177_v57  ;;  %v793_v42 = vadd.s32 %v791_v48, %v789_v27  ;;  %v803_v50 = vmul.u32 %v799_v20, %v775_v39 }
 0x2bc   : > { %v1184_v8 = vsel %vm1182_vm12, %v1169_v9, %v1183_v24  ;;  %v679_v58 = vsel %vm3534_vm14, 0, %v3533_v35  ;;  %v806_v43 = vshll.u32 %v802_v37, 16  ;;  %vm808_vm15 = vc.u32 %v800_v62, %v804_v10 }
 0x2bd   : > { %v1188_v23 = vsel %vm1181_vm11, %v1184_v8, %v1187_v53  ;;  %v680_v56 = vsub.s32 32, %v679_v58  ;;  %v684_v63 = vsub.s32 4294967266, %v679_v58  ;;  %v681_v28 = vshll.u32 %v672_v46, %v679_v58 }
 0x2be   : > { %v1189_v2 = vsel %vm1178_vm9, nan, %v1188_v23  ;;  %v809_v25 = vsel %vm808_vm15, 1, %v6336_v34  ;;  %v810_v60 = vadd.s32 %v804_v10, %v800_v62  ;;  %v794_v4 = vadd.s32 %v793_v42, %v783_v45 }
 0x2bf   : > { %3179 = vmatpush.msra.mxu1 %v1189_v2  ;;  %v682_v32 = vshrl.u32 %v664_v22, %v680_v56  ;;  %v685_v61 = vadd.s32 127, %v684_v63  ;;  %v811_v14 = vadd.s32 %v809_v25, %v803_v50  ;;  %v762_v39 = vsel %vm760_vm3, %v6028_v49, 2102212464 }
 0x2c0   : > { %vm812_vm0 = vc.u32 %v810_v60, %v806_v43  ;;  %v741_v29 = vshrl.u32 %v6337_v5, %v5977_v1  ;;  %v785_v46 = vshrl.u32 %v6080_v17, 16  ;;  %v805_v55 = vshrl.u32 %v801_v7, 16 }
 0x2c1   : > { %v683_v30 = vor.u32 %v682_v32, %v681_v28  ;;  %v686_v33 = vshll.u32 %v685_v61, 23  ;;  %v813_v0 = vsel %vm812_vm0, 1, %v6336_v34  ;;  %v763_v11 = vsel %vm759_vm5, %v6026_v15, %v762_v39 }
 0x2c2   : > { %v815_v20 = vadd.s32 %v813_v0, %v811_v14  ;;  %v761_v18 = vsel %vm757_vm4, %v741_v29, %v6042_v44  ;;  %v795_v49 = vadd.s32 %v794_v4, %v785_v46  ;;  %v807_v21 = vshrl.u32 %v802_v37, 16 }
 0x2c3   : > { %v687_v6 = vor.u32 4788187, %v686_v33  ;;  %v690_v16 = vcvt.s32.f32 %v683_v30  ;;  %v814_v1 = vadd.s32 %v810_v60, %v806_v43  ;;  %v764_v13 = vsel %vm758_vm6, %v761_v18, %v763_v11 }
 0x2c4   : > { %v816_v5 = vadd.s32 %v815_v20, %v805_v55  ;;  %vm572_vm2 = vcmp.lt.s32.totalorder %v5083_v41, 0  ;;  %v818_v44 = vmul.u32 %v6055_v26, %v764_v13  ;;  %vm6112_vm3 = vcmp.le.f32.partialorder %v570_v47, 0.7853982 }
 0x2c5   : > { %v688_v31 = vand.u32 2147483647, %v687_v6  ;;  %vm820_vm1 = vc.u32 %v795_v49, %v814_v1  ;;  %v694_v12 = vsub.s32 4, %v6071_v3  ;;  %v819_v4 = vadd.s32 %v814_v1, %v795_v49  ;;  %v6140_v1 = vld [vmem:[%s6263_s5 + $0x8] sm:$0xff] }
 0x2c6   : > { %v817_v9 = vadd.s32 %v816_v5, %v807_v21  ;;  %vm713_vm9 = vweird.f32 %v5083_v41  ;;  %vm3123_vm10 = vcmask 523264   ;;  %vm727_vm11 = vcmp.lt.s32.totalorder %v5178_v36, 0 }
 0x2c7   : > { %v691_v17 = vmul.f32 %v690_v16, %v688_v31  ;;  %v695_v35 = vsel %vm572_vm2, %v694_v12, %v6071_v3  ;;  %v6130_v31 = vld [vmem:[%s6263_s5] sm:$0xff]  ;;  %vm6145_vm12 = vcmp.le.f32.partialorder %v725_v19, 0.7853982  ;;  %vm868_vm0 = vweird.f32 %v5178_v36 }
 0x2c8   : > { %v821_v59 = vadd.s32 1, %v817_v9  ;;  %v697_v37 = vsel %vm6112_vm3, 0, %v695_v35 }
 0x2c9   : > { %v692_v52 = vxor.u32 2147483648, %v691_v17  ;;  %v714_v42 = vadd.s32 3, %v697_v37 }
 0x2ca   : > { %v822_v57 = vsel %vm820_vm1, %v821_v59, %v817_v9  ;;  %v435_v59 = vld [vmem:[%s6264_s6 + $0x10] sm:$0xff]  ;;  %vm3258_vm1 = vcmask 261120  }
 0x2cb   : > { %v693_v51 = vsel %vm572_vm2, %v692_v52, %v691_v17  ;;  %v823_v40 = vadd.s32 %v822_v57, %v818_v44  ;;  %v715_v28 = vand.u32 3, %v714_v42  ;;  %v433_v52 = vld [vmem:[%s6264_s6] sm:$0xff]  ;;  %3214 = vperm.xlu2 %3625, %v435_v59   ;;  %vm3442_vm2 = vcmask 1040384  }
 0x2cc   : > { %v696_v38 = vsel %vm6112_vm3, %v5083_v41, %v693_v51  ;;  %v436_v41 = vld [vmem:[%s6264_s6 + $0x18] sm:$0xff] }
 0x2cd   : > { %v698_v27 = vmul.f32 %v696_v38, %v696_v38  ;;  %v824_v7 = vadd.s32 536870912, %v823_v40  ;;  %vm716_vm5 = vcmp.lt.s32.totalorder %v715_v28, 2  ;;  %vm717_vm7 = vcmp.eq.s32.totalorder %v715_v28, 0  ;;  %3219 = vperm.xlu1 %3623, %v436_v41  }
 0x2ce   : > { %vm720_vm8 = vcmp.eq.s32.totalorder %v715_v28, 2 }
 0x2cf   : > { %v699_v26 = vmul.f32 -0.001358992, %v698_v27  ;;  %v706_v48 = vmul.f32 -0.00019511016, %v698_v27  ;;  %v6121_v24 = vshrl.u32 %v824_v7, 30 }
 0x2d1   : > { %v700_v47 = vadd.f32 0.041655596, %v699_v26  ;;  %v707_v22 = vadd.f32 0.008332121, %v706_v48  ;;  %v826_v45 = vshll.u32 %v6121_v24, 30  ;;  %v849_v44 = vsub.s32 4, %v6121_v24 }
 0x2d2   : > { %v442_v48 = vld [vmem:[%s6266_s8 + $0x8] sm:$0xff] }
 0x2d3   : > { %v701_v62 = vmul.f32 %v700_v47, %v698_v27  ;;  %v708_v10 = vmul.f32 %v707_v22, %v698_v27  ;;  %v827_v8 = vsub.s32 %v823_v40, %v826_v45  ;;  %v850_v57 = vsel %vm727_vm11, %v849_v44, %v6121_v24  ;;  %v434_v24 = vld [vmem:[%s6264_s6 + $0x8] sm:$0xff]  ;;  %v441_v47 = vld [vmem:[%s6266_s8] sm:$0xff] }
 0x2d4   : > { %v852_v7 = vsel %vm6145_vm12, 0, %v850_v57  ;;  %3209 = vperm.xlu0 %3622, %v434_v24   ;;  %3240 = vperm.xlu2 %3625, %v441_v47  }
 0x2d5   : > { %v702_v53 = vadd.f32 -0.4999988, %v701_v62  ;;  %v709_v58 = vadd.f32 -0.16666654, %v708_v10  ;;  %vm828_vm4 = vcmp.lt.s32.totalorder %v827_v8, 0  ;;  %v829_v23 = vsub.s32 0, %v827_v8  ;;  %3204 = vperm.xlu1 %3623, %v433_v52  }
 0x2d6   : > { %v869_v45 = vadd.s32 3, %v852_v7 }
 0x2d7   : > { %v703_v3 = vmul.f32 %v702_v53, %v698_v27  ;;  %v710_v56 = vmul.f32 %v709_v58, %v698_v27  ;;  %v830_v63 = vsel %vm828_vm4, %v829_v23, %v827_v8 }
 0x2d8   : > { %v831_v43 = vclz %v830_v63  ;;  %v870_v42 = vand.u32 3, %v869_v45  ;;  %v443_v63 = vld [vmem:[%s6266_s8 + $0x10] sm:$0xff] }
 0x2d9   : > { %v704_v50 = vadd.f32 1.0, %v703_v3  ;;  %v711_v2 = vadd.f32 1.0, %v710_v56  ;;  %v445_v56 = vld [vmem:[%s6267_s9] sm:$0xff] }
 0x2da   : > { %v3536_v25 = vadd.s32 4294967294, %v831_v43  ;;  %vm872_vm13 = vcmp.eq.s32.totalorder %v870_v42, 0  ;;  %vm875_vm14 = vcmp.eq.s32.totalorder %v870_v42, 2  ;;  %vm871_vm15 = vcmp.lt.s32.totalorder %v870_v42, 2 }
 0x2db   : > { %v712_v32 = vmul.f32 %v711_v2, %v696_v38  ;;  %v721_v61 = vxor.u32 2147483648, %v704_v50  ;;  %v431_v38 = vld [vmem:[%s6263_s5 + $0x10] sm:$0xff] }
 0x2dc   : > { %vm3537_vm6 = vcmp.lt.s32.totalorder %v3536_v25, 0  ;;  %3250 = vperm.xlu2 %3625, %v443_v63  }
 0x2dd   : > { %v718_v60 = vxor.u32 2147483648, %v712_v32  ;;  %v834_v14 = vsel %vm3537_vm6, 0, %v3536_v25  ;;  %v722_v33 = vsel %vm720_vm8, %v721_v61, %v712_v32  ;;  %3245 = vperm.xlu1 %3623, %v442_v48   ;;  %v446_v25 = vld [vmem:[%s6267_s9 + $0x8] sm:$0xff] }
 0x2de   : > { %v835_v39 = vsub.s32 32, %v834_v14  ;;  %v839_v29 = vsub.s32 4294967266, %v834_v14  ;;  %v836_v6 = vshll.u32 %v827_v8, %v834_v14  ;;  %v432_v8 = vld [vmem:[%s6263_s5 + $0x18] sm:$0xff] }
 0x2df   : > { %v719_v30 = vsel %vm717_vm7, %v704_v50, %v718_v60  ;;  %v444_v50 = vld [vmem:[%s6266_s8 + $0x18] sm:$0xff] }
 0x2e0   : > { %v723_v46 = vsel %vm716_vm5, %v719_v30, %v722_v33  ;;  %v837_v55 = vshrl.u32 %v819_v4, %v835_v39  ;;  %v840_v20 = vadd.s32 127, %v839_v29  ;;  %3255 = vperm.xlu0 %3622, %v444_v50   ;;  %v448_v60 = vld [vmem:[%s6267_s9 + $0x18] sm:$0xff]  ;;  %v6213_v4 = vpop.permute.xlu1 %3067  ;;  %v6215_v30 = vpop.permute.xlu2 %3098 }
 0x2e1   : > { %v724_v0 = vsel %vm713_vm9, nan, %v723_v46 }
 0x2e2   : > { %3151 = vmatpush.msra.mxu0 %v724_v0  ;;  %v838_v18 = vor.u32 %v837_v55, %v836_v6  ;;  %v841_v11 = vshll.u32 %v840_v20, 23 }
 0x2e3   : > { %3580 = vmatmul.msk.f32.vlgmr.msra.gmra.mxu0 %vm3123_vm10, %v6130_v31 }
 0x2e4   : > { %v842_v49 = vor.u32 4788187, %v841_v11  ;;  %v845_v21 = vcvt.s32.f32 %v838_v18  ;;  %3344 = vperm.xlu2 %3625, %v446_v25  }
 0x2e5   : > { %3339 = vperm.xlu1 %3623, %v445_v56  }
 0x2e6   : > { %v843_v16 = vand.u32 2147483647, %v842_v49 }
 0x2e8   : > { %v846_v5 = vmul.f32 %v845_v21, %v843_v16  ;;  %3626 = vset.pattern.permute.xlu0 %v6395_v54  ;;  %v3095_v33 = vpop.permute.xlu1 %3094 }
 0x2e9   : > { %3391 = vperm.xlu0 %3626, %v445_v56  }
 0x2ea   : > { %v847_v17 = vxor.u32 2147483648, %v846_v5 }
 0x2eb   : > { %3581 = vmatmul.msk.f32.gmra.mxu0 %vm3123_vm10, %v6140_v1 }
 0x2ec   : > { %v848_v9 = vsel %vm727_vm11, %v847_v17, %v846_v5 }
 0x2ed   : > { %v851_v19 = vsel %vm6145_vm12, %v5178_v36, %v848_v9  ;;  %3627 = vset.pattern.permute.xlu1 %v6395_v54  ;;  %v447_v36 = vld [vmem:[%s6267_s9 + $0x10] sm:$0xff]  ;;  %v450_v54 = vld [vmem:[%s6268_s10 + $0x1] sm:$0x1] }
 0x2ee   : > { %v853_v15 = vmul.f32 %v851_v19, %v851_v19  ;;  %3395 = vperm.xlu1 %3627, %v446_v25   ;;  %3349 = vperm.xlu2 %3625, %v447_v36  }
 0x2f0   : > { %v854_v51 = vmul.f32 -0.001358992, %v853_v15  ;;  %v861_v12 = vmul.f32 -0.00019511016, %v853_v15 }
 0x2f1   : > { %3403 = vperm.xlu0 %3626, %v448_v60  }
 0x2f2   : > { %v855_v40 = vadd.f32 0.041655596, %v854_v51  ;;  %v862_v27 = vadd.f32 0.008332121, %v861_v12 }
 0x2f3   : > { %3582 = vmatmul.msk.f32.gmra.mxu0 %vm3123_vm10, %v431_v38 }
 0x2f4   : > { %v856_v35 = vmul.f32 %v855_v40, %v853_v15  ;;  %v863_v26 = vmul.f32 %v862_v27, %v853_v15 }
 0x2f6   : > { %v857_v22 = vadd.f32 -0.4999988, %v856_v35  ;;  %v864_v37 = vadd.f32 -0.16666654, %v863_v26  ;;  %3399 = vperm.xlu1 %3627, %v447_v36   ;;  %3354 = vperm.xlu2 %3625, %v448_v60  }
 0x2f7   : > { %v3058_v29 = vpop.permute.xlu2 %3057 }
 0x2f8   : > { %v858_v62 = vmul.f32 %v857_v22, %v853_v15  ;;  %v865_v10 = vmul.f32 %v864_v37, %v853_v15 }
 0x2f9   : > { %3629 = vset.pattern.permute.xlu0 %v6336_v34 }
 0x2fa   : > { %v859_v53 = vadd.f32 1.0, %v858_v62  ;;  %v866_v58 = vadd.f32 1.0, %v865_v10 }
 0x2fb   : > { %3583 = vmatmul.msk.f32.gmra.mxu0 %vm3123_vm10, %v432_v8 }
 0x2fc   : > { %v867_v23 = vmul.f32 %v866_v58, %v851_v19  ;;  %v876_v3 = vxor.u32 2147483648, %v859_v53 }
 0x2fe   : > { %v873_v2 = vxor.u32 2147483648, %v867_v23  ;;  %v877_v43 = vsel %vm875_vm14, %v876_v3, %v867_v23  ;;  %3628 = vset.pattern.permute.xlu1 %v6336_v34  ;;  %3434 = vperm.xlu2 %3625, %v450_v54   ;;  %v451_v34 = vld [vmem:[%s396_s14] sm:$0xf]  ;;  %v438_v23 = vld [vmem:[%s6265_s7 + $0x8] sm:$0xff] }
 0x2ff   : > { %v3101_v0 = vperm.slane %v451_v34, 1  ;;  %v3071_v6 = vperm.slane %v451_v34, 0  ;;  %v3102_v58 = vperm.slane %v451_v34, 3  ;;  %v3072_v42 = vperm.slane %v451_v34, 2 }
 0x300   : > { %v874_v28 = vsel %vm872_vm13, %v859_v53, %v873_v2 }
 0x301   : > { %v878_v32 = vsel %vm871_vm15, %v874_v28, %v877_v43  ;;  %v3105_v20 = vperm.slane %v3101_v0, 1  ;;  %v3075_v18 = vperm.slane %v3071_v6, 0  ;;  %v3106_v3 = vperm.slane %v3102_v58, 1 }
 0x302   : > { %v879_v61 = vsel %vm868_vm0, nan, %v878_v32  ;;  %v3076_v56 = vperm.slane %v3072_v42, 0 }
 0x303   : > { %3180 = vmatpush.msra.mxu1 %v879_v61  ;;  %v3083_v49 = vmul.f32 %v3075_v18, %v6213_v4  ;;  %v3079_v41 = vmul.f32 %v3075_v18, %v3058_v29  ;;  %v3112_v2 = vmul.f32 %v3106_v3, %v3095_v33  ;;  %v3114_v32 = vmul.f32 %v3106_v3, %v6215_v30 }
 0x304   : > { %3584 = vmatmul.msk.f32.vlgmr.msra.gmra.mxu1 %vm3123_vm10, %v6130_v31  ;;  %v3113_v31 = vmul.f32 %v3105_v20, %v6215_v30  ;;  %v3087_v21 = vpop.permute.xlu2 %3086  ;;  %v3080_v50 = vmul.f32 %v3076_v56, %v3058_v29  ;;  %v3084_v61 = vmul.f32 %v3076_v56, %v6213_v4 }
 0x305   : > { %v3107_v13 = vmul.f32 %v3105_v20, %v3087_v21  ;;  %v3108_v25 = vmul.f32 %v3106_v3, %v3087_v21 }
 0x306   : > { %v3121_v59 = vadd.f32 %v3113_v31, %v3083_v49  ;;  %v3122_v0 = vadd.f32 %v3114_v32, %v3084_v61 }
 0x30c   : > { %3585 = vmatmul.msk.f32.gmra.mxu1 %vm3123_vm10, %v6140_v1  ;;  %v3111_v1 = vmul.f32 %v3105_v20, %v3095_v33 }
 0x30e   : > { %v3053_v55 = vpop.permute.xlu1 %3052 }
 0x30f   : > { %v3091_v46 = vpop.permute.xlu0 %3090  ;;  %v3077_v9 = vmul.f32 %v3075_v18, %v3053_v55  ;;  %v3078_v36 = vmul.f32 %v3076_v56, %v3053_v55  ;;  %v440_v55 = vld [vmem:[%s6265_s7 + $0x18] sm:$0xff] }
 0x310   : > { %v3109_v16 = vmul.f32 %v3105_v20, %v3091_v46  ;;  %v3110_v28 = vmul.f32 %v3106_v3, %v3091_v46 }
 0x311   : > { %v3115_v12 = vadd.f32 %v3107_v13, %v3077_v9  ;;  %v3116_v34 = vadd.f32 %v3108_v25, %v3078_v36 }
 0x312   : > { %v3117_v52 = vadd.f32 %v3109_v16, %v3079_v41  ;;  %v3118_v60 = vadd.f32 %v3110_v28, %v3080_v50 }
 0x314   : > { %3586 = vmatmul.msk.f32.gmra.mxu1 %vm3123_vm10, %v431_v38 }
 0x318   : > { %v3063_v5 = vpop.permute.xlu0 %3062 }
 0x319   : > { %v3081_v17 = vmul.f32 %v3075_v18, %v3063_v5  ;;  %v3082_v43 = vmul.f32 %v3076_v56, %v3063_v5 }
 0x31b   : > { %v3119_v15 = vadd.f32 %v3111_v1, %v3081_v17  ;;  %v3120_v54 = vadd.f32 %v3112_v2, %v3082_v43 }
 0x31c   : > { %3587 = vmatmul.msk.f32.gmra.mxu1 %vm3123_vm10, %v432_v8  ;;  %v437_v8 = vld [vmem:[%s6265_s7] sm:$0xff] }
 0x325   : > { %v3215_v7 = vpop.permute.xlu2 %3214 }
 0x32e   : > { %v3241_v5 = vpop.permute.xlu2 %3240 }
 0x336   : > { %v3251_v13 = vpop.permute.xlu2 %3250 }
 0x33f   : > { %v3220_v44 = vpop.permute.xlu1 %3219 }
 0x346   : > { %v3210_v35 = vpop.permute.xlu0 %3209 }
 0x347   : > { %v3205_v37 = vpop.permute.xlu1 %3204 }
 0x34f   : > { %v3246_v1 = vpop.permute.xlu1 %3245 }
 0x357   : > { %v3340_v9 = vpop.permute.xlu1 %3339 }
 0x360   : > { %v3153_v14 = vpop.f32.mrf.mxu0 }
 0x361   : > { %v3194_v26 = vadd.f32 %v3153_v14, %v3115_v12  ;;  %v439_v14 = vld [vmem:[%s6265_s7 + $0x10] sm:$0xff] }
 0x363   : > { %v3222_v62 = vadd.f32 %v3205_v37, %v3194_v26 }
 0x365   : > { %v3230_v10 = vmax.f32 %v3222_v62, 0.0 }
 0x368   : > { %v3156_v39 = vpop.f32.mrf.mxu0 }
 0x369   : > { %v3196_v57 = vadd.f32 %v3156_v39, %v3117_v52 }
 0x36b   : > { %v3224_v48 = vadd.f32 %v3210_v35, %v3196_v57 }
 0x36d   : > { %v3232_v45 = vmax.f32 %v3224_v48, 0.0 }
 0x370   : > { %v3159_v11 = vpop.f32.mrf.mxu0 }
 0x371   : > { %v3198_v38 = vadd.f32 %v3159_v11, %v3119_v15  ;;  %v449_v11 = vld [vmem:[%s6268_s10] sm:$0x1]  ;;  %v3396_v15 = vpop.permute.xlu1 %3395 }
 0x372   : > { %3385 = vperm.xlu1 %3628, %v449_v11  }
 0x373   : > { %v3226_v24 = vadd.f32 %v3215_v7, %v3198_v38 }
 0x375   : > { %v3234_v22 = vmax.f32 %v3226_v24, 0.0 }
 0x378   : > { %v3162_v19 = vpop.f32.mrf.mxu0 }
 0x379   : > { %v3200_v51 = vadd.f32 %v3162_v19, %v3121_v59  ;;  %v3345_v59 = vpop.permute.xlu2 %3344 }
 0x37b   : > { %v3228_v40 = vadd.f32 %v3220_v44, %v3200_v51 }
 0x37d   : > { %v3236_v27 = vmax.f32 %v3228_v40, 0.0 }
 0x37f   : > { %3283 = vmatpush.msra.mxu2 %v3236_v27 }
 0x381   : > { %v3182_v47 = vpop.f32.mrf.mxu1  ;;  %3284 = vmatpush.msra.mxu2 %v3234_v22  ;;  %v3350_v57 = vpop.permute.xlu2 %3349 }
 0x382   : > { %v3195_v46 = vadd.f32 %v3182_v47, %v3116_v34 }
 0x383   : > { %3285 = vmatpush.msra.mxu2 %v3232_v45  ;;  %v3400_v45 = vpop.permute.xlu1 %3399 }
 0x384   : > { %v3223_v49 = vadd.f32 %v3205_v37, %v3195_v46 }
 0x385   : > { %3286 = vmatpush.msra.mxu2 %v3230_v10 }
 0x386   : > { %3588 = vmatmul.msk.f32.vlgmr.msra.gmra.mxu2 %vm3258_vm1, %v437_v8  ;;  %v3231_v16 = vmax.f32 %v3223_v49, 0.0 }
 0x389   : > { %v3185_v53 = vpop.f32.mrf.mxu1  ;;  %v3355_v42 = vpop.permute.xlu2 %3354 }
 0x38a   : > { %v3197_v33 = vadd.f32 %v3185_v53, %v3118_v60 }
 0x38c   : > { %v3225_v4 = vadd.f32 %v3210_v35, %v3197_v33 }
 0x38e   : > { %3589 = vmatmul.msk.f32.gmra.mxu2 %vm3258_vm1, %v438_v23  ;;  %v3233_v41 = vmax.f32 %v3225_v4, 0.0 }
 0x391   : > { %v3188_v63 = vpop.f32.mrf.mxu1 }
 0x392   : > { %v3199_v39 = vadd.f32 %v3188_v63, %v3120_v54 }
 0x394   : > { %v3227_v20 = vadd.f32 %v3215_v7, %v3199_v39 }
 0x396   : > { %3590 = vmatmul.msk.f32.gmra.mxu2 %vm3258_vm1, %v439_v14  ;;  %v3235_v31 = vmax.f32 %v3227_v20, 0.0 }
 0x399   : > { %v3191_v6 = vpop.f32.mrf.mxu1 }
 0x39a   : > { %v3201_v29 = vadd.f32 %v3191_v6, %v3122_v0 }
 0x39c   : > { %v3229_v30 = vadd.f32 %v3220_v44, %v3201_v29  ;;  %v3256_v44 = vpop.permute.xlu0 %3255 }
 0x39e   : > { %v3237_v18 = vmax.f32 %v3229_v30, 0.0  ;;  %3591 = vmatmul.msk.f32.gmra.mxu2 %vm3258_vm1, %v440_v55 }
 0x3a0   : > { %3312 = vmatpush.msra.mxu3 %v3237_v18 }
 0x3a2   : > { %3313 = vmatpush.msra.mxu3 %v3235_v31 }
 0x3a4   : > { %3314 = vmatpush.msra.mxu3 %v3233_v41  ;;  %v3392_v27 = vpop.permute.xlu0 %3391 }
 0x3a6   : > { %3315 = vmatpush.msra.mxu3 %v3231_v16 }
 0x3a7   : > { %3592 = vmatmul.msk.f32.vlgmr.msra.gmra.mxu3 %vm3258_vm1, %v437_v8 }
 0x3ac   : > { %v3404_v58 = vpop.permute.xlu0 %3403 }
 0x3af   : > { %3593 = vmatmul.msk.f32.gmra.mxu3 %vm3258_vm1, %v438_v23 }
 0x3b7   : > { %3594 = vmatmul.msk.f32.gmra.mxu3 %vm3258_vm1, %v439_v14 }
 0x3bf   : > { %3595 = vmatmul.msk.f32.gmra.mxu3 %vm3258_vm1, %v440_v55 }
 0x409   : > { %v3288_v21 = vpop.f32.mrf.mxu2 }
 0x40a   : > { %v3289_v38 = vadd.f32 %v3288_v21, %v3241_v5 }
 0x40c   : > { %v3329_v26 = vmax.f32 %v3289_v38, 0.0 }
 0x40e   : > { %v3406_v62 = vmul.f32 %v3392_v27, %v3329_v26  ;;  %v3357_v8 = vmul.f32 %v3340_v9, %v3329_v26 }
 0x411   : > { %v3291_v17 = vpop.f32.mrf.mxu2 }
 0x412   : > { %v3292_v51 = vadd.f32 %v3291_v17, %v3246_v1 }
 0x414   : > { %v3331_v7 = vmax.f32 %v3292_v51, 0.0 }
 0x416   : > { %v3408_v47 = vmul.f32 %v3396_v15, %v3331_v7  ;;  %v3359_v37 = vmul.f32 %v3345_v59, %v3331_v7 }
 0x418   : > { %v3414_v23 = vadd.f32 %v3408_v47, %v3406_v62  ;;  %v3365_v56 = vadd.f32 %v3359_v37, %v3357_v8  ;;  %v3435_v62 = vpop.permute.xlu2 %3434 }
 0x419   : > { %v3294_v52 = vpop.f32.mrf.mxu2 }
 0x41a   : > { %v3295_v40 = vadd.f32 %v3294_v52, %v3251_v13 }
 0x41c   : > { %v3333_v24 = vmax.f32 %v3295_v40, 0.0 }
 0x41e   : > { %v3410_v10 = vmul.f32 %v3400_v45, %v3333_v24  ;;  %v3361_v53 = vmul.f32 %v3350_v57, %v3333_v24  ;;  %v3386_v24 = vpop.permute.xlu1 %3385 }
 0x420   : > { %v3415_v43 = vadd.f32 %v3414_v23, %v3410_v10  ;;  %v3366_v32 = vadd.f32 %v3365_v56, %v3361_v53 }
 0x421   : > { %v3297_v12 = vpop.f32.mrf.mxu2 }
 0x422   : > { %v3298_v35 = vadd.f32 %v3297_v12, %v3256_v44 }
 0x424   : > { %v3335_v22 = vmax.f32 %v3298_v35, 0.0 }
 0x426   : > { %v3412_v3 = vmul.f32 %v3404_v58, %v3335_v22  ;;  %v3363_v50 = vmul.f32 %v3355_v42, %v3335_v22  ;;  %v3445_v22 = vlaneseq }
 0x428   : > { %v3416_v25 = vadd.f32 %v3415_v43, %v3412_v3  ;;  %v3367_v60 = vadd.f32 %v3366_v32, %v3363_v50  ;;  %vm3447_vm3 = vcmp.lt.s32.totalorder %v3445_v22, 256 }
 0x42a   : > { %v3317_v19 = vpop.f32.mrf.mxu3  ;;  %v3417_v34 = vrot.slane %v3416_v25, 4  ;;  %v3368_v6 = vrot.slane %v3367_v60, 4 }
 0x42b   : > { %v3318_v2 = vadd.f32 %v3317_v19, %v3241_v5 }
 0x42c   : > { %v3418_v18 = vadd.f32 %v3417_v34, %v3416_v25  ;;  %v3369_v49 = vadd.f32 %v3368_v6, %v3367_v60 }
 0x42d   : > { %v3330_v54 = vmax.f32 %v3318_v2, 0.0 }
 0x42e   : > { %v3370_v52 = vrot.slane %v3369_v49, 2 }
 0x42f   : > { %v3358_v33 = vmul.f32 %v3340_v9, %v3330_v54  ;;  %v3407_v46 = vmul.f32 %v3392_v27, %v3330_v54 }
 0x430   : > { %v3371_v51 = vadd.f32 %v3370_v52, %v3369_v49 }
 0x432   : > { %v3320_v48 = vpop.f32.mrf.mxu3  ;;  %v3372_v27 = vrot.slane %v3371_v51, 1 }
 0x433   : > { %v3321_v63 = vadd.f32 %v3320_v48, %v3246_v1  ;;  %v3419_v1 = vrot.slane %v3418_v18, 2 }
 0x434   : > { %v3373_v37 = vadd.f32 %v3372_v27, %v3371_v51 }
 0x435   : > { %v3332_v36 = vmax.f32 %v3321_v63, 0.0  ;;  %v3420_v19 = vadd.f32 %v3419_v1, %v3418_v18 }
 0x437   : > { %v3360_v39 = vmul.f32 %v3345_v59, %v3332_v36  ;;  %v3409_v0 = vmul.f32 %v3396_v15, %v3332_v36  ;;  %v3421_v38 = vrot.slane %v3420_v19, 1 }
 0x439   : > { %v3374_v55 = vadd.f32 %v3360_v39, %v3358_v33  ;;  %v3423_v11 = vadd.f32 %v3409_v0, %v3407_v46  ;;  %v3422_v48 = vadd.f32 %v3421_v38, %v3420_v19 }
 0x43a   : > { %v3323_v28 = vpop.f32.mrf.mxu3 }
 0x43b   : > { %v3324_v61 = vadd.f32 %v3323_v28, %v3251_v13  ;;  %v3437_v53 = vadd.f32 %v3435_v62, %v3422_v48 }
 0x43d   : > { %v3334_v14 = vmax.f32 %v3324_v61, 0.0 }
 0x43f   : > { %v3362_v30 = vmul.f32 %v3350_v57, %v3334_v14  ;;  %v3411_v20 = vmul.f32 %v3400_v45, %v3334_v14 }
 0x441   : > { %v3375_v41 = vadd.f32 %v3374_v55, %v3362_v30  ;;  %v3424_v16 = vadd.f32 %v3423_v11, %v3411_v20 }
 0x442   : > { %v3326_v29 = vpop.f32.mrf.mxu3 }
 0x443   : > { %v3327_v4 = vadd.f32 %v3326_v29, %v3256_v44 }
 0x445   : > { %v3336_v31 = vmax.f32 %v3327_v4, 0.0 }
 0x447   : > { %v3364_v21 = vmul.f32 %v3355_v42, %v3336_v31  ;;  %v3413_v5 = vmul.f32 %v3404_v58, %v3336_v31  ;;  %v3388_v42 = vadd.f32 %v3386_v24, %v3373_v37 }
 0x449   : > { %v3376_v17 = vadd.f32 %v3375_v41, %v3364_v21  ;;  %v3425_v13 = vadd.f32 %v3424_v16, %v3413_v5 }
 0x44b   : > { %v3377_v59 = vrot.slane %v3376_v17, 4  ;;  %v3426_v9 = vrot.slane %v3425_v13, 4 }
 0x44d   : > { %v3427_v15 = vadd.f32 %v3426_v9, %v3425_v13  ;;  %v3378_v12 = vadd.f32 %v3377_v59, %v3376_v17 }
 0x44f   : > { %v3428_v44 = vrot.slane %v3427_v15, 2  ;;  %v3379_v57 = vrot.slane %v3378_v12, 2 }
 0x451   : > { %v3429_v40 = vadd.f32 %v3428_v44, %v3427_v15  ;;  %v3380_v7 = vadd.f32 %v3379_v57, %v3378_v12 }
 0x453   : > { %v3430_v35 = vrot.slane %v3429_v40, 1  ;;  %v3381_v26 = vrot.slane %v3380_v7, 1 }
 0x455   : > { %v3431_v47 = vadd.f32 %v3430_v35, %v3429_v40  ;;  %v3382_v45 = vadd.f32 %v3381_v26, %v3380_v7 }
 0x457   : > { %v3438_v10 = vadd.f32 %v3435_v62, %v3431_v47  ;;  %v3389_v8 = vadd.f32 %v3386_v24, %v3382_v45 }
 0x459   : > { %v3452_v58 = vrot.slane %v3438_v10, 7  ;;  %v3441_v23 = vrot.slane %v3389_v8, 7 }
 0x45b   : > { %v3443_v3 = vsel %vm3442_vm2, %v3388_v42, %v3441_v23  ;;  %v3453_v56 = vsel %vm3442_vm2, %v3437_v53, %v3452_v58 }
 0x45c   : > { %3449 = vst.msk [vmem:[%s407_s29] ss:$2 sm:$0x3] %vm3447_vm3, %v3443_v3 }
 0x45d   : > { %3596 = vst.msk [vmem:[%s407_s29 + $0x1] ss:$2 sm:$0x3] %vm3447_vm3, %v3453_v56 }
 0x45e PF: > { %s21_s17 = sadd.s32 1, %s3637_s17  }
 0x45f   : > { %p18_p4 = scmp.ge.s32.totalorder %s21_s17, 4  }
 0x461   :  { %20 = sbr.rel (!%p18_p4) target bundleno = 1 (0x1), region = 98 }

</bundles_post_ra>
